<compile_context>
chip_gen: v7x
topology: tpu7x:2x2x1
jax: 0.10.0
libtpu: 0.0.40
codegen_flags: <defaults>
</compile_context>

<pallas_src>
import functools

import jax
import jax.numpy as jnp
import numpy as np
from jax.experimental import pallas as pl
from jax.experimental.pallas import tpu as pltpu

HIDDEN = 32          # config.hidden_size
SEQ = 8              # sequence length
BATCH = 2
NUM_HEADS = 8        # nn.TransformerEncoderLayer(nhead=8)
DFF = 2048           # dim_feedforward default
EPS = 1e-12          # module-level layer_norm_eps default
LAYER_EPS = 1e-5     # TransformerEncoderLayer norm eps default
NEG_SLOPE = 0.01     # F.leaky_relu default
MASK_VAL = 1e30      # non-fp16 branch
IGNORE_INDEX = -100

PARAM_NAMES = ["w0t", "b0", "wqkvT", "bqkv", "woT", "bo", "g1", "be1",
               "w1T", "b1", "w2T", "b2", "g2", "be2", "gl", "bl", "wd1", "bd1"]


# ---------------------------------------------------------------------------
# Shared math (used both inside the Pallas kernel and as the pure-JAX ref).
# ---------------------------------------------------------------------------
def _layernorm(x, gamma, beta, eps):
    mean = jnp.mean(x, axis=-1, keepdims=True)
    var = jnp.mean((x - mean) ** 2, axis=-1, keepdims=True)
    return (x - mean) * jax.lax.rsqrt(var + eps) * gamma + beta


def _forward_math(sp_list, hs, pm,
                  w0t, b0, wqkvT, bqkv, woT, bo, g1, be1,
                  w1T, b1, w2T, b2, g2, be2, gl, bl, wd1, bd1,
                  *, num_heads):
    """sp_list: list of B int32 scalars, hs:(B,S,H), pm:(B,S) -> (B,S) logits."""
    B, S, H = hs.shape
    hd = H // num_heads

    # --- start-state gather (iota-select, no dynamic sublane slicing) + concat
    parts = []
    for b in range(B):
        sp_b = sp_list[b]
        sp_b = jnp.where(sp_b == IGNORE_INDEX, 0, sp_b)
        sel = jax.lax.broadcasted_iota(jnp.int32, (S, H), 0) == sp_b
        row = jnp.sum(jnp.where(sel, hs[b], 0.0), axis=0, keepdims=True)   # (1,H)
        parts.append(jnp.concatenate(
            [hs[b], jnp.broadcast_to(row, (S, H))], axis=-1))              # (S,2H)
    x0 = jnp.concatenate(parts, axis=0)                                    # (B*S, 2H)

    # --- dense_0 over all tokens
    x = jnp.dot(x0, w0t, preferred_element_type=jnp.float32) + b0          # (B*S, H)

    # --- TransformerEncoderLayer (post-norm; dropout = identity at inference)
    # self attention
    qkv = jnp.dot(x, wqkvT, preferred_element_type=jnp.float32) + bqkv     # (B*S, 3H)
    qkv3 = qkv.reshape(B, S, 3 * H)
    q = qkv3[..., :H]
    k = qkv3[..., H:2 * H]
    v = qkv3[..., 2 * H:]
    scale = 1.0 / float(np.sqrt(hd))
    heads = []
    for h in range(num_heads):
        sl = slice(h * hd, (h + 1) * hd)
        qh, kh, vh = q[..., sl], k[..., sl], v[..., sl]
        s = jnp.einsum('bqd,bkd->bqk', qh, kh,
                       preferred_element_type=jnp.float32) * scale         # (B,S,S)
        s = s - jnp.max(s, axis=-1, keepdims=True)
        e = jnp.exp(s)
        p = e / jnp.sum(e, axis=-1, keepdims=True)
        heads.append(jnp.einsum('bqk,bkd->bqd', p, vh,
                                preferred_element_type=jnp.float32))        # (B,S,hd)
    attn = jnp.concatenate(heads, axis=-1).reshape(B * S, H)
    attn = jnp.dot(attn, woT, preferred_element_type=jnp.float32) + bo     # (B*S, H)

    src = _layernorm(x + attn, g1, be1, LAYER_EPS)

    # feed-forward (relu, dim_feedforward = DFF)
    ff = jnp.dot(src, w1T, preferred_element_type=jnp.float32) + b1        # (B*S, DFF)
    ff = jnp.maximum(ff, 0.0)
    ff = jnp.dot(ff, w2T, preferred_element_type=jnp.float32) + b2         # (B*S, H)
    src = _layernorm(src + ff, g2, be2, LAYER_EPS)

    # --- module-level tail: leaky_relu -> LayerNorm -> dense_1 -> p_mask
    xa = jnp.where(src > 0, src, NEG_SLOPE * src)
    xn = _layernorm(xa, gl, bl, EPS)
    # dense_1 as a lane-reduce; lane-dense (B, S) output
    logits = jnp.sum(xn.reshape(B, S, H) * wd1, axis=-1) + bd1             # (B,S)
    return logits * (1.0 - pm) - MASK_VAL * pm


# ---------------------------------------------------------------------------
# Pallas kernel: single invocation, whole batch.
# ---------------------------------------------------------------------------
def _pooler_end_kernel(sp_ref, hs_ref, pm_ref,
                       w0t_ref, b0_ref, wqkvT_ref, bqkv_ref, woT_ref, bo_ref,
                       g1_ref, be1_ref, w1T_ref, b1_ref, w2T_ref, b2_ref,
                       g2_ref, be2_ref, gl_ref, bl_ref, wd1_ref, bd1_ref,
                       out_ref, *, num_heads):
    B = hs_ref.shape[0]
    sp_list = [sp_ref[b] for b in range(B)]      # scalars from SMEM
    out_ref[...] = _forward_math(
        sp_list, hs_ref[...], pm_ref[...],
        w0t_ref[...], b0_ref[...], wqkvT_ref[...], bqkv_ref[...],
        woT_ref[...], bo_ref[...], g1_ref[...], be1_ref[...],
        w1T_ref[...], b1_ref[...], w2T_ref[...], b2_ref[...],
        g2_ref[...], be2_ref[...], gl_ref[...], bl_ref[...],
        wd1_ref[...], bd1_ref[...], num_heads=num_heads)


def pooler_end_logits(hidden_states, start_positions, p_mask, params,
                      num_heads=NUM_HEADS):
    B, S, _ = hidden_states.shape
    vmem = pl.BlockSpec(memory_space=pltpu.MemorySpace.VMEM)
    smem = pl.BlockSpec(memory_space=pltpu.MemorySpace.SMEM)
    weight_args = [params[n] for n in PARAM_NAMES]

    out = pl.pallas_call(
        functools.partial(_pooler_end_kernel, num_heads=num_heads),
        in_specs=[smem, vmem, vmem] + [vmem] * len(weight_args),
        out_specs=vmem,
        out_shape=jax.ShapeDtypeStruct((B, S), jnp.float32),
    )(start_positions.astype(jnp.int32),
      hidden_states.astype(jnp.float32),
      p_mask.astype(jnp.float32),
      *weight_args)
    return out                                                             # (B, S)


# ---------------------------------------------------------------------------
# Pure-JAX reference (same math; run at highest matmul precision).
# ---------------------------------------------------------------------------
def ref_forward(hidden_states, start_positions, p_mask, params,
                num_heads=NUM_HEADS):
    B = hidden_states.shape[0]
    sp = start_positions.astype(jnp.int32)
    sp_list = [sp[b] for b in range(B)]
    args = [params[n] for n in PARAM_NAMES]
    with jax.default_matmul_precision("highest"):
        return _forward_math(sp_list, hidden_states.astype(jnp.float32),
                             p_mask.astype(jnp.float32), *args,
                             num_heads=num_heads)


# ---------------------------------------------------------------------------
# Deterministic parameter init (shapes follow the nn.Module __init__).
# ---------------------------------------------------------------------------
def init_params(key, H, dff):
    ks = list(jax.random.split(key, 16))

    def uni(k, shape, fan_in):
        bound = 1.0 / np.sqrt(fan_in)
        return jax.random.uniform(k, shape, jnp.float32, -bound, bound)

    p = {}
    # dense_0: Linear(2H -> H), stored transposed
    p["w0t"] = uni(ks[0], (2 * H, H), 2 * H)
    p["b0"] = uni(ks[1], (1, H), 2 * H)
    # MultiheadAttention in_proj (3H, H) stored transposed (H, 3H) + bias
    p["wqkvT"] = uni(ks[2], (H, 3 * H), H)
    p["bqkv"] = uni(ks[3], (1, 3 * H), H)
    # out_proj: Linear(H -> H)
    p["woT"] = uni(ks[4], (H, H), H)
    p["bo"] = uni(ks[5], (1, H), H)
    # encoder-layer norms (eps=1e-5)
    p["g1"] = jnp.ones((1, H), jnp.float32)
    p["be1"] = jnp.zeros((1, H), jnp.float32)
    p["g2"] = jnp.ones((1, H), jnp.float32)
    p["be2"] = jnp.zeros((1, H), jnp.float32)
    # FFN: Linear(H -> dff), Linear(dff -> H)
    p["w1T"] = uni(ks[6], (H, dff), H)
    p["b1"] = uni(ks[7], (1, dff), H)
    p["w2T"] = uni(ks[8], (dff, H), dff)
    p["b2"] = uni(ks[9], (1, H), dff)
    # module-level LayerNorm(H) (eps=1e-12)
    p["gl"] = jnp.ones((1, H), jnp.float32)
    p["bl"] = jnp.zeros((1, H), jnp.float32)
    # dense_1: Linear(H -> 1), stored as a (1, H) row for lane-reduce
    p["wd1"] = uni(ks[10], (1, H), H)
    p["bd1"] = uni(ks[11], (1, 1), H)
    return p


if __name__ == "__main__":
    key = jax.random.PRNGKey(0)
    k_h, k_p = jax.random.split(key)
    params = init_params(k_p, HIDDEN, DFF)

    hidden_states = jax.random.normal(k_h, (BATCH, SEQ, HIDDEN), jnp.float32)
    # includes the ignore_index (-100) path of the forward
    start_positions = jnp.array([3, IGNORE_INDEX], dtype=jnp.int32)
    p_mask = jnp.zeros((BATCH, SEQ), jnp.float32).at[:, -1].set(1.0)

    out = jax.block_until_ready(
        pooler_end_logits(hidden_states, start_positions, p_mask, params))
    ref = jax.block_until_ready(
        ref_forward(hidden_states, start_positions, p_mask, params))

    np.testing.assert_allclose(np.asarray(out), np.asarray(ref),
                               rtol=1e-4, atol=1e-4)
    print("KERNEL_OK")
</pallas_src>

<mosaic_0001>
module attributes {stable_mosaic.version = 11 : i64} {
  func.func @_pooler_end_kernel(%arg0: memref<2xi32, #tpu.memory_space<smem>>, %arg1: memref<2x8x32xf32, #tpu.memory_space<vmem>>, %arg2: memref<2x8xf32, #tpu.memory_space<vmem>>, %arg3: memref<64x32xf32, #tpu.memory_space<vmem>>, %arg4: memref<1x32xf32, #tpu.memory_space<vmem>>, %arg5: memref<32x96xf32, #tpu.memory_space<vmem>>, %arg6: memref<1x96xf32, #tpu.memory_space<vmem>>, %arg7: memref<32x32xf32, #tpu.memory_space<vmem>>, %arg8: memref<1x32xf32, #tpu.memory_space<vmem>>, %arg9: memref<1x32xf32, #tpu.memory_space<vmem>>, %arg10: memref<1x32xf32, #tpu.memory_space<vmem>>, %arg11: memref<32x2048xf32, #tpu.memory_space<vmem>>, %arg12: memref<1x2048xf32, #tpu.memory_space<vmem>>, %arg13: memref<2048x32xf32, #tpu.memory_space<vmem>>, %arg14: memref<1x32xf32, #tpu.memory_space<vmem>>, %arg15: memref<1x32xf32, #tpu.memory_space<vmem>>, %arg16: memref<1x32xf32, #tpu.memory_space<vmem>>, %arg17: memref<1x32xf32, #tpu.memory_space<vmem>>, %arg18: memref<1x32xf32, #tpu.memory_space<vmem>>, %arg19: memref<1x32xf32, #tpu.memory_space<vmem>>, %arg20: memref<1x1xf32, #tpu.memory_space<vmem>>, %arg21: memref<2x8xf32, #tpu.memory_space<vmem>>) attributes {dimension_semantics = [], scalar_prefetch = 0 : i64, scratch_operands = 0 : i64, tpu.core_type = #tpu.core_type<tc>} {
    %c0 = arith.constant 0 : index
    %0 = memref.load %arg0[%c0] : memref<2xi32, #tpu.memory_space<smem>>
    %c1 = arith.constant 1 : index
    %1 = memref.load %arg0[%c1] : memref<2xi32, #tpu.memory_space<smem>>
    %c0_0 = arith.constant 0 : index
    %c0_1 = arith.constant 0 : index
    %c0_2 = arith.constant 0 : index
    %2 = vector.load %arg1[%c0_0, %c0_1, %c0_2] : memref<2x8x32xf32, #tpu.memory_space<vmem>>, vector<2x8x32xf32>
    %c0_3 = arith.constant 0 : index
    %c0_4 = arith.constant 0 : index
    %3 = vector.load %arg2[%c0_3, %c0_4] : memref<2x8xf32, #tpu.memory_space<vmem>>, vector<2x8xf32>
    %c0_5 = arith.constant 0 : index
    %c0_6 = arith.constant 0 : index
    %4 = vector.load %arg3[%c0_5, %c0_6] : memref<64x32xf32, #tpu.memory_space<vmem>>, vector<64x32xf32>
    %c0_7 = arith.constant 0 : index
    %c0_8 = arith.constant 0 : index
    %5 = vector.load %arg4[%c0_7, %c0_8] : memref<1x32xf32, #tpu.memory_space<vmem>>, vector<1x32xf32>
    %c0_9 = arith.constant 0 : index
    %c0_10 = arith.constant 0 : index
    %6 = vector.load %arg5[%c0_9, %c0_10] : memref<32x96xf32, #tpu.memory_space<vmem>>, vector<32x96xf32>
    %c0_11 = arith.constant 0 : index
    %c0_12 = arith.constant 0 : index
    %7 = vector.load %arg6[%c0_11, %c0_12] : memref<1x96xf32, #tpu.memory_space<vmem>>, vector<1x96xf32>
    %c0_13 = arith.constant 0 : index
    %c0_14 = arith.constant 0 : index
    %8 = vector.load %arg7[%c0_13, %c0_14] : memref<32x32xf32, #tpu.memory_space<vmem>>, vector<32x32xf32>
    %c0_15 = arith.constant 0 : index
    %c0_16 = arith.constant 0 : index
    %9 = vector.load %arg8[%c0_15, %c0_16] : memref<1x32xf32, #tpu.memory_space<vmem>>, vector<1x32xf32>
    %c0_17 = arith.constant 0 : index
    %c0_18 = arith.constant 0 : index
    %10 = vector.load %arg9[%c0_17, %c0_18] : memref<1x32xf32, #tpu.memory_space<vmem>>, vector<1x32xf32>
    %c0_19 = arith.constant 0 : index
    %c0_20 = arith.constant 0 : index
    %11 = vector.load %arg10[%c0_19, %c0_20] : memref<1x32xf32, #tpu.memory_space<vmem>>, vector<1x32xf32>
    %c0_21 = arith.constant 0 : index
    %c0_22 = arith.constant 0 : index
    %12 = vector.load %arg11[%c0_21, %c0_22] : memref<32x2048xf32, #tpu.memory_space<vmem>>, vector<32x2048xf32>
    %c0_23 = arith.constant 0 : index
    %c0_24 = arith.constant 0 : index
    %13 = vector.load %arg12[%c0_23, %c0_24] : memref<1x2048xf32, #tpu.memory_space<vmem>>, vector<1x2048xf32>
    %c0_25 = arith.constant 0 : index
    %c0_26 = arith.constant 0 : index
    %14 = vector.load %arg13[%c0_25, %c0_26] : memref<2048x32xf32, #tpu.memory_space<vmem>>, vector<2048x32xf32>
    %c0_27 = arith.constant 0 : index
    %c0_28 = arith.constant 0 : index
    %15 = vector.load %arg14[%c0_27, %c0_28] : memref<1x32xf32, #tpu.memory_space<vmem>>, vector<1x32xf32>
    %c0_29 = arith.constant 0 : index
    %c0_30 = arith.constant 0 : index
    %16 = vector.load %arg15[%c0_29, %c0_30] : memref<1x32xf32, #tpu.memory_space<vmem>>, vector<1x32xf32>
    %c0_31 = arith.constant 0 : index
    %c0_32 = arith.constant 0 : index
    %17 = vector.load %arg16[%c0_31, %c0_32] : memref<1x32xf32, #tpu.memory_space<vmem>>, vector<1x32xf32>
    %c0_33 = arith.constant 0 : index
    %c0_34 = arith.constant 0 : index
    %18 = vector.load %arg17[%c0_33, %c0_34] : memref<1x32xf32, #tpu.memory_space<vmem>>, vector<1x32xf32>
    %c0_35 = arith.constant 0 : index
    %c0_36 = arith.constant 0 : index
    %19 = vector.load %arg18[%c0_35, %c0_36] : memref<1x32xf32, #tpu.memory_space<vmem>>, vector<1x32xf32>
    %c0_37 = arith.constant 0 : index
    %c0_38 = arith.constant 0 : index
    %20 = vector.load %arg19[%c0_37, %c0_38] : memref<1x32xf32, #tpu.memory_space<vmem>>, vector<1x32xf32>
    %c0_39 = arith.constant 0 : index
    %c0_40 = arith.constant 0 : index
    %21 = vector.load %arg20[%c0_39, %c0_40] : memref<1x1xf32, #tpu.memory_space<vmem>>, vector<1x1xf32>
    %c-100_i32 = arith.constant -100 : i32
    %22 = arith.cmpi eq, %0, %c-100_i32 : i32
    %c0_i32 = arith.constant 0 : i32
    %23 = arith.select %22, %c0_i32, %0 : i32
    %24 = tpu.iota {dimensions = array<i32: 0>} : vector<8x32xi32>
    %25 = vector.broadcast %23 : i32 to vector<8x32xi32>
    %26 = arith.cmpi eq, %24, %25 : vector<8x32xi32>
    %27 = vector.extract_strided_slice %2 {offsets = [0, 0, 0], sizes = [1, 8, 32], strides = [1, 1, 1]} : vector<2x8x32xf32> to vector<1x8x32xf32>
    %28 = vector.shape_cast %27 : vector<1x8x32xf32> to vector<8x32xf32>
    %cst = arith.constant 0.000000e+00 : f32
    %29 = vector.broadcast %cst : f32 to vector<8x32xf32>
    %30 = arith.select %26, %28, %29 : vector<8x32xi1>, vector<8x32xf32>
    %cst_41 = arith.constant dense<0.000000e+00> : vector<32xf32>
    %31 = vector.multi_reduction <add>, %30, %cst_41 [0] : vector<8x32xf32> to vector<32xf32>
    %32 = vector.shape_cast %31 : vector<32xf32> to vector<1x32xf32>
    %33 = vector.extract_strided_slice %2 {offsets = [0, 0, 0], sizes = [1, 8, 32], strides = [1, 1, 1]} : vector<2x8x32xf32> to vector<1x8x32xf32>
    %34 = vector.shape_cast %33 : vector<1x8x32xf32> to vector<8x32xf32>
    %35 = vector.shape_cast %32 : vector<1x32xf32> to vector<1x32xf32>
    %36 = vector.broadcast %35 : vector<1x32xf32> to vector<8x32xf32>
    %37 = tpu.concatenate %34, %36 in 1 : vector<8x32xf32>, vector<8x32xf32> -> vector<8x64xf32>
    %c-100_i32_42 = arith.constant -100 : i32
    %38 = arith.cmpi eq, %1, %c-100_i32_42 : i32
    %c0_i32_43 = arith.constant 0 : i32
    %39 = arith.select %38, %c0_i32_43, %1 : i32
    %40 = tpu.iota {dimensions = array<i32: 0>} : vector<8x32xi32>
    %41 = vector.broadcast %39 : i32 to vector<8x32xi32>
    %42 = arith.cmpi eq, %40, %41 : vector<8x32xi32>
    %43 = vector.extract_strided_slice %2 {offsets = [1, 0, 0], sizes = [1, 8, 32], strides = [1, 1, 1]} : vector<2x8x32xf32> to vector<1x8x32xf32>
    %44 = vector.shape_cast %43 : vector<1x8x32xf32> to vector<8x32xf32>
    %cst_44 = arith.constant 0.000000e+00 : f32
    %45 = vector.broadcast %cst_44 : f32 to vector<8x32xf32>
    %46 = arith.select %42, %44, %45 : vector<8x32xi1>, vector<8x32xf32>
    %cst_45 = arith.constant dense<0.000000e+00> : vector<32xf32>
    %47 = vector.multi_reduction <add>, %46, %cst_45 [0] : vector<8x32xf32> to vector<32xf32>
    %48 = vector.shape_cast %47 : vector<32xf32> to vector<1x32xf32>
    %49 = vector.extract_strided_slice %2 {offsets = [1, 0, 0], sizes = [1, 8, 32], strides = [1, 1, 1]} : vector<2x8x32xf32> to vector<1x8x32xf32>
    %50 = vector.shape_cast %49 : vector<1x8x32xf32> to vector<8x32xf32>
    %51 = vector.shape_cast %48 : vector<1x32xf32> to vector<1x32xf32>
    %52 = vector.broadcast %51 : vector<1x32xf32> to vector<8x32xf32>
    %53 = tpu.concatenate %50, %52 in 1 : vector<8x32xf32>, vector<8x32xf32> -> vector<8x64xf32>
    %54 = tpu.concatenate %37, %53 in 0 : vector<8x64xf32>, vector<8x64xf32> -> vector<16x64xf32>
    %cst_46 = arith.constant dense<0.000000e+00> : vector<16x32xf32>
    %55 = tpu.matmul %54, %4, %cst_46 {dimension_numbers = #tpu.dot_dimension_numbers<[1], [0], [0], [1], [0, 0, 1, 1], [], []>} : vector<16x64xf32>, vector<64x32xf32>, vector<16x32xf32> -> vector<16x32xf32>
    %56 = vector.broadcast %5 : vector<1x32xf32> to vector<16x32xf32>
    %57 = arith.addf %55, %56 : vector<16x32xf32>
    %cst_47 = arith.constant dense<0.000000e+00> : vector<16x96xf32>
    %58 = tpu.matmul %57, %6, %cst_47 {dimension_numbers = #tpu.dot_dimension_numbers<[1], [0], [0], [1], [0, 0, 1, 1], [], []>} : vector<16x32xf32>, vector<32x96xf32>, vector<16x96xf32> -> vector<16x96xf32>
    %59 = vector.broadcast %7 : vector<1x96xf32> to vector<16x96xf32>
    %60 = arith.addf %58, %59 : vector<16x96xf32>
    %61 = vector.shape_cast %60 : vector<16x96xf32> to vector<2x8x96xf32>
    %62 = vector.extract_strided_slice %61 {offsets = [0, 0, 0], sizes = [2, 8, 32], strides = [1, 1, 1]} : vector<2x8x96xf32> to vector<2x8x32xf32>
    %63 = vector.extract_strided_slice %61 {offsets = [0, 0, 32], sizes = [2, 8, 32], strides = [1, 1, 1]} : vector<2x8x96xf32> to vector<2x8x32xf32>
    %64 = vector.extract_strided_slice %61 {offsets = [0, 0, 64], sizes = [2, 8, 32], strides = [1, 1, 1]} : vector<2x8x96xf32> to vector<2x8x32xf32>
    %65 = vector.extract_strided_slice %62 {offsets = [0, 0, 0], sizes = [2, 8, 4], strides = [1, 1, 1]} : vector<2x8x32xf32> to vector<2x8x4xf32>
    %66 = vector.extract_strided_slice %63 {offsets = [0, 0, 0], sizes = [2, 8, 4], strides = [1, 1, 1]} : vector<2x8x32xf32> to vector<2x8x4xf32>
    %67 = vector.extract_strided_slice %64 {offsets = [0, 0, 0], sizes = [2, 8, 4], strides = [1, 1, 1]} : vector<2x8x32xf32> to vector<2x8x4xf32>
    "tpu.trace_start"() <{level = 10 : i32, message = "bqd,bkd->bqk"}> : () -> ()
    %cst_48 = arith.constant dense<0.000000e+00> : vector<2x8x8xf32>
    %68 = tpu.matmul %65, %66, %cst_48 {dimension_numbers = #tpu.dot_dimension_numbers<[2], [2], [1], [1], [0, 0, 0, 1, 1, 1], [0], [0]>} : vector<2x8x4xf32>, vector<2x8x4xf32>, vector<2x8x8xf32> -> vector<2x8x8xf32>
    "tpu.trace_stop"() : () -> ()
    %cst_49 = arith.constant 5.000000e-01 : f32
    %69 = vector.broadcast %cst_49 : f32 to vector<2x8x8xf32>
    %70 = arith.mulf %68, %69 : vector<2x8x8xf32>
    %cst_50 = arith.constant dense<0xFF800000> : vector<2x8xf32>
    %71 = vector.multi_reduction <maximumf>, %70, %cst_50 [2] : vector<2x8x8xf32> to vector<2x8xf32>
    %72 = vector.shape_cast %71 : vector<2x8xf32> to vector<2x8x1xf32>
    %73 = vector.broadcast %72 : vector<2x8x1xf32> to vector<2x8x8xf32>
    %74 = arith.subf %70, %73 : vector<2x8x8xf32>
    %75 = math.exp %74 : vector<2x8x8xf32>
    %cst_51 = arith.constant dense<0.000000e+00> : vector<2x8xf32>
    %76 = vector.multi_reduction <add>, %75, %cst_51 [2] : vector<2x8x8xf32> to vector<2x8xf32>
    %77 = vector.shape_cast %76 : vector<2x8xf32> to vector<2x8x1xf32>
    %78 = vector.broadcast %77 : vector<2x8x1xf32> to vector<2x8x8xf32>
    %79 = arith.divf %75, %78 : vector<2x8x8xf32>
    "tpu.trace_start"() <{level = 10 : i32, message = "bqk,bkd->bqd"}> : () -> ()
    %cst_52 = arith.constant dense<0.000000e+00> : vector<2x8x4xf32>
    %80 = tpu.matmul %79, %67, %cst_52 {dimension_numbers = #tpu.dot_dimension_numbers<[2], [1], [1], [2], [0, 0, 0, 1, 1, 2], [0], [0]>} : vector<2x8x8xf32>, vector<2x8x4xf32>, vector<2x8x4xf32> -> vector<2x8x4xf32>
    "tpu.trace_stop"() : () -> ()
    %81 = vector.extract_strided_slice %62 {offsets = [0, 0, 4], sizes = [2, 8, 4], strides = [1, 1, 1]} : vector<2x8x32xf32> to vector<2x8x4xf32>
    %82 = vector.extract_strided_slice %63 {offsets = [0, 0, 4], sizes = [2, 8, 4], strides = [1, 1, 1]} : vector<2x8x32xf32> to vector<2x8x4xf32>
    %83 = vector.extract_strided_slice %64 {offsets = [0, 0, 4], sizes = [2, 8, 4], strides = [1, 1, 1]} : vector<2x8x32xf32> to vector<2x8x4xf32>
    "tpu.trace_start"() <{level = 10 : i32, message = "bqd,bkd->bqk"}> : () -> ()
    %cst_53 = arith.constant dense<0.000000e+00> : vector<2x8x8xf32>
    %84 = tpu.matmul %81, %82, %cst_53 {dimension_numbers = #tpu.dot_dimension_numbers<[2], [2], [1], [1], [0, 0, 0, 1, 1, 1], [0], [0]>} : vector<2x8x4xf32>, vector<2x8x4xf32>, vector<2x8x8xf32> -> vector<2x8x8xf32>
    "tpu.trace_stop"() : () -> ()
    %cst_54 = arith.constant 5.000000e-01 : f32
    %85 = vector.broadcast %cst_54 : f32 to vector<2x8x8xf32>
    %86 = arith.mulf %84, %85 : vector<2x8x8xf32>
    %cst_55 = arith.constant dense<0xFF800000> : vector<2x8xf32>
    %87 = vector.multi_reduction <maximumf>, %86, %cst_55 [2] : vector<2x8x8xf32> to vector<2x8xf32>
    %88 = vector.shape_cast %87 : vector<2x8xf32> to vector<2x8x1xf32>
    %89 = vector.broadcast %88 : vector<2x8x1xf32> to vector<2x8x8xf32>
    %90 = arith.subf %86, %89 : vector<2x8x8xf32>
    %91 = math.exp %90 : vector<2x8x8xf32>
    %cst_56 = arith.constant dense<0.000000e+00> : vector<2x8xf32>
    %92 = vector.multi_reduction <add>, %91, %cst_56 [2] : vector<2x8x8xf32> to vector<2x8xf32>
    %93 = vector.shape_cast %92 : vector<2x8xf32> to vector<2x8x1xf32>
    %94 = vector.broadcast %93 : vector<2x8x1xf32> to vector<2x8x8xf32>
    %95 = arith.divf %91, %94 : vector<2x8x8xf32>
    "tpu.trace_start"() <{level = 10 : i32, message = "bqk,bkd->bqd"}> : () -> ()
    %cst_57 = arith.constant dense<0.000000e+00> : vector<2x8x4xf32>
    %96 = tpu.matmul %95, %83, %cst_57 {dimension_numbers = #tpu.dot_dimension_numbers<[2], [1], [1], [2], [0, 0, 0, 1, 1, 2], [0], [0]>} : vector<2x8x8xf32>, vector<2x8x4xf32>, vector<2x8x4xf32> -> vector<2x8x4xf32>
    "tpu.trace_stop"() : () -> ()
    %97 = vector.extract_strided_slice %62 {offsets = [0, 0, 8], sizes = [2, 8, 4], strides = [1, 1, 1]} : vector<2x8x32xf32> to vector<2x8x4xf32>
    %98 = vector.extract_strided_slice %63 {offsets = [0, 0, 8], sizes = [2, 8, 4], strides = [1, 1, 1]} : vector<2x8x32xf32> to vector<2x8x4xf32>
    %99 = vector.extract_strided_slice %64 {offsets = [0, 0, 8], sizes = [2, 8, 4], strides = [1, 1, 1]} : vector<2x8x32xf32> to vector<2x8x4xf32>
    "tpu.trace_start"() <{level = 10 : i32, message = "bqd,bkd->bqk"}> : () -> ()
    %cst_58 = arith.constant dense<0.000000e+00> : vector<2x8x8xf32>
    %100 = tpu.matmul %97, %98, %cst_58 {dimension_numbers = #tpu.dot_dimension_numbers<[2], [2], [1], [1], [0, 0, 0, 1, 1, 1], [0], [0]>} : vector<2x8x4xf32>, vector<2x8x4xf32>, vector<2x8x8xf32> -> vector<2x8x8xf32>
    "tpu.trace_stop"() : () -> ()
    %cst_59 = arith.constant 5.000000e-01 : f32
    %101 = vector.broadcast %cst_59 : f32 to vector<2x8x8xf32>
    %102 = arith.mulf %100, %101 : vector<2x8x8xf32>
    %cst_60 = arith.constant dense<0xFF800000> : vector<2x8xf32>
    %103 = vector.multi_reduction <maximumf>, %102, %cst_60 [2] : vector<2x8x8xf32> to vector<2x8xf32>
    %104 = vector.shape_cast %103 : vector<2x8xf32> to vector<2x8x1xf32>
    %105 = vector.broadcast %104 : vector<2x8x1xf32> to vector<2x8x8xf32>
    %106 = arith.subf %102, %105 : vector<2x8x8xf32>
    %107 = math.exp %106 : vector<2x8x8xf32>
    %cst_61 = arith.constant dense<0.000000e+00> : vector<2x8xf32>
    %108 = vector.multi_reduction <add>, %107, %cst_61 [2] : vector<2x8x8xf32> to vector<2x8xf32>
    %109 = vector.shape_cast %108 : vector<2x8xf32> to vector<2x8x1xf32>
    %110 = vector.broadcast %109 : vector<2x8x1xf32> to vector<2x8x8xf32>
    %111 = arith.divf %107, %110 : vector<2x8x8xf32>
    "tpu.trace_start"() <{level = 10 : i32, message = "bqk,bkd->bqd"}> : () -> ()
    %cst_62 = arith.constant dense<0.000000e+00> : vector<2x8x4xf32>
    %112 = tpu.matmul %111, %99, %cst_62 {dimension_numbers = #tpu.dot_dimension_numbers<[2], [1], [1], [2], [0, 0, 0, 1, 1, 2], [0], [0]>} : vector<2x8x8xf32>, vector<2x8x4xf32>, vector<2x8x4xf32> -> vector<2x8x4xf32>
    "tpu.trace_stop"() : () -> ()
    %113 = vector.extract_strided_slice %62 {offsets = [0, 0, 12], sizes = [2, 8, 4], strides = [1, 1, 1]} : vector<2x8x32xf32> to vector<2x8x4xf32>
    %114 = vector.extract_strided_slice %63 {offsets = [0, 0, 12], sizes = [2, 8, 4], strides = [1, 1, 1]} : vector<2x8x32xf32> to vector<2x8x4xf32>
    %115 = vector.extract_strided_slice %64 {offsets = [0, 0, 12], sizes = [2, 8, 4], strides = [1, 1, 1]} : vector<2x8x32xf32> to vector<2x8x4xf32>
    "tpu.trace_start"() <{level = 10 : i32, message = "bqd,bkd->bqk"}> : () -> ()
    %cst_63 = arith.constant dense<0.000000e+00> : vector<2x8x8xf32>
    %116 = tpu.matmul %113, %114, %cst_63 {dimension_numbers = #tpu.dot_dimension_numbers<[2], [2], [1], [1], [0, 0, 0, 1, 1, 1], [0], [0]>} : vector<2x8x4xf32>, vector<2x8x4xf32>, vector<2x8x8xf32> -> vector<2x8x8xf32>
    "tpu.trace_stop"() : () -> ()
    %cst_64 = arith.constant 5.000000e-01 : f32
    %117 = vector.broadcast %cst_64 : f32 to vector<2x8x8xf32>
    %118 = arith.mulf %116, %117 : vector<2x8x8xf32>
    %cst_65 = arith.constant dense<0xFF800000> : vector<2x8xf32>
    %119 = vector.multi_reduction <maximumf>, %118, %cst_65 [2] : vector<2x8x8xf32> to vector<2x8xf32>
    %120 = vector.shape_cast %119 : vector<2x8xf32> to vector<2x8x1xf32>
    %121 = vector.broadcast %120 : vector<2x8x1xf32> to vector<2x8x8xf32>
    %122 = arith.subf %118, %121 : vector<2x8x8xf32>
    %123 = math.exp %122 : vector<2x8x8xf32>
    %cst_66 = arith.constant dense<0.000000e+00> : vector<2x8xf32>
    %124 = vector.multi_reduction <add>, %123, %cst_66 [2] : vector<2x8x8xf32> to vector<2x8xf32>
    %125 = vector.shape_cast %124 : vector<2x8xf32> to vector<2x8x1xf32>
    %126 = vector.broadcast %125 : vector<2x8x1xf32> to vector<2x8x8xf32>
    %127 = arith.divf %123, %126 : vector<2x8x8xf32>
    "tpu.trace_start"() <{level = 10 : i32, message = "bqk,bkd->bqd"}> : () -> ()
    %cst_67 = arith.constant dense<0.000000e+00> : vector<2x8x4xf32>
    %128 = tpu.matmul %127, %115, %cst_67 {dimension_numbers = #tpu.dot_dimension_numbers<[2], [1], [1], [2], [0, 0, 0, 1, 1, 2], [0], [0]>} : vector<2x8x8xf32>, vector<2x8x4xf32>, vector<2x8x4xf32> -> vector<2x8x4xf32>
    "tpu.trace_stop"() : () -> ()
    %129 = vector.extract_strided_slice %62 {offsets = [0, 0, 16], sizes = [2, 8, 4], strides = [1, 1, 1]} : vector<2x8x32xf32> to vector<2x8x4xf32>
    %130 = vector.extract_strided_slice %63 {offsets = [0, 0, 16], sizes = [2, 8, 4], strides = [1, 1, 1]} : vector<2x8x32xf32> to vector<2x8x4xf32>
    %131 = vector.extract_strided_slice %64 {offsets = [0, 0, 16], sizes = [2, 8, 4], strides = [1, 1, 1]} : vector<2x8x32xf32> to vector<2x8x4xf32>
    "tpu.trace_start"() <{level = 10 : i32, message = "bqd,bkd->bqk"}> : () -> ()
    %cst_68 = arith.constant dense<0.000000e+00> : vector<2x8x8xf32>
    %132 = tpu.matmul %129, %130, %cst_68 {dimension_numbers = #tpu.dot_dimension_numbers<[2], [2], [1], [1], [0, 0, 0, 1, 1, 1], [0], [0]>} : vector<2x8x4xf32>, vector<2x8x4xf32>, vector<2x8x8xf32> -> vector<2x8x8xf32>
    "tpu.trace_stop"() : () -> ()
    %cst_69 = arith.constant 5.000000e-01 : f32
    %133 = vector.broadcast %cst_69 : f32 to vector<2x8x8xf32>
    %134 = arith.mulf %132, %133 : vector<2x8x8xf32>
    %cst_70 = arith.constant dense<0xFF800000> : vector<2x8xf32>
    %135 = vector.multi_reduction <maximumf>, %134, %cst_70 [2] : vector<2x8x8xf32> to vector<2x8xf32>
    %136 = vector.shape_cast %135 : vector<2x8xf32> to vector<2x8x1xf32>
    %137 = vector.broadcast %136 : vector<2x8x1xf32> to vector<2x8x8xf32>
    %138 = arith.subf %134, %137 : vector<2x8x8xf32>
    %139 = math.exp %138 : vector<2x8x8xf32>
    %cst_71 = arith.constant dense<0.000000e+00> : vector<2x8xf32>
    %140 = vector.multi_reduction <add>, %139, %cst_71 [2] : vector<2x8x8xf32> to vector<2x8xf32>
    %141 = vector.shape_cast %140 : vector<2x8xf32> to vector<2x8x1xf32>
    %142 = vector.broadcast %141 : vector<2x8x1xf32> to vector<2x8x8xf32>
    %143 = arith.divf %139, %142 : vector<2x8x8xf32>
    "tpu.trace_start"() <{level = 10 : i32, message = "bqk,bkd->bqd"}> : () -> ()
    %cst_72 = arith.constant dense<0.000000e+00> : vector<2x8x4xf32>
    %144 = tpu.matmul %143, %131, %cst_72 {dimension_numbers = #tpu.dot_dimension_numbers<[2], [1], [1], [2], [0, 0, 0, 1, 1, 2], [0], [0]>} : vector<2x8x8xf32>, vector<2x8x4xf32>, vector<2x8x4xf32> -> vector<2x8x4xf32>
    "tpu.trace_stop"() : () -> ()
    %145 = vector.extract_strided_slice %62 {offsets = [0, 0, 20], sizes = [2, 8, 4], strides = [1, 1, 1]} : vector<2x8x32xf32> to vector<2x8x4xf32>
    %146 = vector.extract_strided_slice %63 {offsets = [0, 0, 20], sizes = [2, 8, 4], strides = [1, 1, 1]} : vector<2x8x32xf32> to vector<2x8x4xf32>
    %147 = vector.extract_strided_slice %64 {offsets = [0, 0, 20], sizes = [2, 8, 4], strides = [1, 1, 1]} : vector<2x8x32xf32> to vector<2x8x4xf32>
    "tpu.trace_start"() <{level = 10 : i32, message = "bqd,bkd->bqk"}> : () -> ()
    %cst_73 = arith.constant dense<0.000000e+00> : vector<2x8x8xf32>
    %148 = tpu.matmul %145, %146, %cst_73 {dimension_numbers = #tpu.dot_dimension_numbers<[2], [2], [1], [1], [0, 0, 0, 1, 1, 1], [0], [0]>} : vector<2x8x4xf32>, vector<2x8x4xf32>, vector<2x8x8xf32> -> vector<2x8x8xf32>
    "tpu.trace_stop"() : () -> ()
    %cst_74 = arith.constant 5.000000e-01 : f32
    %149 = vector.broadcast %cst_74 : f32 to vector<2x8x8xf32>
    %150 = arith.mulf %148, %149 : vector<2x8x8xf32>
    %cst_75 = arith.constant dense<0xFF800000> : vector<2x8xf32>
    %151 = vector.multi_reduction <maximumf>, %150, %cst_75 [2] : vector<2x8x8xf32> to vector<2x8xf32>
    %152 = vector.shape_cast %151 : vector<2x8xf32> to vector<2x8x1xf32>
    %153 = vector.broadcast %152 : vector<2x8x1xf32> to vector<2x8x8xf32>
    %154 = arith.subf %150, %153 : vector<2x8x8xf32>
    %155 = math.exp %154 : vector<2x8x8xf32>
    %cst_76 = arith.constant dense<0.000000e+00> : vector<2x8xf32>
    %156 = vector.multi_reduction <add>, %155, %cst_76 [2] : vector<2x8x8xf32> to vector<2x8xf32>
    %157 = vector.shape_cast %156 : vector<2x8xf32> to vector<2x8x1xf32>
    %158 = vector.broadcast %157 : vector<2x8x1xf32> to vector<2x8x8xf32>
    %159 = arith.divf %155, %158 : vector<2x8x8xf32>
    "tpu.trace_start"() <{level = 10 : i32, message = "bqk,bkd->bqd"}> : () -> ()
    %cst_77 = arith.constant dense<0.000000e+00> : vector<2x8x4xf32>
    %160 = tpu.matmul %159, %147, %cst_77 {dimension_numbers = #tpu.dot_dimension_numbers<[2], [1], [1], [2], [0, 0, 0, 1, 1, 2], [0], [0]>} : vector<2x8x8xf32>, vector<2x8x4xf32>, vector<2x8x4xf32> -> vector<2x8x4xf32>
    "tpu.trace_stop"() : () -> ()
    %161 = vector.extract_strided_slice %62 {offsets = [0, 0, 24], sizes = [2, 8, 4], strides = [1, 1, 1]} : vector<2x8x32xf32> to vector<2x8x4xf32>
    %162 = vector.extract_strided_slice %63 {offsets = [0, 0, 24], sizes = [2, 8, 4], strides = [1, 1, 1]} : vector<2x8x32xf32> to vector<2x8x4xf32>
    %163 = vector.extract_strided_slice %64 {offsets = [0, 0, 24], sizes = [2, 8, 4], strides = [1, 1, 1]} : vector<2x8x32xf32> to vector<2x8x4xf32>
    "tpu.trace_start"() <{level = 10 : i32, message = "bqd,bkd->bqk"}> : () -> ()
    %cst_78 = arith.constant dense<0.000000e+00> : vector<2x8x8xf32>
    %164 = tpu.matmul %161, %162, %cst_78 {dimension_numbers = #tpu.dot_dimension_numbers<[2], [2], [1], [1], [0, 0, 0, 1, 1, 1], [0], [0]>} : vector<2x8x4xf32>, vector<2x8x4xf32>, vector<2x8x8xf32> -> vector<2x8x8xf32>
    "tpu.trace_stop"() : () -> ()
    %cst_79 = arith.constant 5.000000e-01 : f32
    %165 = vector.broadcast %cst_79 : f32 to vector<2x8x8xf32>
    %166 = arith.mulf %164, %165 : vector<2x8x8xf32>
    %cst_80 = arith.constant dense<0xFF800000> : vector<2x8xf32>
    %167 = vector.multi_reduction <maximumf>, %166, %cst_80 [2] : vector<2x8x8xf32> to vector<2x8xf32>
    %168 = vector.shape_cast %167 : vector<2x8xf32> to vector<2x8x1xf32>
    %169 = vector.broadcast %168 : vector<2x8x1xf32> to vector<2x8x8xf32>
    %170 = arith.subf %166, %169 : vector<2x8x8xf32>
    %171 = math.exp %170 : vector<2x8x8xf32>
    %cst_81 = arith.constant dense<0.000000e+00> : vector<2x8xf32>
    %172 = vector.multi_reduction <add>, %171, %cst_81 [2] : vector<2x8x8xf32> to vector<2x8xf32>
    %173 = vector.shape_cast %172 : vector<2x8xf32> to vector<2x8x1xf32>
    %174 = vector.broadcast %173 : vector<2x8x1xf32> to vector<2x8x8xf32>
    %175 = arith.divf %171, %174 : vector<2x8x8xf32>
    "tpu.trace_start"() <{level = 10 : i32, message = "bqk,bkd->bqd"}> : () -> ()
    %cst_82 = arith.constant dense<0.000000e+00> : vector<2x8x4xf32>
    %176 = tpu.matmul %175, %163, %cst_82 {dimension_numbers = #tpu.dot_dimension_numbers<[2], [1], [1], [2], [0, 0, 0, 1, 1, 2], [0], [0]>} : vector<2x8x8xf32>, vector<2x8x4xf32>, vector<2x8x4xf32> -> vector<2x8x4xf32>
    "tpu.trace_stop"() : () -> ()
    %177 = vector.extract_strided_slice %62 {offsets = [0, 0, 28], sizes = [2, 8, 4], strides = [1, 1, 1]} : vector<2x8x32xf32> to vector<2x8x4xf32>
    %178 = vector.extract_strided_slice %63 {offsets = [0, 0, 28], sizes = [2, 8, 4], strides = [1, 1, 1]} : vector<2x8x32xf32> to vector<2x8x4xf32>
    %179 = vector.extract_strided_slice %64 {offsets = [0, 0, 28], sizes = [2, 8, 4], strides = [1, 1, 1]} : vector<2x8x32xf32> to vector<2x8x4xf32>
    "tpu.trace_start"() <{level = 10 : i32, message = "bqd,bkd->bqk"}> : () -> ()
    %cst_83 = arith.constant dense<0.000000e+00> : vector<2x8x8xf32>
    %180 = tpu.matmul %177, %178, %cst_83 {dimension_numbers = #tpu.dot_dimension_numbers<[2], [2], [1], [1], [0, 0, 0, 1, 1, 1], [0], [0]>} : vector<2x8x4xf32>, vector<2x8x4xf32>, vector<2x8x8xf32> -> vector<2x8x8xf32>
    "tpu.trace_stop"() : () -> ()
    %cst_84 = arith.constant 5.000000e-01 : f32
    %181 = vector.broadcast %cst_84 : f32 to vector<2x8x8xf32>
    %182 = arith.mulf %180, %181 : vector<2x8x8xf32>
    %cst_85 = arith.constant dense<0xFF800000> : vector<2x8xf32>
    %183 = vector.multi_reduction <maximumf>, %182, %cst_85 [2] : vector<2x8x8xf32> to vector<2x8xf32>
    %184 = vector.shape_cast %183 : vector<2x8xf32> to vector<2x8x1xf32>
    %185 = vector.broadcast %184 : vector<2x8x1xf32> to vector<2x8x8xf32>
    %186 = arith.subf %182, %185 : vector<2x8x8xf32>
    %187 = math.exp %186 : vector<2x8x8xf32>
    %cst_86 = arith.constant dense<0.000000e+00> : vector<2x8xf32>
    %188 = vector.multi_reduction <add>, %187, %cst_86 [2] : vector<2x8x8xf32> to vector<2x8xf32>
    %189 = vector.shape_cast %188 : vector<2x8xf32> to vector<2x8x1xf32>
    %190 = vector.broadcast %189 : vector<2x8x1xf32> to vector<2x8x8xf32>
    %191 = arith.divf %187, %190 : vector<2x8x8xf32>
    "tpu.trace_start"() <{level = 10 : i32, message = "bqk,bkd->bqd"}> : () -> ()
    %cst_87 = arith.constant dense<0.000000e+00> : vector<2x8x4xf32>
    %192 = tpu.matmul %191, %179, %cst_87 {dimension_numbers = #tpu.dot_dimension_numbers<[2], [1], [1], [2], [0, 0, 0, 1, 1, 2], [0], [0]>} : vector<2x8x8xf32>, vector<2x8x4xf32>, vector<2x8x4xf32> -> vector<2x8x4xf32>
    "tpu.trace_stop"() : () -> ()
    %193 = tpu.concatenate %80, %96, %112, %128, %144, %160, %176, %192 in 2 : vector<2x8x4xf32>, vector<2x8x4xf32>, vector<2x8x4xf32>, vector<2x8x4xf32>, vector<2x8x4xf32>, vector<2x8x4xf32>, vector<2x8x4xf32>, vector<2x8x4xf32> -> vector<2x8x32xf32>
    %194 = vector.shape_cast %193 : vector<2x8x32xf32> to vector<16x32xf32>
    %cst_88 = arith.constant dense<0.000000e+00> : vector<16x32xf32>
    %195 = tpu.matmul %194, %8, %cst_88 {dimension_numbers = #tpu.dot_dimension_numbers<[1], [0], [0], [1], [0, 0, 1, 1], [], []>} : vector<16x32xf32>, vector<32x32xf32>, vector<16x32xf32> -> vector<16x32xf32>
    %196 = vector.broadcast %9 : vector<1x32xf32> to vector<16x32xf32>
    %197 = arith.addf %195, %196 : vector<16x32xf32>
    %198 = arith.addf %57, %197 : vector<16x32xf32>
    %cst_89 = arith.constant dense<0.000000e+00> : vector<16xf32>
    %199 = vector.multi_reduction <add>, %198, %cst_89 [1] : vector<16x32xf32> to vector<16xf32>
    %200 = vector.shape_cast %199 : vector<16xf32> to vector<16x1xf32>
    %cst_90 = arith.constant 3.200000e+01 : f32
    %201 = vector.broadcast %cst_90 : f32 to vector<16x1xf32>
    %202 = arith.divf %200, %201 : vector<16x1xf32>
    %203 = vector.broadcast %202 : vector<16x1xf32> to vector<16x32xf32>
    %204 = arith.subf %198, %203 : vector<16x32xf32>
    %205 = arith.mulf %204, %204 : vector<16x32xf32>
    %cst_91 = arith.constant dense<0.000000e+00> : vector<16xf32>
    %206 = vector.multi_reduction <add>, %205, %cst_91 [1] : vector<16x32xf32> to vector<16xf32>
    %207 = vector.shape_cast %206 : vector<16xf32> to vector<16x1xf32>
    %cst_92 = arith.constant 3.200000e+01 : f32
    %208 = vector.broadcast %cst_92 : f32 to vector<16x1xf32>
    %209 = arith.divf %207, %208 : vector<16x1xf32>
    %210 = vector.broadcast %202 : vector<16x1xf32> to vector<16x32xf32>
    %211 = arith.subf %198, %210 : vector<16x32xf32>
    %cst_93 = arith.constant 9.99999974E-6 : f32
    %212 = vector.broadcast %cst_93 : f32 to vector<16x1xf32>
    %213 = arith.addf %209, %212 : vector<16x1xf32>
    %214 = math.rsqrt %213 : vector<16x1xf32>
    %215 = vector.broadcast %214 : vector<16x1xf32> to vector<16x32xf32>
    %216 = arith.mulf %211, %215 : vector<16x32xf32>
    %217 = vector.broadcast %10 : vector<1x32xf32> to vector<16x32xf32>
    %218 = arith.mulf %216, %217 : vector<16x32xf32>
    %219 = vector.broadcast %11 : vector<1x32xf32> to vector<16x32xf32>
    %220 = arith.addf %218, %219 : vector<16x32xf32>
    %cst_94 = arith.constant dense<0.000000e+00> : vector<16x2048xf32>
    %221 = tpu.matmul %220, %12, %cst_94 {dimension_numbers = #tpu.dot_dimension_numbers<[1], [0], [0], [1], [0, 0, 1, 1], [], []>} : vector<16x32xf32>, vector<32x2048xf32>, vector<16x2048xf32> -> vector<16x2048xf32>
    %222 = vector.broadcast %13 : vector<1x2048xf32> to vector<16x2048xf32>
    %223 = arith.addf %221, %222 : vector<16x2048xf32>
    %cst_95 = arith.constant 0.000000e+00 : f32
    %224 = vector.broadcast %cst_95 : f32 to vector<16x2048xf32>
    %225 = arith.maximumf %223, %224 : vector<16x2048xf32>
    %cst_96 = arith.constant dense<0.000000e+00> : vector<16x32xf32>
    %226 = tpu.matmul %225, %14, %cst_96 {dimension_numbers = #tpu.dot_dimension_numbers<[1], [0], [0], [1], [0, 0, 1, 1], [], []>} : vector<16x2048xf32>, vector<2048x32xf32>, vector<16x32xf32> -> vector<16x32xf32>
    %227 = vector.broadcast %15 : vector<1x32xf32> to vector<16x32xf32>
    %228 = arith.addf %226, %227 : vector<16x32xf32>
    %229 = arith.addf %220, %228 : vector<16x32xf32>
    %cst_97 = arith.constant dense<0.000000e+00> : vector<16xf32>
    %230 = vector.multi_reduction <add>, %229, %cst_97 [1] : vector<16x32xf32> to vector<16xf32>
    %231 = vector.shape_cast %230 : vector<16xf32> to vector<16x1xf32>
    %cst_98 = arith.constant 3.200000e+01 : f32
    %232 = vector.broadcast %cst_98 : f32 to vector<16x1xf32>
    %233 = arith.divf %231, %232 : vector<16x1xf32>
    %234 = vector.broadcast %233 : vector<16x1xf32> to vector<16x32xf32>
    %235 = arith.subf %229, %234 : vector<16x32xf32>
    %236 = arith.mulf %235, %235 : vector<16x32xf32>
    %cst_99 = arith.constant dense<0.000000e+00> : vector<16xf32>
    %237 = vector.multi_reduction <add>, %236, %cst_99 [1] : vector<16x32xf32> to vector<16xf32>
    %238 = vector.shape_cast %237 : vector<16xf32> to vector<16x1xf32>
    %cst_100 = arith.constant 3.200000e+01 : f32
    %239 = vector.broadcast %cst_100 : f32 to vector<16x1xf32>
    %240 = arith.divf %238, %239 : vector<16x1xf32>
    %241 = vector.broadcast %233 : vector<16x1xf32> to vector<16x32xf32>
    %242 = arith.subf %229, %241 : vector<16x32xf32>
    %cst_101 = arith.constant 9.99999974E-6 : f32
    %243 = vector.broadcast %cst_101 : f32 to vector<16x1xf32>
    %244 = arith.addf %240, %243 : vector<16x1xf32>
    %245 = math.rsqrt %244 : vector<16x1xf32>
    %246 = vector.broadcast %245 : vector<16x1xf32> to vector<16x32xf32>
    %247 = arith.mulf %242, %246 : vector<16x32xf32>
    %248 = vector.broadcast %16 : vector<1x32xf32> to vector<16x32xf32>
    %249 = arith.mulf %247, %248 : vector<16x32xf32>
    %250 = vector.broadcast %17 : vector<1x32xf32> to vector<16x32xf32>
    %251 = arith.addf %249, %250 : vector<16x32xf32>
    %cst_102 = arith.constant 0.000000e+00 : f32
    %252 = vector.broadcast %cst_102 : f32 to vector<16x32xf32>
    %253 = arith.cmpf ogt, %251, %252 : vector<16x32xf32>
    %cst_103 = arith.constant 0.00999999977 : f32
    %254 = vector.broadcast %cst_103 : f32 to vector<16x32xf32>
    %255 = arith.mulf %254, %251 : vector<16x32xf32>
    %256 = arith.select %253, %251, %255 : vector<16x32xi1>, vector<16x32xf32>
    %cst_104 = arith.constant dense<0.000000e+00> : vector<16xf32>
    %257 = vector.multi_reduction <add>, %256, %cst_104 [1] : vector<16x32xf32> to vector<16xf32>
    %258 = vector.shape_cast %257 : vector<16xf32> to vector<16x1xf32>
    %cst_105 = arith.constant 3.200000e+01 : f32
    %259 = vector.broadcast %cst_105 : f32 to vector<16x1xf32>
    %260 = arith.divf %258, %259 : vector<16x1xf32>
    %261 = vector.broadcast %260 : vector<16x1xf32> to vector<16x32xf32>
    %262 = arith.subf %256, %261 : vector<16x32xf32>
    %263 = arith.mulf %262, %262 : vector<16x32xf32>
    %cst_106 = arith.constant dense<0.000000e+00> : vector<16xf32>
    %264 = vector.multi_reduction <add>, %263, %cst_106 [1] : vector<16x32xf32> to vector<16xf32>
    %265 = vector.shape_cast %264 : vector<16xf32> to vector<16x1xf32>
    %cst_107 = arith.constant 3.200000e+01 : f32
    %266 = vector.broadcast %cst_107 : f32 to vector<16x1xf32>
    %267 = arith.divf %265, %266 : vector<16x1xf32>
    %268 = vector.broadcast %260 : vector<16x1xf32> to vector<16x32xf32>
    %269 = arith.subf %256, %268 : vector<16x32xf32>
    %cst_108 = arith.constant 9.99999996E-13 : f32
    %270 = vector.broadcast %cst_108 : f32 to vector<16x1xf32>
    %271 = arith.addf %267, %270 : vector<16x1xf32>
    %272 = math.rsqrt %271 : vector<16x1xf32>
    %273 = vector.broadcast %272 : vector<16x1xf32> to vector<16x32xf32>
    %274 = arith.mulf %269, %273 : vector<16x32xf32>
    %275 = vector.broadcast %18 : vector<1x32xf32> to vector<16x32xf32>
    %276 = arith.mulf %274, %275 : vector<16x32xf32>
    %277 = vector.broadcast %19 : vector<1x32xf32> to vector<16x32xf32>
    %278 = arith.addf %276, %277 : vector<16x32xf32>
    %279 = vector.shape_cast %278 : vector<16x32xf32> to vector<2x8x32xf32>
    %280 = vector.shape_cast %20 : vector<1x32xf32> to vector<1x1x32xf32>
    %281 = vector.broadcast %280 : vector<1x1x32xf32> to vector<2x8x32xf32>
    %282 = arith.mulf %279, %281 : vector<2x8x32xf32>
    %cst_109 = arith.constant dense<0.000000e+00> : vector<2x8xf32>
    %283 = vector.multi_reduction <add>, %282, %cst_109 [2] : vector<2x8x32xf32> to vector<2x8xf32>
    %284 = vector.broadcast %21 : vector<1x1xf32> to vector<2x8xf32>
    %285 = arith.addf %283, %284 : vector<2x8xf32>
    %cst_110 = arith.constant 1.000000e+00 : f32
    %286 = vector.broadcast %cst_110 : f32 to vector<2x8xf32>
    %287 = arith.subf %286, %3 : vector<2x8xf32>
    %288 = arith.mulf %285, %287 : vector<2x8xf32>
    %cst_111 = arith.constant 1.000000e+30 : f32
    %289 = vector.broadcast %cst_111 : f32 to vector<2x8xf32>
    %290 = arith.mulf %289, %3 : vector<2x8xf32>
    %291 = arith.subf %288, %290 : vector<2x8xf32>
    %c0_112 = arith.constant 0 : index
    %c0_113 = arith.constant 0 : index
    %292 = vector.load %arg21[%c0_112, %c0_113] : memref<2x8xf32, #tpu.memory_space<vmem>>, vector<2x8xf32>
    tpu.vector_store %arg21[%c0_112, %c0_113], %291 {strides = array<i32>} : memref<2x8xf32, #tpu.memory_space<vmem>>, vector<2x8xf32>,
    return
  }
}

</mosaic_0001>

<bundles_post_ra>
// kernel: tpu_custom_call.1
= control target key start
LH: loop header
LB: loop body
LE: loop exit
PB: predicated region body
PF: predicated region fallthrough
CT: control target
= control target key end

     0   :  { %s7959_s0 = inlined_call_operand.vmem [shape: s32[2], index: 0, kind: input, shape index: {}]   ;;  %s7960_s1 = inlined_call_operand.vmem [shape: f32[2,8,32], index: 1, kind: input, shape index: {}]   ;;  %s7961_s2 = inlined_call_operand.vmem [shape: f32[2,8], index: 2, kind: input, shape index: {}]   ;;  %s7962_s3 = inlined_call_operand.vmem [shape: f32[64,32], index: 3, kind: input, shape index: {}]   ;;  %s7963_s4 = inlined_call_operand.vmem [shape: f32[1,32], index: 4, kind: input, shape index: {}]   ;;  %s7964_s5 = inlined_call_operand.vmem [shape: f32[32,96], index: 5, kind: input, shape index: {}]   ;;  %s7965_s6 = inlined_call_operand.vmem [shape: f32[1,96], index: 6, kind: input, shape index: {}]   ;;  %s7966_s7 = inlined_call_operand.vmem [shape: f32[32,32], index: 7, kind: input, shape index: {}]   ;;  %s7967_s8 = inlined_call_operand.vmem [shape: f32[1,32], index: 8, kind: input, shape index: {}]   ;;  %s7968_s9 = inlined_call_operand.vmem [shape: f32[1,32], index: 9, kind: input, shape index: {}]   ;;  %s7969_s10 = inlined_call_operand.vmem [shape: f32[1,32], index: 10, kind: input, shape index: {}]   ;;  %s7970_s11 = inlined_call_operand.vmem [shape: f32[32,2048], index: 11, kind: input, shape index: {}]   ;;  %s7971_s12 = inlined_call_operand.vmem [shape: f32[1,2048], index: 12, kind: input, shape index: {}]   ;;  %s7972_s13 = inlined_call_operand.vmem [shape: f32[2048,32], index: 13, kind: input, shape index: {}]   ;;  %s7973_s14 = inlined_call_operand.vmem [shape: f32[1,32], index: 14, kind: input, shape index: {}]   ;;  %s7974_s15 = inlined_call_operand.vmem [shape: f32[1,32], index: 15, kind: input, shape index: {}]   ;;  %s7975_s16 = inlined_call_operand.vmem [shape: f32[1,32], index: 16, kind: input, shape index: {}]   ;;  %s7976_s17 = inlined_call_operand.vmem [shape: f32[1,32], index: 17, kind: input, shape index: {}]   ;;  %s7977_s18 = inlined_call_operand.vmem [shape: f32[1,32], index: 18, kind: input, shape index: {}]   ;;  %s7978_s19 = inlined_call_operand.vmem [shape: f32[1,32], index: 19, kind: input, shape index: {}]   ;;  %s7979_s20 = inlined_call_operand.<no memory space> [shape: f32[1,1], index: 20, kind: input, shape index: {}]   ;;  %s7980_s21 = inlined_call_operand.hbm [shape: f32[2,8], index: 21, kind: output, shape index: {}]  }
   0x1   :  { %7984 = sst [smem:[#allocation9_spill]] %s7959_s0  ;;  %v26_v0 = vstv %s7979_s20 }
   0x2   :  { %7985 = sst [smem:[#allocation10_spill]] %s7960_s1  ;;  %27 = vst [vmem:[#allocation2] sm:$0x1] %v26_v0 }
   0x3   :  { %7986 = sst [smem:[#allocation11_spill]] %s7961_s2 }
   0x4   :  { %7987 = sst [smem:[#allocation12_spill]] %s7962_s3 }
   0x5   :  { %7988 = sst [smem:[#allocation13_spill]] %s7963_s4 }
   0x6   :  { %7989 = sst [smem:[#allocation14_spill]] %s7964_s5 }
   0x7   :  { %28 = vsyncpa [#allocation5], 0 }
   0x8   :  { %29 = vsyncpa [#allocation4], 0  ;;  %s7990_s3 = sld [smem:[#allocation9_spill]] }
   0xe   :  { %s36_s28 = sshll.u32 %s7990_s3, 4  ;;  %s37_s28 = int_to_ptr.vmem [resolvable:$true] %s36_s28 }
   0xf   :  { %s6191_s29 = scalar_lea.vmem %s37_s28, 16  ;;  %p6196_p1 = scmp.lt.s32.totalorder %s37_s28, %s37_s28 }
  0x10   :  { %p6192_p0 = scmp.ne.s32.totalorder %s37_s28, %s6191_s29  ;;  %p6197_p2 = scmp.lt.s32.totalorder %s6191_s29, %s6191_s29 }
  0x12   :  { %p6198_p3 = por %p6197_p2, %p6196_p1 }
  0x14   :  { %p6199_p4 = pnand %p6198_p3, %p6192_p0 }
  0x16   :  { %6202 = shalt.err (!%p6199_p4)
}
  0x17   :  { %s6229_s0 = smov [#allocation3]  }
  0x18   :  { %39 = dma.vmem_to_smem %s37_s28, 16, %s6229_s0, [#allocation5]  }
  0x19   :  { %6225 = dma.done.wait [#allocation5], 16  }
  0x1a   :  { %6226 = vsyncadd [#allocation5], 4294967280 }
  0x1b   :  { %83 = sfence }
  0x1c   :  { %s84_s20 = sld [smem:[#allocation3]]  ;;  %s5051_s4 = sld [smem:[#allocation3 + $0x1]]  ;;  %v441_v6 = vlaneseq  ;;  %vm446_vm0 = vcmask 261120   ;;  %vm482_vm3 = vcmask 523264   ;;  %v6231_v50 = vmov 0.0  }
  0x1d   :  { %s7991_s22 = sld [smem:[#allocation12_spill]]  ;;  %s7992_s5 = sld [smem:[#allocation10_spill]]  ;;  %vm6232_vm4 = vmmov 0   ;;  %v5055_v51 = vld [vmem:[%s7965_s6] ss:$0 sm:$0xff]  ;;  %vm654_vm5 = vcmask 31744  }
  0x1e   :  { %v6400_v11 = vshrl.u32 %v441_v6, 7  ;;  %s6230_s28 = smov 32   ;;  %s7994_s24 = sld [smem:[#allocation13_spill]]  ;;  %vm808_vm6 = vcmask 64512   ;;  %vm3367_vm7 = vcmask 97280   ;;  %vm3370_vm8 = vcmask 130048  }
  0x1f   :  { %s6233_s26 = smov 96   ;;  %s6234_s6 = smov 64   ;;  %vm3373_vm9 = vcmask 162816   ;;  %vm3379_vm10 = vcmask 228352   ;;  %vm3376_vm11 = vcmask 195584   ;;  %vm5031_vm14 = vcmask 1041409  }
  0x20   :  { %s6238_s27 = smov 88   ;;  %s6239_s3 = smov 120   ;;  %vm5034_vm15 = vcmask 58368  }
  0x21   :  { %s6241_s29 = smov 84   ;;  %s6242_s0 = smov 116  }
  0x22   :  { %p439_p5 = scmp.eq.s32.totalorder %s84_s20, 4294967196  ;;  %p459_p6 = scmp.eq.s32.totalorder %s5051_s4, 4294967196 }
  0x23   :  { %v89_v1 = vld [vmem:[%s7991_s22] sm:$0xff]  ;;  %v90_v2 = vld [vmem:[%s7991_s22 + $0x8] sm:$0xff]  ;;  %v91_v3 = vld [vmem:[%s7991_s22 + $0x10] sm:$0xff]  ;;  %s6243_s30 = smov 52   ;;  %s6245_s23 = smov 112  }
  0x24   :  { %v5725_v4 = vpack.c.bf16 %v90_v2, %v89_v1  ;;  %v92_v5 = vld [vmem:[%s7991_s22 + $0x18] sm:$0xff]  ;;  %v93_v8 = vld [vmem:[%s7991_s22 + $0x20] sm:$0xff]  ;;  %v94_v9 = vld [vmem:[%s7991_s22 + $0x28] sm:$0xff]  ;;  %s7997_s20 = smov (%p439_p5, %s84_s20), 0  ;;  %s7999_s4 = smov (%p459_p6, %s5051_s4), 0 }
  0x25   :  { %v5729_v7 = vpack.c.bf16 %v92_v5, %v91_v3  ;;  %v5733_v10 = vpack.c.bf16 %v94_v9, %v93_v8  ;;  %v86_v12 = vld [vmem:[%s7992_s5] sm:$0xff]  ;;  %v443_v13 = vstv %s7997_s20  ;;  %v87_v14 = vld [vmem:[%s7992_s5 + $0x8] sm:$0xff]  ;;  %v461_v15 = vstv %s7999_s4  ;;  %s6235_s20 = smov 92   ;;  %s6236_s4 = smov 124  }
  0x26   :  { %5726 = vmatprep.subr.bf16.mxu0 %v5725_v4  ;;  %vm444_vm1 = vcmp.eq.s32.totalorder %v6400_v11, %v443_v13  ;;  %v95_v16 = vld [vmem:[%s7991_s22 + $0x30] sm:$0xff]  ;;  %v96_v17 = vld [vmem:[%s7991_s22 + $0x38] sm:$0xff]  ;;  %vm462_vm2 = vcmp.eq.s32.totalorder %v6400_v11, %v461_v15  ;;  %s7993_s22 = sld [smem:[#allocation14_spill]]  ;;  %v5052_v45 = vld [vmem:[%s7994_s24] ss:$0 sm:$0xff]  ;;  %s6244_s5 = smov 80  }
  0x27   :  { %5728 = vmatpush3.bf16.msra.mxu0 %v5725_v4  ;;  %v445_v18 = vsel %vm444_vm1, %v86_v12, 0.0  ;;  %v5737_v19 = vpack.c.bf16 %v96_v17, %v95_v16  ;;  %v463_v21 = vsel %vm462_vm2, %v87_v14, 0.0  ;;  %s6246_s1 = smov 48   ;;  %s6247_s24 = smov 76  }
  0x28   :  { %5730 = vmatprep.subr.bf16.mxu0 %v5729_v7  ;;  %v447_v20 = vsel %vm446_vm0, %v445_v18, 0.0  ;;  %v464_v23 = vsel %vm446_vm0, %v463_v21, 0.0  ;;  %s6248_s2 = smov 108   ;;  %s6249_s25 = smov 44  }
  0x29   :  { %v448_v22 = vrot.slane %v447_v20, 4  ;;  %v465_v24 = vrot.slane %v464_v23, 4 }
  0x2b   :  { %5732 = vmatpush3.bf16.msra.mxu0 %v5729_v7  ;;  %v449_v25 = vadd.f32 %v448_v22, %v447_v20  ;;  %v466_v26 = vadd.f32 %v465_v24, %v464_v23 }
  0x2c   :  { %5734 = vmatprep.subr.bf16.mxu0 %v5733_v10  ;;  %v98_v28 = vld [vmem:[%s7993_s22] sm:$0xff]  ;;  %v99_v29 = vld [vmem:[%s7993_s22 + $0x8] sm:$0xff]  ;;  %v100_v42 = vld [vmem:[%s7993_s22 + $0x10] sm:$0xff] }
  0x2d   :  { %v450_v27 = vrot.slane %v449_v25, 2  ;;  %v467_v30 = vrot.slane %v466_v26, 2  ;;  %v5741_v31 = vpack.c.bf16 %v99_v29, %v98_v28  ;;  %v101_v43 = vld [vmem:[%s7993_s22 + $0x18] sm:$0xff]  ;;  %s6237_s22 = smov 60  }
  0x2e   :  { %v5745_v44 = vpack.c.bf16 %v101_v43, %v100_v42 }
  0x2f   :  { %5736 = vmatpush3.bf16.msra.mxu0 %v5733_v10  ;;  %v451_v32 = vadd.f32 %v450_v27, %v449_v25  ;;  %v468_v33 = vadd.f32 %v467_v30, %v466_v26  ;;  %5742 = vmatprep.subr.bf16.mxu1 %v5741_v31 }
  0x30   :  { %5738 = vmatprep.subr.bf16.mxu0 %v5737_v19  ;;  %5744 = vmatpush3.bf16.msra.mxu1 %v5741_v31 }
  0x31   :  { %v452_v34 = vrot.slane %v451_v32, 1  ;;  %v469_v35 = vrot.slane %v468_v33, 1  ;;  %5746 = vmatprep.subr.bf16.mxu1 %v5745_v44 }
  0x33   :  { %5740 = vmatpush3.bf16.msra.mxu0 %v5737_v19  ;;  %v453_v36 = vadd.f32 %v452_v34, %v451_v32  ;;  %v470_v37 = vadd.f32 %v469_v35, %v468_v33 }
  0x34   :  { %5748 = vmatpush3.bf16.msra.mxu1 %v5745_v44  ;;  %5574 = vmatprep.subr.mxu0 %v6231_v50 }
  0x35   :  { %455 = vrot.lane.b32.xlu0 %v453_v36, %s6230_s28  ;;  %5554 = vmatprep.subr.mxu1 %v6231_v50 }
  0x39   :  { %472 = vrot.lane.b32.xlu0 %v470_v37, %s6230_s28  ;;  %s6240_s28 = smov 56  }
  0xa7   :  { %v456_v38 = vpop.permute.xlu0 %455 }
  0xa8   :  { %v458_v39 = vsel %vm446_vm0, %v86_v12, %v456_v38 }
  0xa9   :  { %5540 = vmatprep.mubr.msk.f32.mxu0 %vm482_vm3, %v458_v39 }
  0xab   :  { %v473_v40 = vpop.permute.xlu0 %472 }
  0xac   :  { %v475_v41 = vsel %vm446_vm0, %v87_v14, %v473_v40 }
  0xad   :  { %5541 = vmatmul.mubr.msk.f32.vlgmr.msra.gmra.mrb[0].mxu0 %vm482_vm3, %v475_v41 }
  0xae   :  { %5576 = vmatprep.mubr.msk.f32.mxu0 %vm6232_vm4, %v6231_v50 }
 0x180   :  { %v5542_v46 = vpop.f32.mrb[0].mxu0 }
 0x181   :  { %v555_v47 = vpop.f32.mrb[1].mxu0  ;;  %v6437_v49 = vadd.f32 %v5542_v46, %v5052_v45 }
 0x182   :  { %v6435_v48 = vadd.f32 %v5052_v45, %v555_v47 }
 0x184   :  { %5551 = vmatprep.mubr.msk.f32.mxu1 %vm446_vm0, %v6435_v48 }
 0x185   :  { %5552 = vmatmul.mubr.msk.f32.vlgmr.msra.gmra.mrb[0].mxu1 %vm446_vm0, %v6437_v49 }
 0x186   :  { %5556 = vmatprep.mubr.msk.f32.mxu1 %vm6232_vm4, %v6231_v50 }
 0x258   :  { %v5553_v52 = vpop.f32.mrb[0].mxu1 }
 0x259   :  { %v642_v53 = vpop.f32.mrb[1].mxu1  ;;  %v6455_v55 = vadd.f32 %v5553_v52, %v5055_v51 }
 0x25a   :  { %v6452_v54 = vadd.f32 %v5055_v51, %v642_v53 }
 0x25c   :  { %652 = vrot.lane.b32.xlu1 %v6452_v54, %s6233_s26 }
 0x260   :  { %730 = vrot.lane.b32.xlu1 %v6455_v55, %s6233_s26  ;;  %s6250_s26 = smov 72  }
 0x2ce   :  { %v653_v56 = vpop.permute.xlu1 %652 }
 0x2cf   :  { %5555 = vmatpush3.xpose.msk.msra.mxu1 %vm654_vm5, %v653_v56 }
 0x2d0   :  { %5559 = vmatprep.subr.mxu1 %v6231_v50 }
 0x2d2   :  { %5557 = vmatmul.mubr.msk.f32.vlgmr.msra.gmra.mrb[2].mxu1 %vm654_vm5, %v6452_v54  ;;  %v731_v57 = vpop.permute.xlu1 %730 }
 0x2d3   :  { %5560 = vmatpush3.xpose.msk.msra.mxu1 %vm654_vm5, %v731_v57  ;;  %5561 = vmatprep.mubr.msk.f32.mxu1 %vm6232_vm4, %v6231_v50 }
 0x2d4   :  { %5564 = vmatprep.subr.mxu1 %v6231_v50 }
 0x2d6   :  { %5562 = vmatmul.mubr.msk.f32.vlgmr.msra.gmra.mrb[4].mxu1 %vm654_vm5, %v6455_v55 }
 0x2d7   :  { %5566 = vmatprep.mubr.msk.f32.mxu1 %vm6232_vm4, %v6231_v50 }
 0x3a5   :  { %v725_v58 = vpop.f32.mrb[2].mxu1 }
 0x3a6   :  { %v806_v59 = vmul.f32 0.5, %v725_v58  ;;  %v5558_v60 = vpop.f32.mrb[3].mxu1 }
 0x3a8   :  { %v809_v61 = vsel %vm808_vm6, %v806_v59, -inf }
 0x3a9   :  { %810 = vmax.xlane.f32.xlu0 %v809_v61  ;;  %v802_v62 = vpop.f32.mrb[4].mxu1 }
 0x3aa   :  { %v807_v63 = vmul.f32 0.5, %v802_v62  ;;  %v5563_v0 = vpop.f32.mrb[5].mxu1 }
 0x3ac   :  { %v812_v1 = vsel %vm808_vm6, %v807_v63, -inf }
 0x3ad   :  { %813 = vmax.xlane.f32.xlu1 %v812_v1 }
 0x3be   :  { %831 = vrot.lane.b32.xlu1 %v6452_v54, %s6234_s6 }
 0x3c2   :  { %985 = vrot.lane.b32.xlu1 %v6452_v54, %s6235_s20 }
 0x3c6   :  { %1063 = vrot.lane.b32.xlu1 %v6455_v55, %s6235_s20  ;;  %s6252_s20 = smov 40  }
 0x3ca   :  { %1061 = vrot.lane.b32.xlu1 %v6455_v55, %s6236_s4 }
 0x436   :  { %v811_v2 = vpop.xlane.xlu0 %810 }
 0x437   :  { %v815_v3 = vsub.f32 %v806_v59, %v811_v2 }
 0x439   :  { %v817_v4 = vmul.f32 1.442695, %v815_v3 }
 0x43a   :  { %v814_v5 = vpop.xlane.xlu1 %813 }
 0x43b   :  { %6115 = vpow2.f32 %v817_v4  ;;  %v816_v12 = vsub.f32 %v807_v63, %v814_v5 }
 0x43d   :  { %v819_v13 = vmul.f32 1.442695, %v816_v12 }
 0x43e   :  { %v832_v7 = vpop.permute.xlu1 %831 }
 0x43f   :  { %5565 = vmatpush3.msra.mxu1 %v832_v7  ;;  %6117 = vpow2.f32 %v819_v13 }
 0x440   :  { %5569 = vmatprep.subr.mxu1 %v6231_v50 }
 0x442   :  { %v986_v8 = vpop.permute.xlu1 %985 }
 0x443   :  { %5575 = vmatpush3.xpose.msk.msra.mxu0 %vm654_vm5, %v986_v8 }
 0x444   :  { %5584 = vmatprep.subr.mxu0 %v6231_v50 }
 0x445   :  { %v6116_v9 = vpop.eup %6115 }
 0x446   :  { %v821_v10 = vsel %vm808_vm6, %v6116_v9, 0.0  ;;  %v1064_v23 = vpop.permute.xlu1 %1063 }
 0x447   :  { %822 = vadd.xlane.f32.xlu0 %v821_v10 }
 0x449   :  { %v6118_v14 = vpop.eup %6117 }
 0x44a   :  { %v824_v15 = vsel %vm808_vm6, %v6118_v14, 0.0  ;;  %v1062_v25 = vpop.permute.xlu1 %1061 }
 0x45d   :  { %907 = vrot.lane.b32.xlu0 %v6455_v55, %s6234_s6  ;;  %s6251_s6 = smov 104  }
 0x47c   :  { %825 = vadd.xlane.f32.xlu0 %v824_v15 }
 0x492   :  { %983 = vrot.lane.b32.xlu0 %v6452_v54, %s6236_s4  ;;  %s6253_s4 = smov 68  }
 0x4d4   :  { %v823_v16 = vpop.xlane.xlu0 %822 }
 0x4d5   :  { %6119 = vrcp.f32 %v823_v16 }
 0x4d8   :  { %v908_v19 = vpop.permute.xlu0 %907 }
 0x4df   :  { %v6120_v17 = vpop.eup %6119 }
 0x4e0   :  { %v828_v18 = vmul.f32 %v6120_v17, %v6116_v9 }
 0x4e2   :  { %5567 = vmatmul.mubr.msk.f32.vlgmr.msra.gmra.mrb[6].mxu1 %vm808_vm6, %v828_v18 }
 0x4e3   :  { %5570 = vmatpush3.msra.mxu1 %v908_v19  ;;  %5571 = vmatprep.mubr.msk.f32.mxu1 %vm6232_vm4, %v6231_v50 }
 0x4e4   :  { %5579 = vmatprep.subr.mxu1 %v6231_v50 }
 0x509   :  { %v826_v20 = vpop.xlane.xlu0 %825 }
 0x50a   :  { %6121 = vrcp.f32 %v826_v20 }
 0x50d   :  { %v984_v21 = vpop.permute.xlu0 %983 }
 0x50e   :  { %5577 = vmatmul.mubr.msk.f32.vlgmr.msra.gmra.mrb[2].mxu0 %vm654_vm5, %v984_v21 }
 0x50f   :  { %5586 = vmatprep.mubr.msk.f32.mxu0 %vm6232_vm4, %v6231_v50 }
 0x514   :  { %v6122_v22 = vpop.eup %6121 }
 0x515   :  { %v830_v24 = vmul.f32 %v6122_v22, %v6118_v14 }
 0x517   :  { %5572 = vmatmul.mubr.msk.f32.vlgmr.msra.gmra.mrb[8].mxu1 %vm808_vm6, %v830_v24 }
 0x518   :  { %5580 = vmatpush3.xpose.msk.msra.mxu1 %vm654_vm5, %v1064_v23  ;;  %5581 = vmatprep.mubr.msk.f32.mxu1 %vm6232_vm4, %v6231_v50 }
 0x519   :  { %5589 = vmatprep.subr.mxu1 %v6231_v50 }
 0x51b   :  { %5582 = vmatmul.mubr.msk.f32.vlgmr.msra.gmra.mrb[10].mxu1 %vm654_vm5, %v1062_v25 }
 0x51c   :  { %5591 = vmatprep.mubr.msk.f32.mxu1 %vm6232_vm4, %v6231_v50 }
 0x5b5   :  { %v6498_v26 = vpop.f32.mrb[6].mxu1 }
 0x5b6   :  { %v5568_v27 = vpop.f32.mrb[7].mxu1 }
 0x5e1   :  { %v1057_v28 = vpop.f32.mrb[2].mxu0 }
 0x5e2   :  { %v1139_v29 = vmul.f32 0.5, %v1057_v28  ;;  %v5578_v30 = vpop.f32.mrb[3].mxu0 }
 0x5e4   :  { %v1141_v31 = vsel %vm808_vm6, %v1139_v29, -inf }
 0x5e5   :  { %1142 = vmax.xlane.f32.xlu0 %v1141_v31 }
 0x5ea   :  { %v6501_v32 = vpop.f32.mrb[8].mxu1 }
 0x5eb   :  { %v5573_v33 = vpop.f32.mrb[9].mxu1 }
 0x5ee   :  { %v1135_v34 = vpop.f32.mrb[10].mxu1 }
 0x5ef   :  { %v1140_v35 = vmul.f32 0.5, %v1135_v34  ;;  %v5583_v36 = vpop.f32.mrb[11].mxu1 }
 0x5f1   :  { %v1144_v37 = vsel %vm808_vm6, %v1140_v35, -inf }
 0x5f2   :  { %1145 = vmax.xlane.f32.xlu1 %v1144_v37 }
 0x603   :  { %1163 = vrot.lane.b32.xlu1 %v6452_v54, %s6237_s22 }
 0x607   :  { %1317 = vrot.lane.b32.xlu1 %v6452_v54, %s6238_s27 }
 0x60b   :  { %1395 = vrot.lane.b32.xlu1 %v6455_v55, %s6238_s27  ;;  %s6255_s27 = smov 36  }
 0x60f   :  { %1393 = vrot.lane.b32.xlu1 %v6455_v55, %s6239_s3 }
 0x672   :  { %v1143_v38 = vpop.xlane.xlu0 %1142 }
 0x673   :  { %v1147_v39 = vsub.f32 %v1139_v29, %v1143_v38 }
 0x675   :  { %v1149_v40 = vmul.f32 1.442695, %v1147_v39 }
 0x677   :  { %6123 = vpow2.f32 %v1149_v40 }
 0x67f   :  { %v1146_v41 = vpop.xlane.xlu1 %1145 }
 0x680   :  { %v1148_v45 = vsub.f32 %v1140_v35, %v1146_v41 }
 0x681   :  { %v6124_v42 = vpop.eup %6123 }
 0x682   :  { %v1153_v43 = vsel %vm808_vm6, %v6124_v42, 0.0  ;;  %v1151_v46 = vmul.f32 1.442695, %v1148_v45 }
 0x683   :  { %1154 = vadd.xlane.f32.xlu0 %v1153_v43  ;;  %v1164_v44 = vpop.permute.xlu1 %1163 }
 0x684   :  { %5585 = vmatpush3.msra.mxu0 %v1164_v44  ;;  %6125 = vpow2.f32 %v1151_v46 }
 0x685   :  { %5594 = vmatprep.subr.mxu0 %v6231_v50 }
 0x687   :  { %v1318_v58 = vpop.permute.xlu1 %1317 }
 0x68b   :  { %v1396_v62 = vpop.permute.xlu1 %1395 }
 0x68e   :  { %v6126_v47 = vpop.eup %6125 }
 0x68f   :  { %v1156_v51 = vsel %vm808_vm6, %v6126_v47, 0.0  ;;  %v1394_v0 = vpop.permute.xlu1 %1393 }
 0x699   :  { %1239 = vrot.lane.b32.xlu0 %v6455_v55, %s6237_s22  ;;  %s6254_s22 = smov 100  }
 0x6b8   :  { %1157 = vadd.xlane.f32.xlu0 %v1156_v51 }
 0x6ce   :  { %1315 = vrot.lane.b32.xlu0 %v6452_v54, %s6239_s3  ;;  %s6256_s3 = smov 4  }
 0x710   :  { %v1155_v52 = vpop.xlane.xlu0 %1154 }
 0x711   :  { %6127 = vrcp.f32 %v1155_v52 }
 0x714   :  { %v1240_v53 = vpop.permute.xlu0 %1239 }
 0x715   :  { %5590 = vmatpush3.msra.mxu1 %v1240_v53 }
 0x716   :  { %5599 = vmatprep.subr.mxu1 %v6231_v50 }
 0x71b   :  { %v6128_v56 = vpop.eup %6127 }
 0x71c   :  { %v1160_v57 = vmul.f32 %v6128_v56, %v6124_v42 }
 0x71e   :  { %5587 = vmatmul.mubr.msk.f32.vlgmr.msra.gmra.mrb[4].mxu0 %vm808_vm6, %v1160_v57 }
 0x71f   :  { %5595 = vmatpush3.xpose.msk.msra.mxu0 %vm654_vm5, %v1318_v58  ;;  %5596 = vmatprep.mubr.msk.f32.mxu0 %vm6232_vm4, %v6231_v50 }
 0x720   :  { %5604 = vmatprep.subr.mxu0 %v6231_v50 }
 0x745   :  { %v1158_v59 = vpop.xlane.xlu0 %1157 }
 0x746   :  { %6129 = vrcp.f32 %v1158_v59 }
 0x749   :  { %v1316_v60 = vpop.permute.xlu0 %1315 }
 0x74a   :  { %5597 = vmatmul.mubr.msk.f32.vlgmr.msra.gmra.mrb[6].mxu0 %vm654_vm5, %v1316_v60 }
 0x74b   :  { %5606 = vmatprep.mubr.msk.f32.mxu0 %vm6232_vm4, %v6231_v50 }
 0x750   :  { %v6130_v61 = vpop.eup %6129 }
 0x751   :  { %v1162_v63 = vmul.f32 %v6130_v61, %v6126_v47 }
 0x753   :  { %5592 = vmatmul.mubr.msk.f32.vlgmr.msra.gmra.mrb[12].mxu1 %vm808_vm6, %v1162_v63 }
 0x754   :  { %5600 = vmatpush3.xpose.msk.msra.mxu1 %vm654_vm5, %v1396_v62  ;;  %5601 = vmatprep.mubr.msk.f32.mxu1 %vm6232_vm4, %v6231_v50 }
 0x755   :  { %5609 = vmatprep.subr.mxu1 %v6231_v50 }
 0x757   :  { %5602 = vmatmul.mubr.msk.f32.vlgmr.msra.gmra.mrb[14].mxu1 %vm654_vm5, %v1394_v0 }
 0x758   :  { %5611 = vmatprep.mubr.msk.f32.mxu1 %vm6232_vm4, %v6231_v50 }
 0x7f1   :  { %v6530_v1 = vpop.f32.mrb[4].mxu0 }
 0x7f2   :  { %v5588_v2 = vpop.f32.mrb[5].mxu0 }
 0x81d   :  { %v1389_v3 = vpop.f32.mrb[6].mxu0 }
 0x81e   :  { %v1471_v4 = vmul.f32 0.5, %v1389_v3  ;;  %v5598_v5 = vpop.f32.mrb[7].mxu0 }
 0x820   :  { %v1473_v7 = vsel %vm808_vm6, %v1471_v4, -inf }
 0x821   :  { %1474 = vmax.xlane.f32.xlu0 %v1473_v7 }
 0x826   :  { %v6533_v8 = vpop.f32.mrb[12].mxu1 }
 0x827   :  { %v5593_v9 = vpop.f32.mrb[13].mxu1 }
 0x82a   :  { %v1467_v10 = vpop.f32.mrb[14].mxu1 }
 0x82b   :  { %v1472_v12 = vmul.f32 0.5, %v1467_v10  ;;  %v5603_v13 = vpop.f32.mrb[15].mxu1 }
 0x82d   :  { %v1476_v14 = vsel %vm808_vm6, %v1472_v12, -inf }
 0x82e   :  { %1477 = vmax.xlane.f32.xlu1 %v1476_v14 }
 0x83f   :  { %1495 = vrot.lane.b32.xlu1 %v6452_v54, %s6240_s28 }
 0x843   :  { %1649 = vrot.lane.b32.xlu1 %v6452_v54, %s6241_s29 }
 0x847   :  { %1727 = vrot.lane.b32.xlu1 %v6455_v55, %s6241_s29  ;;  %s6258_s29 = smov 12  }
 0x84b   :  { %1725 = vrot.lane.b32.xlu1 %v6455_v55, %s6242_s0 }
 0x8ae   :  { %v1475_v15 = vpop.xlane.xlu0 %1474 }
 0x8af   :  { %v1479_v16 = vsub.f32 %v1471_v4, %v1475_v15 }
 0x8b1   :  { %v1481_v17 = vmul.f32 1.442695, %v1479_v16 }
 0x8b3   :  { %6131 = vpow2.f32 %v1481_v17 }
 0x8bb   :  { %v1478_v18 = vpop.xlane.xlu1 %1477 }
 0x8bc   :  { %v1480_v22 = vsub.f32 %v1472_v12, %v1478_v18 }
 0x8bd   :  { %v6132_v19 = vpop.eup %6131 }
 0x8be   :  { %v1485_v20 = vsel %vm808_vm6, %v6132_v19, 0.0  ;;  %v1483_v23 = vmul.f32 1.442695, %v1480_v22 }
 0x8bf   :  { %1486 = vadd.xlane.f32.xlu0 %v1485_v20  ;;  %v1496_v21 = vpop.permute.xlu1 %1495 }
 0x8c0   :  { %5605 = vmatpush3.msra.mxu0 %v1496_v21  ;;  %6133 = vpow2.f32 %v1483_v23 }
 0x8c1   :  { %5614 = vmatprep.subr.mxu0 %v6231_v50 }
 0x8c3   :  { %v1650_v31 = vpop.permute.xlu1 %1649 }
 0x8c7   :  { %v1728_v36 = vpop.permute.xlu1 %1727 }
 0x8ca   :  { %v6134_v24 = vpop.eup %6133 }
 0x8cb   :  { %v1488_v25 = vsel %vm808_vm6, %v6134_v24, 0.0  ;;  %v1726_v38 = vpop.permute.xlu1 %1725 }
 0x8d5   :  { %1571 = vrot.lane.b32.xlu0 %v6455_v55, %s6240_s28  ;;  %s6257_s28 = smov 8  }
 0x8f4   :  { %1489 = vadd.xlane.f32.xlu0 %v1488_v25 }
 0x90a   :  { %1647 = vrot.lane.b32.xlu0 %v6452_v54, %s6242_s0  ;;  %s6259_s0 = smov 16  }
 0x94c   :  { %v1487_v27 = vpop.xlane.xlu0 %1486 }
 0x94d   :  { %6135 = vrcp.f32 %v1487_v27 }
 0x950   :  { %v1572_v28 = vpop.permute.xlu0 %1571 }
 0x951   :  { %5610 = vmatpush3.msra.mxu1 %v1572_v28 }
 0x952   :  { %5619 = vmatprep.subr.mxu1 %v6231_v50 }
 0x957   :  { %v6136_v29 = vpop.eup %6135 }
 0x958   :  { %v1492_v30 = vmul.f32 %v6136_v29, %v6132_v19 }
 0x95a   :  { %5607 = vmatmul.mubr.msk.f32.vlgmr.msra.gmra.mrb[8].mxu0 %vm808_vm6, %v1492_v30 }
 0x95b   :  { %5615 = vmatpush3.xpose.msk.msra.mxu0 %vm654_vm5, %v1650_v31  ;;  %5616 = vmatprep.mubr.msk.f32.mxu0 %vm6232_vm4, %v6231_v50 }
 0x95c   :  { %5624 = vmatprep.subr.mxu0 %v6231_v50 }
 0x981   :  { %v1490_v33 = vpop.xlane.xlu0 %1489 }
 0x982   :  { %6137 = vrcp.f32 %v1490_v33 }
 0x985   :  { %v1648_v34 = vpop.permute.xlu0 %1647 }
 0x986   :  { %5617 = vmatmul.mubr.msk.f32.vlgmr.msra.gmra.mrb[10].mxu0 %vm654_vm5, %v1648_v34 }
 0x987   :  { %5626 = vmatprep.mubr.msk.f32.mxu0 %vm6232_vm4, %v6231_v50 }
 0x98c   :  { %v6138_v35 = vpop.eup %6137 }
 0x98d   :  { %v1494_v37 = vmul.f32 %v6138_v35, %v6134_v24 }
 0x98f   :  { %5612 = vmatmul.mubr.msk.f32.vlgmr.msra.gmra.mrb[16].mxu1 %vm808_vm6, %v1494_v37 }
 0x990   :  { %5620 = vmatpush3.xpose.msk.msra.mxu1 %vm654_vm5, %v1728_v36  ;;  %5621 = vmatprep.mubr.msk.f32.mxu1 %vm6232_vm4, %v6231_v50 }
 0x991   :  { %5629 = vmatprep.subr.mxu1 %v6231_v50 }
 0x993   :  { %5622 = vmatmul.mubr.msk.f32.vlgmr.msra.gmra.mrb[18].mxu1 %vm654_vm5, %v1726_v38 }
 0x994   :  { %5631 = vmatprep.mubr.msk.f32.mxu1 %vm6232_vm4, %v6231_v50 }
 0xa2d   :  { %v6562_v39 = vpop.f32.mrb[8].mxu0 }
 0xa2e   :  { %v5608_v40 = vpop.f32.mrb[9].mxu0 }
 0xa59   :  { %v1721_v41 = vpop.f32.mrb[10].mxu0 }
 0xa5a   :  { %v1803_v42 = vmul.f32 0.5, %v1721_v41  ;;  %v5618_v43 = vpop.f32.mrb[11].mxu0 }
 0xa5c   :  { %v1805_v44 = vsel %vm808_vm6, %v1803_v42, -inf }
 0xa5d   :  { %1806 = vmax.xlane.f32.xlu0 %v1805_v44 }
 0xa62   :  { %v6565_v45 = vpop.f32.mrb[16].mxu1 }
 0xa63   :  { %v5613_v46 = vpop.f32.mrb[17].mxu1 }
 0xa66   :  { %v1799_v47 = vpop.f32.mrb[18].mxu1 }
 0xa67   :  { %v1804_v51 = vmul.f32 0.5, %v1799_v47  ;;  %v5623_v52 = vpop.f32.mrb[19].mxu1 }
 0xa69   :  { %v1808_v53 = vsel %vm808_vm6, %v1804_v51, -inf }
 0xa6a   :  { %1809 = vmax.xlane.f32.xlu1 %v1808_v53 }
 0xa7b   :  { %1827 = vrot.lane.b32.xlu1 %v6452_v54, %s6243_s30 }
 0xa7f   :  { %1981 = vrot.lane.b32.xlu1 %v6452_v54, %s6244_s5 }
 0xa83   :  { %2059 = vrot.lane.b32.xlu1 %v6455_v55, %s6244_s5  ;;  %s6261_s5 = smov 24  }
 0xa87   :  { %2057 = vrot.lane.b32.xlu1 %v6455_v55, %s6245_s23 }
 0xaea   :  { %v1807_v56 = vpop.xlane.xlu0 %1806 }
 0xaeb   :  { %v1811_v57 = vsub.f32 %v1803_v42, %v1807_v56 }
 0xaed   :  { %v1813_v58 = vmul.f32 1.442695, %v1811_v57 }
 0xaef   :  { %6139 = vpow2.f32 %v1813_v58 }
 0xaf7   :  { %v1810_v59 = vpop.xlane.xlu1 %1809 }
 0xaf8   :  { %v1812_v63 = vsub.f32 %v1804_v51, %v1810_v59 }
 0xaf9   :  { %v6140_v60 = vpop.eup %6139 }
 0xafa   :  { %v1817_v61 = vsel %vm808_vm6, %v6140_v60, 0.0  ;;  %v1815_v0 = vmul.f32 1.442695, %v1812_v63 }
 0xafb   :  { %1818 = vadd.xlane.f32.xlu0 %v1817_v61  ;;  %v1828_v62 = vpop.permute.xlu1 %1827 }
 0xafc   :  { %5625 = vmatpush3.msra.mxu0 %v1828_v62  ;;  %6141 = vpow2.f32 %v1815_v0 }
 0xafd   :  { %5634 = vmatprep.subr.mxu0 %v6231_v50 }
 0xaff   :  { %v1982_v10 = vpop.permute.xlu1 %1981 }
 0xb03   :  { %v2060_v15 = vpop.permute.xlu1 %2059 }
 0xb06   :  { %v6142_v2 = vpop.eup %6141 }
 0xb07   :  { %v1820_v3 = vsel %vm808_vm6, %v6142_v2, 0.0  ;;  %v2058_v17 = vpop.permute.xlu1 %2057 }
 0xb11   :  { %1903 = vrot.lane.b32.xlu0 %v6455_v55, %s6243_s30  ;;  %s6260_s30 = smov 20  }
 0xb30   :  { %1821 = vadd.xlane.f32.xlu0 %v1820_v3 }
 0xb46   :  { %1979 = vrot.lane.b32.xlu0 %v6452_v54, %s6245_s23 }
 0xb88   :  { %v1819_v4 = vpop.xlane.xlu0 %1818 }
 0xb89   :  { %6143 = vrcp.f32 %v1819_v4 }
 0xb8c   :  { %v1904_v5 = vpop.permute.xlu0 %1903 }
 0xb8d   :  { %5630 = vmatpush3.msra.mxu1 %v1904_v5 }
 0xb8e   :  { %5639 = vmatprep.subr.mxu1 %v6231_v50 }
 0xb93   :  { %v6144_v7 = vpop.eup %6143 }
 0xb94   :  { %v1824_v9 = vmul.f32 %v6144_v7, %v6140_v60 }
 0xb96   :  { %5627 = vmatmul.mubr.msk.f32.vlgmr.msra.gmra.mrb[12].mxu0 %vm808_vm6, %v1824_v9 }
 0xb97   :  { %5635 = vmatpush3.xpose.msk.msra.mxu0 %vm654_vm5, %v1982_v10  ;;  %5636 = vmatprep.mubr.msk.f32.mxu0 %vm6232_vm4, %v6231_v50 }
 0xb98   :  { %5644 = vmatprep.subr.mxu0 %v6231_v50 }
 0xbbd   :  { %v1822_v12 = vpop.xlane.xlu0 %1821 }
 0xbbe   :  { %6145 = vrcp.f32 %v1822_v12 }
 0xbc1   :  { %v1980_v13 = vpop.permute.xlu0 %1979 }
 0xbc2   :  { %5637 = vmatmul.mubr.msk.f32.vlgmr.msra.gmra.mrb[14].mxu0 %vm654_vm5, %v1980_v13 }
 0xbc3   :  { %5646 = vmatprep.mubr.msk.f32.mxu0 %vm6232_vm4, %v6231_v50 }
 0xbc8   :  { %v6146_v14 = vpop.eup %6145 }
 0xbc9   :  { %v1826_v16 = vmul.f32 %v6146_v14, %v6142_v2 }
 0xbcb   :  { %5632 = vmatmul.mubr.msk.f32.vlgmr.msra.gmra.mrb[20].mxu1 %vm808_vm6, %v1826_v16 }
 0xbcc   :  { %5640 = vmatpush3.xpose.msk.msra.mxu1 %vm654_vm5, %v2060_v15  ;;  %5641 = vmatprep.mubr.msk.f32.mxu1 %vm6232_vm4, %v6231_v50 }
 0xbcd   :  { %5649 = vmatprep.subr.mxu1 %v6231_v50 }
 0xbcf   :  { %5642 = vmatmul.mubr.msk.f32.vlgmr.msra.gmra.mrb[22].mxu1 %vm654_vm5, %v2058_v17 }
 0xbd0   :  { %5651 = vmatprep.mubr.msk.f32.mxu1 %vm6232_vm4, %v6231_v50 }
 0xc69   :  { %v6594_v18 = vpop.f32.mrb[12].mxu0 }
 0xc6a   :  { %v5628_v19 = vpop.f32.mrb[13].mxu0 }
 0xc95   :  { %v2053_v20 = vpop.f32.mrb[14].mxu0 }
 0xc96   :  { %v2135_v21 = vmul.f32 0.5, %v2053_v20  ;;  %v5638_v22 = vpop.f32.mrb[15].mxu0 }
 0xc98   :  { %v2137_v23 = vsel %vm808_vm6, %v2135_v21, -inf }
 0xc99   :  { %2138 = vmax.xlane.f32.xlu0 %v2137_v23 }
 0xc9e   :  { %v6597_v24 = vpop.f32.mrb[20].mxu1 }
 0xc9f   :  { %v5633_v25 = vpop.f32.mrb[21].mxu1 }
 0xca2   :  { %v2131_v27 = vpop.f32.mrb[22].mxu1 }
 0xca3   :  { %v2136_v28 = vmul.f32 0.5, %v2131_v27  ;;  %v5643_v29 = vpop.f32.mrb[23].mxu1 }
 0xca5   :  { %v2140_v30 = vsel %vm808_vm6, %v2136_v28, -inf }
 0xca6   :  { %2141 = vmax.xlane.f32.xlu1 %v2140_v30 }
 0xcb7   :  { %2159 = vrot.lane.b32.xlu1 %v6452_v54, %s6246_s1 }
 0xcbb   :  { %2313 = vrot.lane.b32.xlu1 %v6452_v54, %s6247_s24 }
 0xcbf   :  { %2391 = vrot.lane.b32.xlu1 %v6455_v55, %s6247_s24 }
 0xcc3   :  { %2389 = vrot.lane.b32.xlu1 %v6455_v55, %s6248_s2 }
 0xd26   :  { %v2139_v31 = vpop.xlane.xlu0 %2138 }
 0xd27   :  { %v2143_v33 = vsub.f32 %v2135_v21, %v2139_v31 }
 0xd29   :  { %v2145_v34 = vmul.f32 1.442695, %v2143_v33 }
 0xd2b   :  { %6147 = vpow2.f32 %v2145_v34 }
 0xd33   :  { %v2142_v35 = vpop.xlane.xlu1 %2141 }
 0xd34   :  { %v2144_v40 = vsub.f32 %v2136_v28, %v2142_v35 }
 0xd35   :  { %v6148_v36 = vpop.eup %6147 }
 0xd36   :  { %v2149_v37 = vsel %vm808_vm6, %v6148_v36, 0.0  ;;  %v2147_v41 = vmul.f32 1.442695, %v2144_v40 }
 0xd37   :  { %2150 = vadd.xlane.f32.xlu0 %v2149_v37  ;;  %v2160_v38 = vpop.permute.xlu1 %2159 }
 0xd38   :  { %5645 = vmatpush3.msra.mxu0 %v2160_v38  ;;  %6149 = vpow2.f32 %v2147_v41 }
 0xd39   :  { %5654 = vmatprep.subr.mxu0 %v6231_v50 }
 0xd3b   :  { %v2314_v52 = vpop.permute.xlu1 %2313 }
 0xd3f   :  { %v2392_v58 = vpop.permute.xlu1 %2391 }
 0xd42   :  { %v6150_v42 = vpop.eup %6149 }
 0xd43   :  { %v2152_v43 = vsel %vm808_vm6, %v6150_v42, 0.0  ;;  %v2390_v60 = vpop.permute.xlu1 %2389 }
 0xd4d   :  { %2235 = vrot.lane.b32.xlu0 %v6455_v55, %s6246_s1  ;;  %s7995_s1 = sld [smem:[#allocation11_spill]] }
 0xd6c   :  { %2153 = vadd.xlane.f32.xlu0 %v2152_v43 }
 0xd82   :  { %2311 = vrot.lane.b32.xlu0 %v6452_v54, %s6248_s2 }
 0xdc4   :  { %v2151_v44 = vpop.xlane.xlu0 %2150 }
 0xdc5   :  { %6151 = vrcp.f32 %v2151_v44 }
 0xdc8   :  { %v2236_v46 = vpop.permute.xlu0 %2235 }
 0xdc9   :  { %5650 = vmatpush3.msra.mxu1 %v2236_v46 }
 0xdca   :  { %5659 = vmatprep.subr.mxu1 %v6231_v50 }
 0xdcf   :  { %v6152_v47 = vpop.eup %6151 }
 0xdd0   :  { %v2156_v51 = vmul.f32 %v6152_v47, %v6148_v36 }
 0xdd2   :  { %5647 = vmatmul.mubr.msk.f32.vlgmr.msra.gmra.mrb[16].mxu0 %vm808_vm6, %v2156_v51 }
 0xdd3   :  { %5655 = vmatpush3.xpose.msk.msra.mxu0 %vm654_vm5, %v2314_v52  ;;  %5656 = vmatprep.mubr.msk.f32.mxu0 %vm6232_vm4, %v6231_v50 }
 0xdd4   :  { %5664 = vmatprep.subr.mxu0 %v6231_v50 }
 0xdf9   :  { %v2154_v53 = vpop.xlane.xlu0 %2153 }
 0xdfa   :  { %6153 = vrcp.f32 %v2154_v53 }
 0xdfd   :  { %v2312_v56 = vpop.permute.xlu0 %2311 }
 0xdfe   :  { %5657 = vmatmul.mubr.msk.f32.vlgmr.msra.gmra.mrb[18].mxu0 %vm654_vm5, %v2312_v56 }
 0xdff   :  { %5666 = vmatprep.mubr.msk.f32.mxu0 %vm6232_vm4, %v6231_v50 }
 0xe04   :  { %v6154_v57 = vpop.eup %6153 }
 0xe05   :  { %v2158_v59 = vmul.f32 %v6154_v57, %v6150_v42 }
 0xe07   :  { %5652 = vmatmul.mubr.msk.f32.vlgmr.msra.gmra.mrb[24].mxu1 %vm808_vm6, %v2158_v59 }
 0xe08   :  { %5660 = vmatpush3.xpose.msk.msra.mxu1 %vm654_vm5, %v2392_v58  ;;  %5661 = vmatprep.mubr.msk.f32.mxu1 %vm6232_vm4, %v6231_v50 }
 0xe09   :  { %5669 = vmatprep.subr.mxu1 %v6231_v50 }
 0xe0b   :  { %5662 = vmatmul.mubr.msk.f32.vlgmr.msra.gmra.mrb[26].mxu1 %vm654_vm5, %v2390_v60 }
 0xe0c   :  { %5671 = vmatprep.mubr.msk.f32.mxu1 %vm6232_vm4, %v6231_v50 }
 0xea5   :  { %v6626_v61 = vpop.f32.mrb[16].mxu0 }
 0xea6   :  { %v5648_v62 = vpop.f32.mrb[17].mxu0 }
 0xed1   :  { %v2385_v63 = vpop.f32.mrb[18].mxu0 }
 0xed2   :  { %v2467_v0 = vmul.f32 0.5, %v2385_v63  ;;  %v5658_v2 = vpop.f32.mrb[19].mxu0 }
 0xed4   :  { %v2469_v3 = vsel %vm808_vm6, %v2467_v0, -inf }
 0xed5   :  { %2470 = vmax.xlane.f32.xlu0 %v2469_v3 }
 0xeda   :  { %v6629_v4 = vpop.f32.mrb[24].mxu1 }
 0xedb   :  { %v5653_v5 = vpop.f32.mrb[25].mxu1 }
 0xede   :  { %v2463_v7 = vpop.f32.mrb[26].mxu1 }
 0xedf   :  { %v2468_v9 = vmul.f32 0.5, %v2463_v7  ;;  %v5663_v10 = vpop.f32.mrb[27].mxu1 }
 0xee1   :  { %v2472_v12 = vsel %vm808_vm6, %v2468_v9, -inf }
 0xee2   :  { %2473 = vmax.xlane.f32.xlu1 %v2472_v12 }
 0xef3   :  { %2491 = vrot.lane.b32.xlu1 %v6452_v54, %s6249_s25 }
 0xef7   :  { %2645 = vrot.lane.b32.xlu1 %v6452_v54, %s6250_s26 }
 0xefb   :  { %2723 = vrot.lane.b32.xlu1 %v6455_v55, %s6250_s26 }
 0xeff   :  { %2721 = vrot.lane.b32.xlu1 %v6455_v55, %s6251_s6 }
 0xf62   :  { %v2471_v13 = vpop.xlane.xlu0 %2470 }
 0xf63   :  { %v2475_v14 = vsub.f32 %v2467_v0, %v2471_v13 }
 0xf65   :  { %v2477_v15 = vmul.f32 1.442695, %v2475_v14 }
 0xf67   :  { %6155 = vpow2.f32 %v2477_v15 }
 0xf6f   :  { %v2474_v16 = vpop.xlane.xlu1 %2473 }
 0xf70   :  { %v2476_v21 = vsub.f32 %v2468_v9, %v2474_v16 }
 0xf71   :  { %v6156_v17 = vpop.eup %6155 }
 0xf72   :  { %v2481_v19 = vsel %vm808_vm6, %v6156_v17, 0.0  ;;  %v2479_v22 = vmul.f32 1.442695, %v2476_v21 }
 0xf73   :  { %2482 = vadd.xlane.f32.xlu0 %v2481_v19  ;;  %v2492_v20 = vpop.permute.xlu1 %2491 }
 0xf74   :  { %5665 = vmatpush3.msra.mxu0 %v2492_v20  ;;  %6157 = vpow2.f32 %v2479_v22 }
 0xf75   :  { %5674 = vmatprep.subr.mxu0 %v6231_v50 }
 0xf77   :  { %v2646_v31 = vpop.permute.xlu1 %2645 }
 0xf7b   :  { %v2724_v36 = vpop.permute.xlu1 %2723 }
 0xf7e   :  { %v6158_v23 = vpop.eup %6157 }
 0xf7f   :  { %v2484_v25 = vsel %vm808_vm6, %v6158_v23, 0.0  ;;  %v2722_v38 = vpop.permute.xlu1 %2721 }
 0xf89   :  { %2567 = vrot.lane.b32.xlu0 %v6455_v55, %s6249_s25 }
 0xfa8   :  { %2485 = vadd.xlane.f32.xlu0 %v2484_v25 }
 0xfbe   :  { %2643 = vrot.lane.b32.xlu0 %v6452_v54, %s6251_s6 }
0x1000   :  { %v2483_v27 = vpop.xlane.xlu0 %2482 }
0x1001   :  { %6159 = vrcp.f32 %v2483_v27 }
0x1004   :  { %v2568_v28 = vpop.permute.xlu0 %2567 }
0x1005   :  { %5670 = vmatpush3.msra.mxu1 %v2568_v28 }
0x1006   :  { %5679 = vmatprep.subr.mxu1 %v6231_v50 }
0x100b   :  { %v6160_v29 = vpop.eup %6159 }
0x100c   :  { %v2488_v30 = vmul.f32 %v6160_v29, %v6156_v17 }
0x100e   :  { %5667 = vmatmul.mubr.msk.f32.vlgmr.msra.gmra.mrb[20].mxu0 %vm808_vm6, %v2488_v30 }
0x100f   :  { %5675 = vmatpush3.xpose.msk.msra.mxu0 %vm654_vm5, %v2646_v31  ;;  %5676 = vmatprep.mubr.msk.f32.mxu0 %vm6232_vm4, %v6231_v50 }
0x1010   :  { %5684 = vmatprep.subr.mxu0 %v6231_v50 }
0x1035   :  { %v2486_v33 = vpop.xlane.xlu0 %2485 }
0x1036   :  { %6161 = vrcp.f32 %v2486_v33 }
0x1039   :  { %v2644_v34 = vpop.permute.xlu0 %2643 }
0x103a   :  { %5677 = vmatmul.mubr.msk.f32.vlgmr.msra.gmra.mrb[22].mxu0 %vm654_vm5, %v2644_v34 }
0x103b   :  { %5686 = vmatprep.mubr.msk.f32.mxu0 %vm6232_vm4, %v6231_v50 }
0x1040   :  { %v6162_v35 = vpop.eup %6161 }
0x1041   :  { %v2490_v37 = vmul.f32 %v6162_v35, %v6158_v23 }
0x1043   :  { %5672 = vmatmul.mubr.msk.f32.vlgmr.msra.gmra.mrb[28].mxu1 %vm808_vm6, %v2490_v37 }
0x1044   :  { %5680 = vmatpush3.xpose.msk.msra.mxu1 %vm654_vm5, %v2724_v36  ;;  %5681 = vmatprep.mubr.msk.f32.mxu1 %vm6232_vm4, %v6231_v50 }
0x1045   :  { %5689 = vmatprep.subr.mxu1 %v6231_v50 }
0x1047   :  { %5682 = vmatmul.mubr.msk.f32.vlgmr.msra.gmra.mrb[30].mxu1 %vm654_vm5, %v2722_v38 }
0x1048   :  { %5691 = vmatprep.mubr.msk.f32.mxu1 %vm6232_vm4, %v6231_v50 }
0x10e1   :  { %v6658_v40 = vpop.f32.mrb[20].mxu0 }
0x10e2   :  { %v5668_v41 = vpop.f32.mrb[21].mxu0 }
0x110d   :  { %v2717_v42 = vpop.f32.mrb[22].mxu0 }
0x110e   :  { %v2799_v43 = vmul.f32 0.5, %v2717_v42  ;;  %v5678_v44 = vpop.f32.mrb[23].mxu0 }
0x1110   :  { %v2801_v46 = vsel %vm808_vm6, %v2799_v43, -inf }
0x1111   :  { %2802 = vmax.xlane.f32.xlu0 %v2801_v46 }
0x1116   :  { %v6661_v47 = vpop.f32.mrb[28].mxu1 }
0x1117   :  { %v5673_v51 = vpop.f32.mrb[29].mxu1 }
0x111a   :  { %v2795_v52 = vpop.f32.mrb[30].mxu1 }
0x111b   :  { %v2800_v53 = vmul.f32 0.5, %v2795_v52  ;;  %v5683_v56 = vpop.f32.mrb[31].mxu1 }
0x111d   :  { %v2804_v57 = vsel %vm808_vm6, %v2800_v53, -inf }
0x111e   :  { %2805 = vmax.xlane.f32.xlu1 %v2804_v57  ;;  %v106_v57 = vld [vmem:[%s7966_s7 + $0x18] sm:$0xff] }
0x112f   :  { %2823 = vrot.lane.b32.xlu1 %v6452_v54, %s6252_s20 }
0x1133   :  { %2977 = vrot.lane.b32.xlu1 %v6452_v54, %s6253_s4 }
0x1137   :  { %3055 = vrot.lane.b32.xlu1 %v6455_v55, %s6253_s4  ;;  %s6262_s4 = smov 28  }
0x113b   :  { %3053 = vrot.lane.b32.xlu1 %v6455_v55, %s6254_s22 }
0x119e   :  { %v2803_v58 = vpop.xlane.xlu0 %2802 }
0x119f   :  { %v2807_v59 = vsub.f32 %v2799_v43, %v2803_v58 }
0x11a1   :  { %v2809_v60 = vmul.f32 1.442695, %v2807_v59 }
0x11a3   :  { %6163 = vpow2.f32 %v2809_v60 }
0x11ab   :  { %v2806_v62 = vpop.xlane.xlu1 %2805 }
0x11ac   :  { %v2808_v3 = vsub.f32 %v2800_v53, %v2806_v62 }
0x11ad   :  { %v6164_v63 = vpop.eup %6163 }
0x11ae   :  { %v2813_v0 = vsel %vm808_vm6, %v6164_v63, 0.0  ;;  %v2811_v5 = vmul.f32 1.442695, %v2808_v3 }
0x11af   :  { %2814 = vadd.xlane.f32.xlu0 %v2813_v0  ;;  %v2824_v2 = vpop.permute.xlu1 %2823 }
0x11b0   :  { %5685 = vmatpush3.msra.mxu0 %v2824_v2  ;;  %6165 = vpow2.f32 %v2811_v5 }
0x11b1   :  { %5694 = vmatprep.subr.mxu0 %v6231_v50 }
0x11b3   :  { %v2978_v15 = vpop.permute.xlu1 %2977 }
0x11b7   :  { %v3056_v20 = vpop.permute.xlu1 %3055 }
0x11ba   :  { %v6166_v7 = vpop.eup %6165 }
0x11bb   :  { %v2816_v9 = vsel %vm808_vm6, %v6166_v7, 0.0  ;;  %v3054_v22 = vpop.permute.xlu1 %3053 }
0x11c5   :  { %2899 = vrot.lane.b32.xlu0 %v6455_v55, %s6252_s20 }
0x11e4   :  { %2817 = vadd.xlane.f32.xlu0 %v2816_v9 }
0x11fa   :  { %2975 = vrot.lane.b32.xlu0 %v6452_v54, %s6254_s22 }
0x123c   :  { %v2815_v10 = vpop.xlane.xlu0 %2814 }
0x123d   :  { %6167 = vrcp.f32 %v2815_v10 }
0x1240   :  { %v2900_v12 = vpop.permute.xlu0 %2899 }
0x1241   :  { %5690 = vmatpush3.msra.mxu1 %v2900_v12 }
0x1242   :  { %5699 = vmatprep.subr.mxu1 %v6231_v50 }
0x1247   :  { %v6168_v13 = vpop.eup %6167 }
0x1248   :  { %v2820_v14 = vmul.f32 %v6168_v13, %v6164_v63 }
0x124a   :  { %5687 = vmatmul.mubr.msk.f32.vlgmr.msra.gmra.mrb[24].mxu0 %vm808_vm6, %v2820_v14 }
0x124b   :  { %5695 = vmatpush3.xpose.msk.msra.mxu0 %vm654_vm5, %v2978_v15  ;;  %5696 = vmatprep.mubr.msk.f32.mxu0 %vm6232_vm4, %v6231_v50 }
0x124c   :  { %5704 = vmatprep.subr.mxu0 %v6231_v50 }
0x1271   :  { %v2818_v16 = vpop.xlane.xlu0 %2817 }
0x1272   :  { %6169 = vrcp.f32 %v2818_v16 }
0x1275   :  { %v2976_v17 = vpop.permute.xlu0 %2975 }
0x1276   :  { %5697 = vmatmul.mubr.msk.f32.vlgmr.msra.gmra.mrb[26].mxu0 %vm654_vm5, %v2976_v17 }
0x1277   :  { %5706 = vmatprep.mubr.msk.f32.mxu0 %vm6232_vm4, %v6231_v50 }
0x127c   :  { %v6170_v19 = vpop.eup %6169 }
0x127d   :  { %v2822_v21 = vmul.f32 %v6170_v19, %v6166_v7 }
0x127f   :  { %5692 = vmatmul.mubr.msk.f32.vlgmr.msra.gmra.mrb[32].mxu1 %vm808_vm6, %v2822_v21 }
0x1280   :  { %5700 = vmatpush3.xpose.msk.msra.mxu1 %vm654_vm5, %v3056_v20  ;;  %5701 = vmatprep.mubr.msk.f32.mxu1 %vm6232_vm4, %v6231_v50 }
0x1281   :  { %5709 = vmatprep.subr.mxu1 %v6231_v50 }
0x1283   :  { %5702 = vmatmul.mubr.msk.f32.vlgmr.msra.gmra.mrb[34].mxu1 %vm654_vm5, %v3054_v22 }
0x1284   :  { %5711 = vmatprep.mubr.msk.f32.mxu1 %vm6232_vm4, %v6231_v50 }
0x131d   :  { %v2895_v23 = vpop.f32.mrb[24].mxu0 }
0x131e   :  { %v5688_v25 = vpop.f32.mrb[25].mxu0 }
0x1349   :  { %v3049_v27 = vpop.f32.mrb[26].mxu0 }
0x134a   :  { %v3131_v28 = vmul.f32 0.5, %v3049_v27  ;;  %v5698_v29 = vpop.f32.mrb[27].mxu0 }
0x134c   :  { %v3133_v30 = vsel %vm808_vm6, %v3131_v28, -inf }
0x134d   :  { %3134 = vmax.xlane.f32.xlu0 %v3133_v30 }
0x1352   :  { %v2971_v31 = vpop.f32.mrb[32].mxu1 }
0x1353   :  { %v5693_v33 = vpop.f32.mrb[33].mxu1 }
0x1356   :  { %v3127_v34 = vpop.f32.mrb[34].mxu1 }
0x1357   :  { %v3132_v35 = vmul.f32 0.5, %v3127_v34  ;;  %v5703_v36 = vpop.f32.mrb[35].mxu1 }
0x1359   :  { %v3136_v37 = vsel %vm808_vm6, %v3132_v35, -inf }
0x135a   :  { %3137 = vmax.xlane.f32.xlu1 %v3136_v37 }
0x136b   :  { %3155 = vrot.lane.b32.xlu1 %v6452_v54, %s6255_s27 }
0x136f   :  { %3309 = vrot.lane.b32.xlu1 %v6530_v1, %s6256_s3 }
0x1373   :  { %3311 = vrot.lane.b32.xlu1 %v6533_v8, %s6256_s3 }
0x1377   :  { %3319 = vrot.lane.b32.xlu1 %v6565_v45, %s6257_s28 }
0x137b   :  { %3327 = vrot.lane.b32.xlu1 %v6597_v24, %s6258_s29 }
0x137f   :  { %3335 = vrot.lane.b32.xlu1 %v6629_v4, %s6259_s0 }
0x1383   :  { %3343 = vrot.lane.b32.xlu1 %v6661_v47, %s6260_s30 }
0x1387   :  { %3351 = vrot.lane.b32.xlu1 %v2971_v31, %s6261_s5 }
0x13da   :  { %v3135_v54 = vpop.xlane.xlu0 %3134 }
0x13db   :  { %v3139_v38 = vsub.f32 %v3131_v28, %v3135_v54 }
0x13dd   :  { %v3141_v41 = vmul.f32 1.442695, %v3139_v38 }
0x13df   :  { %6171 = vpow2.f32 %v3141_v41 }
0x13e7   :  { %v3138_v1 = vpop.xlane.xlu1 %3137 }
0x13e8   :  { %v3140_v8 = vsub.f32 %v3132_v35, %v3138_v1 }
0x13e9   :  { %v6172_v42 = vpop.eup %6171 }
0x13ea   :  { %v3143_v43 = vmul.f32 1.442695, %v3140_v8  ;;  %v3145_v45 = vsel %vm808_vm6, %v6172_v42, 0.0 }
0x13eb   :  { %3146 = vadd.xlane.f32.xlu0 %v3145_v45  ;;  %v3156_v24 = vpop.permute.xlu1 %3155 }
0x13ec   :  { %6173 = vpow2.f32 %v3143_v43  ;;  %5705 = vmatpush3.msra.mxu0 %v3156_v24 }
0x13ef   :  { %v3310_v2 = vpop.permute.xlu1 %3309 }
0x13f0   :  { %v3363_v13 = vsel %vm654_vm5, %v6498_v26, %v3310_v2 }
0x13f3   :  { %v3312_v5 = vpop.permute.xlu1 %3311 }
0x13f4   :  { %v3364_v25 = vsel %vm654_vm5, %v6501_v32, %v3312_v5  ;;  %v5106_v32 = vld [vmem:[%s7967_s8] ss:$0 sm:$0xff] }
0x13f5   :  { %v142_v5 = vld [vmem:[%s7970_s11 + $0x100] sm:$0xff] }
0x13f6   :  { %v6174_v4 = vpop.eup %6173 }
0x13f7   :  { %v3148_v44 = vsel %vm808_vm6, %v6174_v4, 0.0  ;;  %v3320_v9 = vpop.permute.xlu1 %3319 }
0x13f8   :  { %3149 = vadd.xlane.f32.xlu0 %v3148_v44  ;;  %v3366_v27 = vsel %vm808_vm6, %v3364_v25, %v3320_v9 }
0x13fb   :  { %v3328_v12 = vpop.permute.xlu1 %3327 }
0x13fc   :  { %v3369_v29 = vsel %vm3367_vm7, %v3366_v27, %v3328_v12  ;;  %v144_v12 = vld [vmem:[%s7970_s11 + $0x110] sm:$0xff] }
0x13ff   :  { %v3336_v16 = vpop.permute.xlu1 %3335 }
0x1400   :  { %v3372_v30 = vsel %vm3370_vm8, %v3369_v29, %v3336_v16  ;;  %v131_v16 = vld [vmem:[%s7970_s11 + $0xa8] sm:$0xff] }
0x1403   :  { %v3344_v26 = vpop.permute.xlu1 %3343 }
0x1404   :  { %v3375_v31 = vsel %vm3373_vm9, %v3372_v30, %v3344_v26  ;;  %v5109_v30 = vld [vmem:[%s7968_s9] ss:$0 sm:$0xff] }
0x1407   :  { %v3352_v28 = vpop.permute.xlu1 %3351 }
0x1408   :  { %v3378_v33 = vsel %vm3376_vm11, %v3375_v31, %v3352_v28  ;;  %v114_v31 = vld [vmem:[%s7970_s11 + $0x20] sm:$0xff] }
0x140e   :  { %3231 = vrot.lane.b32.xlu0 %v6455_v55, %s6255_s27 }
0x1412   :  { %3317 = vrot.lane.b32.xlu0 %v6562_v39, %s6257_s28  ;;  %v103_v39 = vld [vmem:[%s7966_s7] sm:$0xff] }
0x1416   :  { %3325 = vrot.lane.b32.xlu0 %v6594_v18, %s6258_s29  ;;  %v104_v18 = vld [vmem:[%s7966_s7 + $0x8] sm:$0xff] }
0x141a   :  { %3333 = vrot.lane.b32.xlu0 %v6626_v61, %s6259_s0  ;;  %v105_v61 = vld [vmem:[%s7966_s7 + $0x10] sm:$0xff] }
0x141b   :  { %v5753_v58 = vpack.c.bf16 %v106_v57, %v105_v61  ;;  %v126_v61 = vld [vmem:[%s7970_s11 + $0x80] sm:$0xff] }
0x141e   :  { %3341 = vrot.lane.b32.xlu0 %v6658_v40, %s6260_s30  ;;  %v5749_v40 = vpack.c.bf16 %v104_v18, %v103_v39  ;;  %v129_v39 = vld [vmem:[%s7970_s11 + $0x98] sm:$0xff]  ;;  %v110_v18 = vld [vmem:[%s7970_s11] sm:$0xff] }
0x141f   :  { %v5759_v57 = vpack.c.bf16 %v126_v61, %v110_v18  ;;  %v118_v61 = vld [vmem:[%s7970_s11 + $0x40] sm:$0xff] }
0x1420   :  { %5750 = vmatprep.subr.bf16.mxu0 %v5749_v40 }
0x1422   :  { %3349 = vrot.lane.b32.xlu0 %v2895_v23, %s6261_s5 }
0x1478   :  { %v3147_v46 = vpop.xlane.xlu0 %3146 }
0x1479   :  { %6175 = vrcp.f32 %v3147_v46 }
0x1483   :  { %v6176_v47 = vpop.eup %6175 }
0x1484   :  { %v3152_v51 = vmul.f32 %v6176_v47, %v6172_v42 }
0x1485   :  { %v3150_v52 = vpop.xlane.xlu0 %3149 }
0x1486   :  { %6177 = vrcp.f32 %v3150_v52  ;;  %5707 = vmatmul.mubr.msk.f32.vlgmr.msra.gmra.mrb[28].mxu0 %vm808_vm6, %v3152_v51  ;;  %v111_v52 = vld [vmem:[%s7970_s11 + $0x8] sm:$0xff] }
0x1487   :  { %5752 = vmatpush3.bf16.msra.mxu0 %v5749_v40 }
0x1488   :  { %5754 = vmatprep.subr.bf16.mxu0 %v5753_v58 }
0x1489   :  { %v3232_v53 = vpop.permute.xlu0 %3231 }
0x148a   :  { %5710 = vmatpush3.msra.mxu1 %v3232_v53  ;;  %v127_v53 = vld [vmem:[%s7970_s11 + $0x88] sm:$0xff] }
0x148b   :  { %5756 = vmatpush3.bf16.msra.mxu0 %v5753_v58  ;;  %v112_v58 = vld [vmem:[%s7970_s11 + $0x10] sm:$0xff] }
0x148d   :  { %v3318_v0 = vpop.permute.xlu0 %3317 }
0x148e   :  { %v3365_v14 = vsel %vm808_vm6, %v3363_v13, %v3318_v0  ;;  %v145_v0 = vld [vmem:[%s7970_s11 + $0x118] sm:$0xff]  ;;  %v160_v13 = vld [vmem:[%s7970_s11 + $0x190] sm:$0xff] }
0x1490   :  { %v6178_v55 = vpop.eup %6177 }
0x1491   :  { %v3154_v56 = vmul.f32 %v6178_v55, %v6174_v4  ;;  %v3326_v3 = vpop.permute.xlu0 %3325  ;;  %v113_v55 = vld [vmem:[%s7970_s11 + $0x18] sm:$0xff] }
0x1492   :  { %v3368_v17 = vsel %vm3367_vm7, %v3365_v14, %v3326_v3  ;;  %v5765_v40 = vpack.c.bf16 %v129_v39, %v113_v55  ;;  %v161_v3 = vld [vmem:[%s7970_s11 + $0x198] sm:$0xff]  ;;  %v5771_v14 = vpack.c.bf16 %v160_v13, %v144_v12  ;;  %v152_v12 = vld [vmem:[%s7970_s11 + $0x150] sm:$0xff] }
0x1493   :  { %5712 = vmatmul.mubr.msk.f32.vlgmr.msra.gmra.mrb[36].mxu1 %vm808_vm6, %v3154_v56  ;;  %v5757_v56 = vpack.c.bf16 %v127_v53, %v111_v52  ;;  %v5769_v9 = vpack.c.bf16 %v161_v3, %v145_v0  ;;  %v119_v52 = vld [vmem:[%s7970_s11 + $0x48] sm:$0xff]  ;;  %v121_v55 = vld [vmem:[%s7970_s11 + $0x58] sm:$0xff]  ;;  %v168_v13 = vld [vmem:[%s7970_s11 + $0x1d0] sm:$0xff] }
0x1494   :  { %3666 = vmatprep.mubr.f32.mxu1 %v6231_v50  ;;  %5766 = vmatprep.subr.bf16.mxu0 %v5765_v40  ;;  %v167_v0 = vld [vmem:[%s7970_s11 + $0x1c8] sm:$0xff]  ;;  %v169_v3 = vld [vmem:[%s7970_s11 + $0x1d8] sm:$0xff] }
0x1495   :  { %v3334_v7 = vpop.permute.xlu0 %3333  ;;  %5758 = vmatprep.subr.bf16.mxu1 %v5757_v56  ;;  %v137_v56 = vld [vmem:[%s7970_s11 + $0xd8] sm:$0xff] }
0x1496   :  { %v3371_v19 = vsel %vm3370_vm8, %v3368_v17, %v3334_v7  ;;  %5760 = vmatpush1.bf16.msra.mxu1 %v5759_v57  ;;  %v158_v7 = vld [vmem:[%s7970_s11 + $0x180] sm:$0xff]  ;;  %v117_v17 = vld [vmem:[%s7970_s11 + $0x38] sm:$0xff] }
0x1497   :  { %v134_v57 = vld [vmem:[%s7970_s11 + $0xc0] sm:$0xff] }
0x1499   :  { %v3342_v10 = vpop.permute.xlu0 %3341 }
0x149a   :  { %v3374_v20 = vsel %vm3373_vm9, %v3371_v19, %v3342_v10  ;;  %v5763_v10 = vpack.c.bf16 %v158_v7, %v142_v5  ;;  %v5791_v5 = vpack.c.bf16 %v134_v57, %v118_v61  ;;  %v178_v57 = vld [vmem:[%s7972_s13 + $0x10] sm:$0xff] }
0x149d   :  { %v3350_v15 = vpop.permute.xlu0 %3349 }
0x149e   :  { %v3377_v21 = vsel %vm3376_vm11, %v3374_v20, %v3350_v15  ;;  %v115_v15 = vld [vmem:[%s7970_s11 + $0x28] sm:$0xff]  ;;  %v133_v20 = vld [vmem:[%s7970_s11 + $0xb8] sm:$0xff] }
0x149f   :  { %v5773_v19 = vpack.c.bf16 %v131_v16, %v115_v15  ;;  %v123_v16 = vld [vmem:[%s7970_s11 + $0x68] sm:$0xff] }
0x1559   :  { %v3227_v59 = vpop.f32.mrb[28].mxu0 }
0x155a   :  { %3357 = vrot.lane.b32.xlu0 %v3227_v59, %s6262_s4  ;;  %v5708_v60 = vpop.f32.mrb[29].mxu0  ;;  %v128_v59 = vld [vmem:[%s7970_s11 + $0x90] sm:$0xff] }
0x155b   :  { %v5767_v60 = vpack.c.bf16 %v128_v59, %v112_v58  ;;  %v120_v58 = vld [vmem:[%s7970_s11 + $0x50] sm:$0xff] }
0x155c   :  { %v136_v59 = vld [vmem:[%s7970_s11 + $0xd0] sm:$0xff] }
0x155d   :  { %v5799_v7 = vpack.c.bf16 %v136_v59, %v120_v58  ;;  %v179_v58 = vld [vmem:[%s7972_s13 + $0x18] sm:$0xff] }
0x1566   :  { %v3303_v62 = vpop.f32.mrb[36].mxu1 }
0x1567   :  { %3359 = vrot.lane.b32.xlu1 %v3303_v62, %s6262_s4  ;;  %v5713_v63 = vpop.f32.mrb[37].mxu1  ;;  %v143_v62 = vld [vmem:[%s7970_s11 + $0x108] sm:$0xff] }
0x1568   :  { %v159_v63 = vld [vmem:[%s7970_s11 + $0x188] sm:$0xff] }
0x1569   :  { %v5761_v2 = vpack.c.bf16 %v159_v63, %v143_v62  ;;  %v5797_v62 = vpack.c.bf16 %v137_v56, %v121_v55  ;;  %v151_v63 = vld [vmem:[%s7970_s11 + $0x148] sm:$0xff]  ;;  %v195_v55 = vld [vmem:[%s7972_s13 + $0x98] sm:$0xff]  ;;  %v226_v56 = vld [vmem:[%s7972_s13 + $0x190] sm:$0xff] }
0x156b   :  { %5762 = vmatprep.subr.bf16.mxu1 %v5761_v2  ;;  %v153_v2 = vld [vmem:[%s7970_s11 + $0x158] sm:$0xff] }
0x156c   :  { %5764 = vmatpush1.bf16.msra.mxu1 %v5763_v10  ;;  %v166_v10 = vld [vmem:[%s7970_s11 + $0x1c0] sm:$0xff]  ;;  %v5801_v15 = vpack.c.bf16 %v169_v3, %v153_v2  ;;  %v197_v2 = vld [vmem:[%s7972_s13 + $0xa8] sm:$0xff] }
0x156d   :  { %5774 = vmatprep.subr.bf16.mxu1 %v5773_v19  ;;  %v125_v19 = vld [vmem:[%s7970_s11 + $0x78] sm:$0xff]  ;;  %v228_v3 = vld [vmem:[%s7972_s13 + $0x1a0] sm:$0xff] }
0x15cc   :  { %v3358_v22 = vpop.permute.xlu0 %3357 }
0x15cd   :  { %v3380_v23 = vsel %vm3379_vm10, %v3377_v21, %v3358_v22  ;;  %v5781_v21 = vpack.c.bf16 %v133_v20, %v117_v17  ;;  %v139_v17 = vld [vmem:[%s7970_s11 + $0xe8] sm:$0xff]  ;;  %v141_v20 = vld [vmem:[%s7970_s11 + $0xf8] sm:$0xff] }
0x15ce   :  { %5722 = vmatprep.mubr.msk.f32.mxu0 %vm446_vm0, %v3380_v23 }
0x15d9   :  { %v3360_v34 = vpop.permute.xlu1 %3359 }
0x15da   :  { %v3381_v35 = vsel %vm3379_vm10, %v3378_v33, %v3360_v34  ;;  %v130_v34 = vld [vmem:[%s7970_s11 + $0xa0] sm:$0xff] }
0x15db   :  { %5723 = vmatmul.mubr.msk.f32.vlgmr.msra.gmra.mrb[30].mxu0 %vm446_vm0, %v3381_v35  ;;  %v116_v35 = vld [vmem:[%s7970_s11 + $0x30] sm:$0xff] }
0x15dc   :  { %3743 = vmatprep.mubr.f32.mxu0 %v6231_v50  ;;  %5768 = vmatpush1.bf16.msra.mxu0 %v5767_v60 }
0x15dd   :  { %5770 = vmatprep.subr.bf16.mxu0 %v5769_v9  ;;  %v150_v9 = vld [vmem:[%s7970_s11 + $0x140] sm:$0xff] }
0x15e0   :  { %5772 = vmatpush1.bf16.msra.mxu0 %v5771_v14  ;;  %v5793_v14 = vpack.c.bf16 %v167_v0, %v151_v63  ;;  %v211_v63 = vld [vmem:[%s7972_s13 + $0x118] sm:$0xff]  ;;  %v196_v0 = vld [vmem:[%s7972_s13 + $0xa0] sm:$0xff] }
0x15e1   :  { %5782 = vmatprep.subr.bf16.mxu0 %v5781_v21  ;;  %v5795_v21 = vpack.c.bf16 %v166_v10, %v150_v9  ;;  %v180_v10 = vld [vmem:[%s7972_s13 + $0x20] sm:$0xff] }
0x16ae   :  { %v5724_v36 = vpop.f32.mrb[30].mxu0 }
0x16af   :  { %v3466_v37 = vadd.f32 %v5724_v36, %v5106_v32  ;;  %v3460_v54 = vpop.f32.mrb[31].mxu0  ;;  %v5110_v36 = vld [vmem:[%s7969_s10] ss:$0 sm:$0xff] }
0x16b0   :  { %v3461_v38 = vadd.f32 %v5106_v32, %v3460_v54  ;;  %v132_v32 = vld [vmem:[%s7970_s11 + $0xb0] sm:$0xff] }
0x16b1   :  { %v3470_v41 = vadd.f32 %v3466_v37, %v6437_v49  ;;  %v147_v37 = vld [vmem:[%s7970_s11 + $0x128] sm:$0xff] }
0x16b2   :  { %v3469_v1 = vadd.f32 %v3461_v38, %v6435_v48  ;;  %v163_v38 = vld [vmem:[%s7970_s11 + $0x1a8] sm:$0xff] }
0x16b3   :  { %v3474_v8 = vsel %vm446_vm0, %v3470_v41, 0.0 }
0x16b4   :  { %3475 = vadd.xlane.f32.xlu1 %v3474_v8  ;;  %v3471_v42 = vsel %vm446_vm0, %v3469_v1, 0.0 }
0x16b5   :  { %3472 = vadd.xlane.f32.xlu0 %v3471_v42  ;;  %v5775_v42 = vpack.c.bf16 %v130_v34, %v114_v31  ;;  %v171_v31 = vld [vmem:[%s7970_s11 + $0x1e8] sm:$0xff]  ;;  %v173_v34 = vld [vmem:[%s7970_s11 + $0x1f8] sm:$0xff] }
0x1741   :  { %v3476_v43 = vpop.xlane.xlu1 %3475 }
0x1742   :  { %v3479_v45 = vmul.f32 0.03125, %v3476_v43  ;;  %v3473_v24 = vpop.xlane.xlu0 %3472  ;;  %v5783_v43 = vpack.c.bf16 %v132_v32, %v116_v35 }
0x1743   :  { %v3478_v4 = vmul.f32 0.03125, %v3473_v24 }
0x1744   :  { %v6745_v44 = vsub.f32 %v3470_v41, %v3479_v45  ;;  %v149_v41 = vld [vmem:[%s7970_s11 + $0x138] sm:$0xff]  ;;  %v146_v45 = vld [vmem:[%s7970_s11 + $0x120] sm:$0xff] }
0x1745   :  { %v3480_v46 = vsub.f32 %v3469_v1, %v3478_v4  ;;  %v165_v1 = vld [vmem:[%s7970_s11 + $0x1b8] sm:$0xff] }
0x1746   :  { %v3483_v49 = vmul.f32 %v6745_v44, %v6745_v44 }
0x1747   :  { %v3482_v47 = vmul.f32 %v3480_v46, %v3480_v46 }
0x1748   :  { %v3487_v48 = vsel %vm446_vm0, %v3483_v49, 0.0  ;;  %v5777_v49 = vpack.c.bf16 %v163_v38, %v147_v37  ;;  %v170_v37 = vld [vmem:[%s7970_s11 + $0x1e0] sm:$0xff]  ;;  %v172_v38 = vld [vmem:[%s7970_s11 + $0x1f0] sm:$0xff] }
0x1749   :  { %v3484_v51 = vsel %vm446_vm0, %v3482_v47, 0.0  ;;  %v148_v47 = vld [vmem:[%s7970_s11 + $0x130] sm:$0xff] }
0x174a   :  { %3485 = vadd.xlane.f32.xlu0 %v3484_v51  ;;  %v164_v51 = vld [vmem:[%s7970_s11 + $0x1b0] sm:$0xff] }
0x174b   :  { %v5787_v18 = vpack.c.bf16 %v164_v51, %v148_v47  ;;  %v176_v47 = vld [vmem:[%s7972_s13] sm:$0xff]  ;;  %v177_v51 = vld [vmem:[%s7972_s13 + $0x8] sm:$0xff] }
0x174e   :  { %3488 = vadd.xlane.f32.xlu0 %v3487_v48  ;;  %v5785_v48 = vpack.c.bf16 %v165_v1, %v149_v41 }
0x17d7   :  { %v3486_v22 = vpop.xlane.xlu0 %3485 }
0x17d8   :  { %v3490_v23 = vmul.f32 0.03125, %v3486_v22  ;;  %v5803_v22 = vpack.c.bf16 %v168_v13, %v152_v12  ;;  %v181_v12 = vld [vmem:[%s7972_s13 + $0x28] sm:$0xff]  ;;  %v5829_v13 = vpack.c.bf16 %v197_v2, %v196_v0 }
0x17da   :  { %v3492_v26 = vadd.f32 1e-05, %v3490_v23  ;;  %v122_v23 = vld [vmem:[%s7970_s11 + $0x60] sm:$0xff] }
0x17db   :  { %v3489_v25 = vpop.xlane.xlu0 %3488 }
0x17dc   :  { %6179 = vrsqrt.f32 %v3492_v26  ;;  %v3491_v27 = vmul.f32 0.03125, %v3489_v25  ;;  %v138_v26 = vld [vmem:[%s7970_s11 + $0xe0] sm:$0xff]  ;;  %v124_v25 = vld [vmem:[%s7970_s11 + $0x70] sm:$0xff] }
0x17dd   :  { %v5807_v35 = vpack.c.bf16 %v138_v26, %v122_v23  ;;  %v182_v23 = vld [vmem:[%s7972_s13 + $0x30] sm:$0xff]  ;;  %v183_v26 = vld [vmem:[%s7972_s13 + $0x38] sm:$0xff] }
0x17de   :  { %v3493_v28 = vadd.f32 1e-05, %v3491_v27  ;;  %v140_v27 = vld [vmem:[%s7970_s11 + $0xf0] sm:$0xff] }
0x17df   :  { %v5815_v32 = vpack.c.bf16 %v140_v27, %v124_v25 }
0x17e0   :  { %6181 = vrsqrt.f32 %v3493_v28  ;;  %v5805_v28 = vpack.c.bf16 %v139_v17, %v123_v16  ;;  %v198_v16 = vld [vmem:[%s7972_s13 + $0xb0] sm:$0xff]  ;;  %v199_v17 = vld [vmem:[%s7972_s13 + $0xb8] sm:$0xff] }
0x17e1   :  { %v5833_v25 = vpack.c.bf16 %v199_v17, %v198_v16  ;;  %v223_v16 = vld [vmem:[%s7972_s13 + $0x178] sm:$0xff] }
0x17e6   :  { %v6180_v29 = vpop.eup %6179 }
0x17e7   :  { %v3496_v33 = vmul.f32 %v6180_v29, %v3480_v46  ;;  %v162_v46 = vld [vmem:[%s7970_s11 + $0x1a0] sm:$0xff]  ;;  %v5813_v29 = vpack.c.bf16 %v141_v20, %v125_v19  ;;  %v230_v19 = vld [vmem:[%s7972_s13 + $0x1b0] sm:$0xff]  ;;  %v231_v20 = vld [vmem:[%s7972_s13 + $0x1b8] sm:$0xff] }
0x17e8   :  { %v5779_v39 = vpack.c.bf16 %v162_v46, %v146_v45  ;;  %v225_v45 = vld [vmem:[%s7972_s13 + $0x188] sm:$0xff]  ;;  %v5865_v27 = vpack.c.bf16 %v231_v20, %v230_v19  ;;  %v256_v19 = vld [vmem:[%s7972_s13 + $0x280] sm:$0xff] }
0x17e9   :  { %v3504_v54 = vmul.f32 %v5109_v30, %v3496_v33  ;;  %v157_v33 = vld [vmem:[%s7970_s11 + $0x178] sm:$0xff]  ;;  %v257_v20 = vld [vmem:[%s7972_s13 + $0x288] sm:$0xff] }
0x17ea   :  { %v6182_v8 = vpop.eup %6181  ;;  %v5817_v1 = vpack.c.bf16 %v173_v34, %v157_v33  ;;  %v232_v33 = vld [vmem:[%s7972_s13 + $0x1c0] sm:$0xff]  ;;  %v233_v34 = vld [vmem:[%s7972_s13 + $0x1c8] sm:$0xff] }
0x17eb   :  { %v6844_v24 = vadd.f32 %v5110_v36, %v3504_v54  ;;  %v3497_v4 = vmul.f32 %v6182_v8, %v6745_v44  ;;  %v135_v44 = vld [vmem:[%s7970_s11 + $0xc8] sm:$0xff]  ;;  %v156_v54 = vld [vmem:[%s7970_s11 + $0x170] sm:$0xff]  ;;  %v192_v8 = vld [vmem:[%s7972_s13 + $0x80] sm:$0xff] }
0x17ec   :  { %v5789_v60 = vpack.c.bf16 %v135_v44, %v119_v52  ;;  %v5819_v46 = vpack.c.bf16 %v172_v38, %v156_v54  ;;  %v208_v52 = vld [vmem:[%s7972_s13 + $0x100] sm:$0xff]  ;;  %v194_v44 = vld [vmem:[%s7972_s13 + $0x90] sm:$0xff]  ;;  %v5869_v38 = vpack.c.bf16 %v233_v34, %v232_v33 }
0x17ed   :  { %v3505_v53 = vmul.f32 %v5109_v30, %v3497_v4  ;;  %5111 = vmatmul.mubr.msk.f32.vlgmr.msra.gmra.mrb[38].mxu1 %vm446_vm0, %v6844_v24  ;;  %5113 = vmatmul.mubr.msk.f32.vlgmr.msra.gmra.mrb[32].mxu0 %vm446_vm0, %v6844_v24  ;;  %v155_v30 = vld [vmem:[%s7970_s11 + $0x168] sm:$0xff]  ;;  %v5825_v59 = vpack.c.bf16 %v195_v55, %v194_v44  ;;  %v204_v44 = vld [vmem:[%s7972_s13 + $0xe0] sm:$0xff] }
0x17ee   :  { %5776 = vmatpush1.bf16.msra.mxu1 %v5775_v42  ;;  %5784 = vmatpush1.bf16.msra.mxu0 %v5783_v43  ;;  %v5809_v41 = vpack.c.bf16 %v171_v31, %v155_v30  ;;  %v193_v42 = vld [vmem:[%s7972_s13 + $0x88] sm:$0xff]  ;;  %v224_v43 = vld [vmem:[%s7972_s13 + $0x180] sm:$0xff] }
0x17ef   :  { %v6875_v40 = vadd.f32 %v5110_v36, %v3505_v53  ;;  %3672 = vmatprep.mubr.f32.mxu1 %v6231_v50  ;;  %3749 = vmatprep.mubr.f32.mxu0 %v6231_v50  ;;  %v154_v36 = vld [vmem:[%s7970_s11 + $0x160] sm:$0xff]  ;;  %v209_v53 = vld [vmem:[%s7972_s13 + $0x108] sm:$0xff] }
0x17f0   :  { %5778 = vmatprep.subr.bf16.mxu1 %v5777_v49  ;;  %5786 = vmatprep.subr.bf16.mxu0 %v5785_v48  ;;  %v5811_v4 = vpack.c.bf16 %v170_v37, %v154_v36  ;;  %v5821_v49 = vpack.c.bf16 %v193_v42, %v192_v8  ;;  %v5853_v48 = vpack.c.bf16 %v225_v45, %v224_v43  ;;  %v200_v30 = vld [vmem:[%s7972_s13 + $0xc0] sm:$0xff]  ;;  %v201_v31 = vld [vmem:[%s7972_s13 + $0xc8] sm:$0xff]  ;;  %v202_v8 = vld [vmem:[%s7972_s13 + $0xd0] sm:$0xff] }
0x17f1   :  { %5112 = vmatmul.mubr.msk.f32.gmra.mrb[40].mxu1 %vm446_vm0, %v6875_v40  ;;  %5114 = vmatmul.mubr.msk.f32.gmra.mrb[34].mxu0 %vm446_vm0, %v6875_v40  ;;  %v5855_v61 = vpack.c.bf16 %v209_v53, %v208_v52  ;;  %v184_v36 = vld [vmem:[%s7972_s13 + $0x40] sm:$0xff]  ;;  %v185_v37 = vld [vmem:[%s7972_s13 + $0x48] sm:$0xff]  ;;  %v5837_v54 = vpack.c.bf16 %v201_v31, %v200_v30  ;;  %v203_v42 = vld [vmem:[%s7972_s13 + $0xd8] sm:$0xff]  ;;  %v3530_v30 = vsub.s32 3, %v6400_v11 }
0x17f2   :  { %5780 = vmatpush1.bf16.msra.mxu1 %v5779_v39  ;;  %5788 = vmatpush1.bf16.msra.mxu0 %v5787_v18  ;;  %v227_v39 = vld [vmem:[%s7972_s13 + $0x198] sm:$0xff]  ;;  %v5823_v18 = vpack.c.bf16 %v177_v51, %v176_v47  ;;  %v234_v43 = vld [vmem:[%s7972_s13 + $0x1d0] sm:$0xff]  ;;  %v205_v55 = vld [vmem:[%s7972_s13 + $0xe8] sm:$0xff] }
0x17f3   :  { %3820 = vmatprep.mubr.f32.mxu1 %v6231_v50  ;;  %3897 = vmatprep.mubr.f32.mxu0 %v6231_v50  ;;  %v235_v45 = vld [vmem:[%s7972_s13 + $0x1d8] sm:$0xff]  ;;  %v186_v47 = vld [vmem:[%s7972_s13 + $0x50] sm:$0xff] }
0x17f4   :  { %5790 = vmatprep.subr.bf16.mxu1 %v5789_v60  ;;  %5798 = vmatprep.subr.bf16.mxu0 %v5797_v62  ;;  %v5857_v60 = vpack.c.bf16 %v227_v39, %v226_v56  ;;  %v210_v62 = vld [vmem:[%s7972_s13 + $0x110] sm:$0xff]  ;;  %v187_v51 = vld [vmem:[%s7972_s13 + $0x58] sm:$0xff]  ;;  %v236_v56 = vld [vmem:[%s7972_s13 + $0x1e0] sm:$0xff] }
0x17f5   :  { %5115 = vmatmul.mubr.msk.f32.vlgmr.msra.gmra.mrb[42].mxu1 %vm446_vm0, %v6844_v24  ;;  %5117 = vmatmul.mubr.msk.f32.vlgmr.msra.gmra.mrb[36].mxu0 %vm446_vm0, %v6844_v24  ;;  %v5859_v9 = vpack.c.bf16 %v211_v63, %v210_v62  ;;  %v218_v52 = vld [vmem:[%s7972_s13 + $0x150] sm:$0xff]  ;;  %v219_v53 = vld [vmem:[%s7972_s13 + $0x158] sm:$0xff]  ;;  %v237_v39 = vld [vmem:[%s7972_s13 + $0x1e8] sm:$0xff] }
0x17f6   :  { %5792 = vmatpush1.bf16.msra.mxu1 %v5791_v5  ;;  %5800 = vmatpush1.bf16.msra.mxu0 %v5799_v7  ;;  %v229_v5 = vld [vmem:[%s7972_s13 + $0x1a8] sm:$0xff]  ;;  %v5827_v7 = vpack.c.bf16 %v179_v58, %v178_v57  ;;  %v188_v57 = vld [vmem:[%s7972_s13 + $0x60] sm:$0xff]  ;;  %v5845_v58 = vpack.c.bf16 %v205_v55, %v204_v44 }
0x17f7   :  { %3826 = vmatprep.mubr.f32.mxu1 %v6231_v50  ;;  %3903 = vmatprep.mubr.f32.mxu0 %v6231_v50  ;;  %v220_v62 = vld [vmem:[%s7972_s13 + $0x160] sm:$0xff]  ;;  %v221_v63 = vld [vmem:[%s7972_s13 + $0x168] sm:$0xff] }
0x17f8   :  { %5794 = vmatprep.subr.bf16.mxu1 %v5793_v14  ;;  %5802 = vmatprep.subr.bf16.mxu0 %v5801_v15  ;;  %v5861_v14 = vpack.c.bf16 %v229_v5, %v228_v3  ;;  %v213_v15 = vld [vmem:[%s7972_s13 + $0x128] sm:$0xff]  ;;  %v5879_v2 = vpack.c.bf16 %v221_v63, %v220_v62  ;;  %v206_v3 = vld [vmem:[%s7972_s13 + $0xf0] sm:$0xff]  ;;  %v207_v5 = vld [vmem:[%s7972_s13 + $0xf8] sm:$0xff] }
0x17f9   :  { %5116 = vmatmul.mubr.msk.f32.gmra.mrb[44].mxu1 %vm446_vm0, %v6875_v40  ;;  %5118 = vmatmul.mubr.msk.f32.gmra.mrb[38].mxu0 %vm446_vm0, %v6875_v40  ;;  %v274_v62 = vld [vmem:[%s7972_s13 + $0x310] sm:$0xff] }
0x17fa   :  { %5796 = vmatpush1.bf16.msra.mxu1 %v5795_v21  ;;  %5804 = vmatpush1.bf16.msra.mxu0 %v5803_v22  ;;  %v5831_v21 = vpack.c.bf16 %v181_v12, %v180_v10  ;;  %v239_v10 = vld [vmem:[%s7972_s13 + $0x1f8] sm:$0xff]  ;;  %v190_v12 = vld [vmem:[%s7972_s13 + $0x70] sm:$0xff] }
0x17fb   :  { %3974 = vmatprep.mubr.f32.mxu1 %v6231_v50  ;;  %4051 = vmatprep.mubr.f32.mxu0 %v6231_v50 }
0x17fc   :  { %5806 = vmatprep.subr.bf16.mxu1 %v5805_v28  ;;  %5814 = vmatprep.subr.bf16.mxu0 %v5813_v29  ;;  %v214_v28 = vld [vmem:[%s7972_s13 + $0x130] sm:$0xff]  ;;  %v215_v29 = vld [vmem:[%s7972_s13 + $0x138] sm:$0xff] }
0x17fd   :  { %5119 = vmatmul.mubr.msk.f32.vlgmr.msra.gmra.mrb[46].mxu1 %vm446_vm0, %v6844_v24  ;;  %5121 = vmatmul.mubr.msk.f32.vlgmr.msra.gmra.mrb[40].mxu0 %vm446_vm0, %v6844_v24 }
0x17fe   :  { %5808 = vmatpush1.bf16.msra.mxu1 %v5807_v35  ;;  %5816 = vmatpush1.bf16.msra.mxu0 %v5815_v32  ;;  %v5835_v35 = vpack.c.bf16 %v183_v26, %v182_v23  ;;  %v5867_v32 = vpack.c.bf16 %v215_v29, %v214_v28  ;;  %v289_v23 = vld [vmem:[%s7972_s13 + $0x388] sm:$0xff]  ;;  %v7211_v28 = vld [vmem:[%s7971_s12] sm:$0xff]  ;;  %v7214_v29 = vsub.s32 1, %v6400_v11 }
0x17ff   :  { %3980 = vmatprep.mubr.f32.mxu1 %v6231_v50  ;;  %4057 = vmatprep.mubr.f32.mxu0 %v6231_v50 }
0x1800   :  { %5810 = vmatprep.subr.bf16.mxu1 %v5809_v41  ;;  %5818 = vmatprep.subr.bf16.mxu0 %v5817_v1  ;;  %v216_v41 = vld [vmem:[%s7972_s13 + $0x140] sm:$0xff]  ;;  %v217_v1 = vld [vmem:[%s7972_s13 + $0x148] sm:$0xff]  ;;  %v3523_v34 = vrot.slane %v7211_v28, %v7214_v29 }
0x1801   :  { %5120 = vmatmul.mubr.msk.f32.gmra.mrb[48].mxu1 %vm446_vm0, %v6875_v40  ;;  %5122 = vmatmul.mubr.msk.f32.gmra.mrb[42].mxu0 %vm446_vm0, %v6875_v40 }
0x1802   :  { %5812 = vmatpush1.bf16.msra.mxu1 %v5811_v4  ;;  %5820 = vmatpush1.bf16.msra.mxu0 %v5819_v46  ;;  %v5839_v4 = vpack.c.bf16 %v185_v37, %v184_v36  ;;  %v5871_v46 = vpack.c.bf16 %v217_v1, %v216_v41  ;;  %v241_v36 = vld [vmem:[%s7972_s13 + $0x208] sm:$0xff]  ;;  %v3538_v37 = vsub.s32 5, %v6400_v11  ;;  %v272_v41 = vld [vmem:[%s7972_s13 + $0x300] sm:$0xff] }
0x1803   :  { %4128 = vmatprep.mubr.f32.mxu1 %v6231_v50  ;;  %4205 = vmatprep.mubr.f32.mxu0 %v6231_v50  ;;  %v273_v1 = vld [vmem:[%s7972_s13 + $0x308] sm:$0xff] }
0x1804   :  { %5822 = vmatprep.subr.bf16.mxu1 %v5821_v49  ;;  %5854 = vmatprep.subr.bf16.mxu0 %v5853_v48  ;;  %v5841_v49 = vpack.c.bf16 %v203_v42, %v202_v8  ;;  %v5873_v48 = vpack.c.bf16 %v235_v45, %v234_v43  ;;  %v258_v8 = vld [vmem:[%s7972_s13 + $0x290] sm:$0xff]  ;;  %v5919_v44 = vpack.c.bf16 %v273_v1, %v272_v41  ;;  %v7306_v1 = vld [vmem:[%s7971_s12 + $0x8] sm:$0xff] }
0x1805   :  { %5123 = vmatmul.mubr.msk.f32.vlgmr.msra.gmra.mrb[50].mxu1 %vm446_vm0, %v6844_v24  ;;  %5125 = vmatmul.mubr.msk.f32.vlgmr.msra.gmra.mrb[44].mxu0 %vm446_vm0, %v6844_v24  ;;  %v7256_v55 = vrot.slane %v7211_v28, %v3538_v37 }
0x1806   :  { %4134 = vmatprep.mubr.f32.mxu1 %v6231_v50  ;;  %4211 = vmatprep.mubr.f32.mxu0 %v6231_v50  ;;  %v212_v50 = vld [vmem:[%s7972_s13 + $0x120] sm:$0xff] }
0x1807   :  { %5824 = vmatpush3.bf16.msra.mxu1 %v5823_v18  ;;  %5856 = vmatpush3.bf16.msra.mxu0 %v5855_v61  ;;  %v5863_v22 = vpack.c.bf16 %v213_v15, %v212_v50  ;;  %v5843_v18 = vpack.c.bf16 %v187_v51, %v186_v47  ;;  %v5875_v61 = vpack.c.bf16 %v219_v53, %v218_v52  ;;  %v222_v15 = vld [vmem:[%s7972_s13 + $0x170] sm:$0xff]  ;;  %v291_v51 = vld [vmem:[%s7972_s13 + $0x398] sm:$0xff]  ;;  %v3546_v52 = vsub.s32 7, %v6400_v11 }
0x1808   :  { %5826 = vmatprep.subr.bf16.mxu1 %v5825_v59  ;;  %5858 = vmatprep.subr.bf16.mxu0 %v5857_v60  ;;  %v5877_v59 = vpack.c.bf16 %v237_v39, %v236_v56  ;;  %v189_v60 = vld [vmem:[%s7972_s13 + $0x68] sm:$0xff]  ;;  %v5883_v17 = vpack.c.bf16 %v223_v16, %v222_v15  ;;  %v290_v47 = vld [vmem:[%s7972_s13 + $0x390] sm:$0xff]  ;;  %v292_v15 = vld [vmem:[%s7972_s13 + $0x3a0] sm:$0xff] }
0x1809   :  { %5124 = vmatmul.mubr.msk.f32.gmra.mrb[52].mxu1 %vm446_vm0, %v6875_v40  ;;  %5126 = vmatmul.mubr.msk.f32.gmra.mrb[46].mxu0 %vm446_vm0, %v6875_v40  ;;  %v5847_v0 = vpack.c.bf16 %v189_v60, %v188_v57  ;;  %v242_v56 = vld [vmem:[%s7972_s13 + $0x210] sm:$0xff]  ;;  %v243_v60 = vld [vmem:[%s7972_s13 + $0x218] sm:$0xff]  ;;  %v293_v16 = vld [vmem:[%s7972_s13 + $0x3a8] sm:$0xff] }
0x180a   :  { %v5925_v41 = vpack.c.bf16 %v293_v16, %v292_v15 }
0x180b   :  { %5828 = vmatpush3.bf16.msra.mxu1 %v5827_v7  ;;  %5860 = vmatpush3.bf16.msra.mxu0 %v5859_v9  ;;  %v238_v7 = vld [vmem:[%s7972_s13 + $0x1f0] sm:$0xff]  ;;  %v5849_v9 = vpack.c.bf16 %v207_v5, %v206_v3 }
0x180c   :  { %5830 = vmatprep.subr.bf16.mxu1 %v5829_v13  ;;  %5862 = vmatprep.subr.bf16.mxu0 %v5861_v14  ;;  %v191_v13 = vld [vmem:[%s7972_s13 + $0x78] sm:$0xff]  ;;  %v5881_v14 = vpack.c.bf16 %v239_v10, %v238_v7  ;;  %v260_v10 = vld [vmem:[%s7972_s13 + $0x2a0] sm:$0xff] }
0x180d   :  { %v5851_v50 = vpack.c.bf16 %v191_v13, %v190_v12 }
0x180f   :  { %5832 = vmatpush3.bf16.msra.mxu1 %v5831_v21  ;;  %5864 = vmatpush3.bf16.msra.mxu0 %v5863_v22  ;;  %v288_v21 = vld [vmem:[%s7972_s13 + $0x380] sm:$0xff]  ;;  %v5885_v22 = vpack.c.bf16 %v257_v20, %v256_v19  ;;  %v245_v19 = vld [vmem:[%s7972_s13 + $0x228] sm:$0xff] }
0x1810   :  { %5834 = vmatprep.subr.bf16.mxu1 %v5833_v25  ;;  %5866 = vmatprep.subr.bf16.mxu0 %v5865_v27  ;;  %v5917_v26 = vpack.c.bf16 %v289_v23, %v288_v21  ;;  %v7205_v25 = vsub.s32 0, %v6400_v11  ;;  %v3526_v27 = vsub.s32 2, %v6400_v11 }
0x1812   :  { %v3519_v31 = vrot.slane %v7211_v28, %v7205_v25  ;;  %v3527_v33 = vrot.slane %v7211_v28, %v3526_v27 }
0x1813   :  { %5836 = vmatpush3.bf16.msra.mxu1 %v5835_v35  ;;  %5868 = vmatpush3.bf16.msra.mxu0 %v5867_v32  ;;  %v3531_v35 = vrot.slane %v7211_v28, %v3530_v30  ;;  %v240_v32 = vld [vmem:[%s7972_s13 + $0x200] sm:$0xff] }
0x1814   :  { %5838 = vmatprep.subr.bf16.mxu1 %v5837_v54  ;;  %5870 = vmatprep.subr.bf16.mxu0 %v5869_v38  ;;  %v5887_v53 = vpack.c.bf16 %v241_v36, %v240_v32 }
0x1817   :  { %5840 = vmatpush3.bf16.msra.mxu1 %v5839_v4  ;;  %5872 = vmatpush3.bf16.msra.mxu0 %v5871_v46  ;;  %v259_v46 = vld [vmem:[%s7972_s13 + $0x298] sm:$0xff] }
0x1818   :  { %5842 = vmatprep.subr.bf16.mxu1 %v5841_v49  ;;  %5874 = vmatprep.subr.bf16.mxu0 %v5873_v48 }
0x181b   :  { %5844 = vmatpush3.bf16.msra.mxu1 %v5843_v18  ;;  %5876 = vmatpush3.bf16.msra.mxu0 %v5875_v61 }
0x181c   :  { %5846 = vmatprep.subr.bf16.mxu1 %v5845_v58  ;;  %5878 = vmatprep.subr.bf16.mxu0 %v5877_v59  ;;  %v5889_v58 = vpack.c.bf16 %v259_v46, %v258_v8  ;;  %v5921_v59 = vpack.c.bf16 %v291_v51, %v290_v47  ;;  %v262_v8 = vld [vmem:[%s7972_s13 + $0x2b0] sm:$0xff]  ;;  %v295_v46 = vld [vmem:[%s7972_s13 + $0x3b8] sm:$0xff] }
0x181f   :  { %5848 = vmatpush3.bf16.msra.mxu1 %v5847_v0  ;;  %5880 = vmatpush3.bf16.msra.mxu0 %v5879_v2 }
0x1820   :  { %5850 = vmatprep.subr.bf16.mxu1 %v5849_v9  ;;  %5882 = vmatprep.subr.bf16.mxu0 %v5881_v14  ;;  %v275_v9 = vld [vmem:[%s7972_s13 + $0x318] sm:$0xff]  ;;  %v7276_v14 = vrot.slane %v7211_v28, %v3546_v52 }
0x1823   :  { %5852 = vmatpush3.bf16.msra.mxu1 %v5851_v50  ;;  %5884 = vmatpush3.bf16.msra.mxu0 %v5883_v17  ;;  %v261_v50 = vld [vmem:[%s7972_s13 + $0x2a8] sm:$0xff]  ;;  %v244_v17 = vld [vmem:[%s7972_s13 + $0x220] sm:$0xff] }
0x1824   :  { %5886 = vmatprep.subr.bf16.mxu1 %v5885_v22  ;;  %5918 = vmatprep.subr.bf16.mxu0 %v5917_v26  ;;  %v5891_v26 = vpack.c.bf16 %v243_v60, %v242_v56  ;;  %v246_v56 = vld [vmem:[%s7972_s13 + $0x230] sm:$0xff] }
0x1825   :  { %v278_v60 = vld [vmem:[%s7972_s13 + $0x330] sm:$0xff] }
0x18c0   :  { %v3668_v54 = vpop.f32.mrb[38].mxu1  ;;  %v3745_v38 = vpop.f32.mrb[32].mxu0 }
0x18c1   :  { %v3669_v42 = vadd.f32 %v3668_v54, %v3519_v31  ;;  %v3746_v43 = vadd.f32 %v3745_v38, %v3527_v33  ;;  %v3670_v45 = vpop.f32.mrb[39].mxu1  ;;  %v3747_v4 = vpop.f32.mrb[33].mxu0  ;;  %v5893_v38 = vpack.c.bf16 %v261_v50, %v260_v10  ;;  %v248_v10 = vld [vmem:[%s7972_s13 + $0x240] sm:$0xff] }
0x18c2   :  { %v3671_v49 = vadd.f32 %v3670_v45, %v3523_v34  ;;  %v3748_v48 = vadd.f32 %v3747_v4, %v3531_v35  ;;  %v263_v45 = vld [vmem:[%s7972_s13 + $0x2b8] sm:$0xff]  ;;  %v294_v4 = vld [vmem:[%s7972_s13 + $0x3b0] sm:$0xff] }
0x18c3   :  { %v4218_v63 = vmax.f32 %v3669_v42, 0.0  ;;  %v4220_v0 = vmax.f32 %v3746_v43, 0.0 }
0x18c4   :  { %v4219_v39 = vmax.f32 %v3671_v49, 0.0  ;;  %v4221_v18 = vmax.f32 %v3748_v48, 0.0  ;;  %v3674_v61 = vpop.f32.mrb[40].mxu1  ;;  %v3751_v57 = vpop.f32.mrb[34].mxu0 }
0x18c5   :  { %v3675_v2 = vadd.f32 %v3674_v61, %v3519_v31  ;;  %v3752_v3 = vadd.f32 %v3751_v57, %v3527_v33  ;;  %v3676_v5 = vpop.f32.mrb[41].mxu1  ;;  %v3753_v7 = vpop.f32.mrb[35].mxu0  ;;  %v5923_v31 = vpack.c.bf16 %v275_v9, %v274_v62  ;;  %v276_v33 = vld [vmem:[%s7972_s13 + $0x320] sm:$0xff]  ;;  %v3559_v57 = vrot.slane %v7306_v1, %v3526_v27  ;;  %v279_v62 = vld [vmem:[%s7972_s13 + $0x338] sm:$0xff]  ;;  %v265_v27 = vld [vmem:[%s7972_s13 + $0x2c8] sm:$0xff] }
0x18c6   :  { %v3677_v12 = vadd.f32 %v3676_v5, %v3523_v34  ;;  %v3754_v13 = vadd.f32 %v3753_v7, %v3531_v35  ;;  %4320 = vmatprep.mubr.f32.mxu1 %v4219_v39  ;;  %4395 = vmatprep.mubr.f32.mxu0 %v4221_v18  ;;  %v277_v34 = vld [vmem:[%s7972_s13 + $0x328] sm:$0xff]  ;;  %v247_v39 = vld [vmem:[%s7972_s13 + $0x238] sm:$0xff]  ;;  %v5931_v9 = vpack.c.bf16 %v279_v62, %v278_v60 }
0x18c7   :  { %4321 = vmatmul.mubr.f32.vlgmr.msra.gmra.mrb[54].mxu1 %v4218_v63  ;;  %4396 = vmatmul.mubr.f32.vlgmr.msra.gmra.mrb[48].mxu0 %v4220_v0  ;;  %v4234_v35 = vmax.f32 %v3675_v2, 0.0  ;;  %v4236_v32 = vmax.f32 %v3752_v3, 0.0  ;;  %v264_v63 = vld [vmem:[%s7972_s13 + $0x2c0] sm:$0xff]  ;;  %v297_v2 = vld [vmem:[%s7972_s13 + $0x3c8] sm:$0xff]  ;;  %v5899_v7 = vpack.c.bf16 %v247_v39, %v246_v56 }
0x18c8   :  { %v4235_v20 = vmax.f32 %v3677_v12, 0.0  ;;  %v4237_v21 = vmax.f32 %v3754_v13, 0.0  ;;  %5888 = vmatpush3.bf16.msra.mxu1 %v5887_v53  ;;  %5920 = vmatpush3.bf16.msra.mxu0 %v5919_v44  ;;  %v7293_v22 = vpop.f32.mrb[42].mxu1  ;;  %v7295_v23 = vpop.f32.mrb[36].mxu0  ;;  %v5895_v53 = vpack.c.bf16 %v245_v19, %v244_v17  ;;  %v5927_v44 = vpack.c.bf16 %v277_v34, %v276_v33  ;;  %v296_v0 = vld [vmem:[%s7972_s13 + $0x3c0] sm:$0xff]  ;;  %v249_v12 = vld [vmem:[%s7972_s13 + $0x248] sm:$0xff] }
0x18c9   :  { %v3824_v36 = vpop.f32.mrb[43].mxu1  ;;  %v3901_v54 = vpop.f32.mrb[37].mxu0  ;;  %5890 = vmatprep.subr.bf16.mxu1 %v5889_v58  ;;  %5922 = vmatprep.subr.bf16.mxu0 %v5921_v59  ;;  %v5897_v58 = vpack.c.bf16 %v263_v45, %v262_v8  ;;  %v5929_v59 = vpack.c.bf16 %v295_v46, %v294_v4  ;;  %v5901_v16 = vpack.c.bf16 %v265_v27, %v264_v63  ;;  %v280_v19 = vld [vmem:[%s7972_s13 + $0x340] sm:$0xff]  ;;  %v267_v33 = vld [vmem:[%s7972_s13 + $0x2d8] sm:$0xff]  ;;  %v298_v34 = vld [vmem:[%s7972_s13 + $0x3d0] sm:$0xff] }
0x18ca   :  { %v3825_v42 = vadd.f32 %v3824_v36, %v7256_v55  ;;  %v3902_v43 = vadd.f32 %v3901_v54, %v7276_v14  ;;  %4325 = vmatprep.mubr.f32.mxu1 %v4235_v20  ;;  %4400 = vmatprep.mubr.f32.mxu0 %v4237_v21  ;;  %v5933_v17 = vpack.c.bf16 %v297_v2, %v296_v0  ;;  %v281_v20 = vld [vmem:[%s7972_s13 + $0x348] sm:$0xff]  ;;  %v266_v21 = vld [vmem:[%s7972_s13 + $0x2d0] sm:$0xff]  ;;  %v268_v56 = vld [vmem:[%s7972_s13 + $0x2e0] sm:$0xff] }
0x18cb   :  { %4326 = vmatmul.mubr.f32.gmra.mrb[56].mxu1 %v4234_v35  ;;  %4401 = vmatmul.mubr.f32.gmra.mrb[50].mxu0 %v4236_v32  ;;  %v299_v35 = vld [vmem:[%s7972_s13 + $0x3d8] sm:$0xff]  ;;  %v5903_v32 = vpack.c.bf16 %v249_v12, %v248_v10  ;;  %v282_v45 = vld [vmem:[%s7972_s13 + $0x350] sm:$0xff]  ;;  %v269_v39 = vld [vmem:[%s7972_s13 + $0x2e8] sm:$0xff] }
0x18cc   :  { %v4223_v47 = vmax.f32 %v3825_v42, 0.0  ;;  %v4225_v51 = vmax.f32 %v3902_v43, 0.0  ;;  %5892 = vmatpush3.bf16.msra.mxu1 %v5891_v26  ;;  %5924 = vmatpush3.bf16.msra.mxu0 %v5923_v31  ;;  %v7322_v49 = vpop.f32.mrb[44].mxu1  ;;  %v7324_v48 = vpop.f32.mrb[38].mxu0  ;;  %v3534_v26 = vsub.s32 4, %v6400_v11  ;;  %v3542_v31 = vsub.s32 6, %v6400_v11 }
0x18cd   :  { %v7332_v18 = vpop.f32.mrb[45].mxu1  ;;  %v7334_v61 = vpop.f32.mrb[39].mxu0  ;;  %5894 = vmatprep.subr.bf16.mxu1 %v5893_v38  ;;  %5926 = vmatprep.subr.bf16.mxu0 %v5925_v41  ;;  %v5935_v38 = vpack.c.bf16 %v281_v20, %v280_v19  ;;  %v250_v42 = vld [vmem:[%s7972_s13 + $0x250] sm:$0xff]  ;;  %v251_v43 = vld [vmem:[%s7972_s13 + $0x258] sm:$0xff]  ;;  %v301_v60 = vld [vmem:[%s7972_s13 + $0x3e8] sm:$0xff]  ;;  %v5909_v2 = vpack.c.bf16 %v269_v39, %v268_v56 }
0x18ce   :  { %4470 = vmatprep.mubr.f32.mxu1 %v4223_v47  ;;  %4545 = vmatprep.mubr.f32.mxu0 %v4225_v51  ;;  %v3567_v41 = vrot.slane %v7306_v1, %v3534_v26  ;;  %v3575_v8 = vrot.slane %v7306_v1, %v3542_v31  ;;  %v5905_v51 = vpack.c.bf16 %v267_v33, %v266_v21  ;;  %v270_v19 = vld [vmem:[%s7972_s13 + $0x2f0] sm:$0xff]  ;;  %v271_v20 = vld [vmem:[%s7972_s13 + $0x2f8] sm:$0xff] }
0x18cf   :  { %v5907_v27 = vpack.c.bf16 %v251_v43, %v250_v42 }
0x18d0   :  { %5896 = vmatpush3.bf16.msra.mxu1 %v5895_v53  ;;  %5928 = vmatpush3.bf16.msra.mxu0 %v5927_v44  ;;  %v7357_v3 = vpop.f32.mrb[46].mxu1  ;;  %v4053_v5 = vpop.f32.mrb[40].mxu0  ;;  %v5937_v53 = vpack.c.bf16 %v299_v35, %v298_v34  ;;  %v283_v44 = vld [vmem:[%s7972_s13 + $0x358] sm:$0xff]  ;;  %v302_v34 = vld [vmem:[%s7972_s13 + $0x3f0] sm:$0xff] }
0x18d1   :  { %v7365_v13 = vadd.f32 %v4053_v5, %v3559_v57  ;;  %v7367_v50 = vpop.f32.mrb[47].mxu1  ;;  %v7369_v15 = vpop.f32.mrb[41].mxu0  ;;  %5898 = vmatprep.subr.bf16.mxu1 %v5897_v58  ;;  %5930 = vmatprep.subr.bf16.mxu0 %v5929_v59  ;;  %v3579_v58 = vrot.slane %v7306_v1, %v3546_v52  ;;  %v300_v59 = vld [vmem:[%s7972_s13 + $0x3e0] sm:$0xff]  ;;  %v5939_v0 = vpack.c.bf16 %v283_v44, %v282_v45  ;;  %v253_v52 = vld [vmem:[%s7972_s13 + $0x268] sm:$0xff]  ;;  %v303_v35 = vld [vmem:[%s7972_s13 + $0x3f8] sm:$0xff] }
0x18d2   :  { %v284_v5 = vld [vmem:[%s7972_s13 + $0x360] sm:$0xff]  ;;  %v255_v44 = vld [vmem:[%s7972_s13 + $0x278] sm:$0xff] }
0x18d4   :  { %5900 = vmatpush3.bf16.msra.mxu1 %v5899_v7  ;;  %5932 = vmatpush3.bf16.msra.mxu0 %v5931_v9  ;;  %v7391_v36 = vpop.f32.mrb[48].mxu1  ;;  %v4059_v54 = vpop.f32.mrb[42].mxu0 }
0x18d5   :  { %v7404_v4 = vadd.f32 %v4059_v54, %v3559_v57  ;;  %v7406_v46 = vpop.f32.mrb[49].mxu1  ;;  %v7408_v47 = vpop.f32.mrb[43].mxu0  ;;  %5902 = vmatprep.subr.bf16.mxu1 %v5901_v16  ;;  %5934 = vmatprep.subr.bf16.mxu0 %v5933_v17  ;;  %v3571_v57 = vrot.slane %v7306_v1, %v3538_v37  ;;  %v252_v37 = vld [vmem:[%s7972_s13 + $0x260] sm:$0xff]  ;;  %v5941_v16 = vpack.c.bf16 %v301_v60, %v300_v59  ;;  %v285_v17 = vld [vmem:[%s7972_s13 + $0x368] sm:$0xff]  ;;  %v287_v60 = vld [vmem:[%s7972_s13 + $0x378] sm:$0xff] }
0x18d6   :  { %v3543_v54 = vrot.slane %v7211_v28, %v3542_v31  ;;  %v5911_v43 = vpack.c.bf16 %v253_v52, %v252_v37  ;;  %v5943_v45 = vpack.c.bf16 %v285_v17, %v284_v5  ;;  %v5945_v59 = vpack.c.bf16 %v303_v35, %v302_v34  ;;  %v305_v37 = vld [vmem:[%s7972_s13 + $0x408] sm:$0xff]  ;;  %v336_v5 = vld [vmem:[%s7972_s13 + $0x500] sm:$0xff]  ;;  %v354_v34 = vld [vmem:[%s7972_s13 + $0x590] sm:$0xff] }
0x18d7   :  { %v355_v35 = vld [vmem:[%s7972_s13 + $0x598] sm:$0xff] }
0x18d8   :  { %5904 = vmatpush3.bf16.msra.mxu1 %v5903_v32  ;;  %5936 = vmatpush3.bf16.msra.mxu0 %v5935_v38  ;;  %v4130_v62 = vpop.f32.mrb[50].mxu1  ;;  %v4207_v63 = vpop.f32.mrb[44].mxu0  ;;  %v3535_v32 = vrot.slane %v7211_v28, %v3534_v26  ;;  %v286_v26 = vld [vmem:[%s7972_s13 + $0x370] sm:$0xff]  ;;  %v3900_v17 = vadd.f32 %v7295_v23, %v3543_v54  ;;  %v3908_v23 = vadd.f32 %v7334_v61, %v7276_v14 }
0x18d9   :  { %v7440_v7 = vadd.f32 %v4130_v62, %v3567_v41  ;;  %v7442_v9 = vadd.f32 %v4207_v63, %v3575_v8  ;;  %v4132_v10 = vpop.f32.mrb[51].mxu1  ;;  %v4209_v12 = vpop.f32.mrb[45].mxu0  ;;  %5906 = vmatprep.subr.bf16.mxu1 %v5905_v51  ;;  %5938 = vmatprep.subr.bf16.mxu0 %v5937_v53  ;;  %v5913_v51 = vpack.c.bf16 %v271_v20, %v270_v19  ;;  %v254_v53 = vld [vmem:[%s7972_s13 + $0x270] sm:$0xff]  ;;  %v320_v62 = vld [vmem:[%s7972_s13 + $0x480] sm:$0xff]  ;;  %v323_v20 = vld [vmem:[%s7972_s13 + $0x498] sm:$0xff] }
0x18da   :  { %v7453_v21 = vadd.f32 %v4132_v10, %v3571_v57  ;;  %v7455_v33 = vadd.f32 %v4209_v12, %v3579_v58  ;;  %v337_v10 = vld [vmem:[%s7972_s13 + $0x508] sm:$0xff]  ;;  %v322_v12 = vld [vmem:[%s7972_s13 + $0x490] sm:$0xff]  ;;  %v3906_v14 = vadd.f32 %v7324_v48, %v3543_v54  ;;  %v324_v54 = vld [vmem:[%s7972_s13 + $0x4a0] sm:$0xff] }
0x18db   :  { %v306_v61 = vld [vmem:[%s7972_s13 + $0x410] sm:$0xff] }
0x18dc   :  { %5908 = vmatpush3.bf16.msra.mxu1 %v5907_v27  ;;  %5940 = vmatpush3.bf16.msra.mxu0 %v5939_v0  ;;  %v4136_v38 = vpop.f32.mrb[52].mxu1  ;;  %v4213_v42 = vpop.f32.mrb[46].mxu0  ;;  %v352_v27 = vld [vmem:[%s7972_s13 + $0x580] sm:$0xff]  ;;  %v353_v0 = vld [vmem:[%s7972_s13 + $0x588] sm:$0xff]  ;;  %v338_v48 = vld [vmem:[%s7972_s13 + $0x510] sm:$0xff] }
0x18dd   :  { %v7474_v28 = vadd.f32 %v4136_v38, %v3567_v41  ;;  %v7476_v31 = vadd.f32 %v4213_v42, %v3575_v8  ;;  %v4138_v56 = vpop.f32.mrb[53].mxu1  ;;  %v4215_v39 = vpop.f32.mrb[47].mxu0  ;;  %5910 = vmatprep.subr.bf16.mxu1 %v5909_v2  ;;  %5942 = vmatprep.subr.bf16.mxu0 %v5941_v16  ;;  %v321_v41 = vld [vmem:[%s7972_s13 + $0x488] sm:$0xff]  ;;  %v304_v2 = vld [vmem:[%s7972_s13 + $0x400] sm:$0xff]  ;;  %v3823_v16 = vadd.f32 %v7293_v22, %v3535_v32 }
0x18de   :  { %v7487_v63 = vadd.f32 %v4138_v56, %v3571_v57  ;;  %v7489_v8 = vadd.f32 %v4215_v39, %v3579_v58  ;;  %v5915_v57 = vpack.c.bf16 %v255_v44, %v254_v53  ;;  %v5947_v58 = vpack.c.bf16 %v287_v60, %v286_v26 }
0x18df   :  { %v5949_v52 = vpack.c.bf16 %v321_v41, %v320_v62  ;;  %v5981_v19 = vpack.c.bf16 %v353_v0, %v352_v27  ;;  %v3831_v22 = vadd.f32 %v7332_v18, %v7256_v55  ;;  %v7529_v38 = vrot.slane %v7306_v1, %v7214_v29  ;;  %v308_v0 = vld [vmem:[%s7972_s13 + $0x420] sm:$0xff] }
0x18e0   :  { %5912 = vmatpush3.bf16.msra.mxu1 %v5911_v43  ;;  %5944 = vmatpush3.bf16.msra.mxu0 %v5943_v45  ;;  %v7534_v42 = vrot.slane %v7306_v1, %v3530_v30  ;;  %v5951_v43 = vpack.c.bf16 %v305_v37, %v304_v2  ;;  %v5983_v45 = vpack.c.bf16 %v337_v10, %v336_v5  ;;  %v4222_v44 = vmax.f32 %v3823_v16, 0.0  ;;  %v307_v30 = vld [vmem:[%s7972_s13 + $0x418] sm:$0xff]  ;;  %v309_v2 = vld [vmem:[%s7972_s13 + $0x428] sm:$0xff]  ;;  %v340_v5 = vld [vmem:[%s7972_s13 + $0x520] sm:$0xff] }
0x18e1   :  { %5914 = vmatprep.subr.bf16.mxu1 %v5913_v51  ;;  %5946 = vmatprep.subr.bf16.mxu0 %v5945_v59  ;;  %v5953_v51 = vpack.c.bf16 %v323_v20, %v322_v12  ;;  %v5985_v53 = vpack.c.bf16 %v355_v35, %v354_v34  ;;  %v4224_v55 = vmax.f32 %v3900_v17, 0.0  ;;  %v3829_v18 = vadd.f32 %v7322_v49, %v3535_v32  ;;  %v339_v32 = vld [vmem:[%s7972_s13 + $0x518] sm:$0xff]  ;;  %v357_v59 = vld [vmem:[%s7972_s13 + $0x5a8] sm:$0xff]  ;;  %v326_v12 = vld [vmem:[%s7972_s13 + $0x4b0] sm:$0xff] }
0x18e2   :  { %v4239_v26 = vmax.f32 %v3831_v22, 0.0  ;;  %v4241_v56 = vmax.f32 %v3908_v23, 0.0  ;;  %v3979_v39 = vadd.f32 %v7367_v50, %v7529_v38  ;;  %v4056_v49 = vadd.f32 %v7369_v15, %v7534_v42  ;;  %v325_v50 = vld [vmem:[%s7972_s13 + $0x4a8] sm:$0xff]  ;;  %v356_v15 = vld [vmem:[%s7972_s13 + $0x5a0] sm:$0xff]  ;;  %v327_v16 = vld [vmem:[%s7972_s13 + $0x4b8] sm:$0xff] }
0x18e3   :  { %v4238_v60 = vmax.f32 %v3829_v18, 0.0  ;;  %v4240_v62 = vmax.f32 %v3906_v14, 0.0  ;;  %v5955_v41 = vpack.c.bf16 %v307_v30, %v306_v61  ;;  %v5987_v27 = vpack.c.bf16 %v339_v32, %v338_v48  ;;  %v341_v10 = vld [vmem:[%s7972_s13 + $0x528] sm:$0xff]  ;;  %v358_v17 = vld [vmem:[%s7972_s13 + $0x5b0] sm:$0xff]  ;;  %v311_v22 = vld [vmem:[%s7972_s13 + $0x438] sm:$0xff] }
0x18e4   :  { %5916 = vmatpush3.bf16.msra.mxu1 %v5915_v57  ;;  %5948 = vmatpush3.bf16.msra.mxu0 %v5947_v58  ;;  %v4227_v37 = vmax.f32 %v3979_v39, 0.0  ;;  %v4229_v57 = vmax.f32 %v4056_v49, 0.0  ;;  %v5957_v58 = vpack.c.bf16 %v325_v50, %v324_v54  ;;  %v5959_v20 = vpack.c.bf16 %v309_v2, %v308_v0  ;;  %v310_v35 = vld [vmem:[%s7972_s13 + $0x430] sm:$0xff]  ;;  %v361_v18 = vld [vmem:[%s7972_s13 + $0x5c8] sm:$0xff]  ;;  %v312_v30 = vld [vmem:[%s7972_s13 + $0x440] sm:$0xff] }
0x18e5   :  { %5950 = vmatprep.subr.bf16.mxu1 %v5949_v52  ;;  %5982 = vmatprep.subr.bf16.mxu0 %v5981_v19  ;;  %v5989_v52 = vpack.c.bf16 %v357_v59, %v356_v15  ;;  %v359_v19 = vld [vmem:[%s7972_s13 + $0x5b8] sm:$0xff]  ;;  %v5991_v34 = vpack.c.bf16 %v341_v10, %v340_v5  ;;  %v5961_v23 = vpack.c.bf16 %v327_v16, %v326_v12  ;;  %v344_v49 = vld [vmem:[%s7972_s13 + $0x540] sm:$0xff]  ;;  %v345_v48 = vld [vmem:[%s7972_s13 + $0x548] sm:$0xff] }
0x18e6   :  { %v5963_v14 = vpack.c.bf16 %v311_v22, %v310_v35  ;;  %v330_v32 = vld [vmem:[%s7972_s13 + $0x4d0] sm:$0xff]  ;;  %v331_v54 = vld [vmem:[%s7972_s13 + $0x4d8] sm:$0xff]  ;;  %v365_v5 = vld [vmem:[%s7972_s13 + $0x5e8] sm:$0xff] }
0x18e7   :  { %4471 = vmatmul.mubr.f32.vlgmr.msra.gmra.mrb[58].mxu1 %v4222_v44  ;;  %4546 = vmatmul.mubr.f32.vlgmr.msra.gmra.mrb[52].mxu0 %v4224_v55  ;;  %v329_v44 = vld [vmem:[%s7972_s13 + $0x4c8] sm:$0xff]  ;;  %v360_v55 = vld [vmem:[%s7972_s13 + $0x5c0] sm:$0xff]  ;;  %v362_v50 = vld [vmem:[%s7972_s13 + $0x5d0] sm:$0xff] }
0x18e8   :  { %4475 = vmatprep.mubr.f32.mxu1 %v4239_v26  ;;  %4550 = vmatprep.mubr.f32.mxu0 %v4241_v56  ;;  %v313_v26 = vld [vmem:[%s7972_s13 + $0x448] sm:$0xff]  ;;  %v5997_v39 = vpack.c.bf16 %v361_v18, %v360_v55  ;;  %v363_v15 = vld [vmem:[%s7972_s13 + $0x5d8] sm:$0xff]  ;;  %v346_v2 = vld [vmem:[%s7972_s13 + $0x550] sm:$0xff]  ;;  %v3551_v18 = vrot.slane %v7306_v1, %v7205_v25 }
0x18e9   :  { %5952 = vmatpush3.bf16.msra.mxu1 %v5951_v43  ;;  %5984 = vmatpush3.bf16.msra.mxu0 %v5983_v45  ;;  %v5993_v43 = vpack.c.bf16 %v359_v19, %v358_v17  ;;  %v342_v45 = vld [vmem:[%s7972_s13 + $0x530] sm:$0xff]  ;;  %v5967_v59 = vpack.c.bf16 %v313_v26, %v312_v30  ;;  %v6001_v0 = vpack.c.bf16 %v363_v15, %v362_v50  ;;  %v316_v16 = vld [vmem:[%s7972_s13 + $0x460] sm:$0xff]  ;;  %v317_v17 = vld [vmem:[%s7972_s13 + $0x468] sm:$0xff] }
0x18ea   :  { %5954 = vmatprep.subr.bf16.mxu1 %v5953_v51  ;;  %5986 = vmatprep.subr.bf16.mxu0 %v5985_v53  ;;  %v343_v51 = vld [vmem:[%s7972_s13 + $0x538] sm:$0xff]  ;;  %v328_v53 = vld [vmem:[%s7972_s13 + $0x4c0] sm:$0xff]  ;;  %v349_v35 = vld [vmem:[%s7972_s13 + $0x568] sm:$0xff] }
0x18eb   :  { %4476 = vmatmul.mubr.f32.gmra.mrb[60].mxu1 %v4238_v60  ;;  %4551 = vmatmul.mubr.f32.gmra.mrb[54].mxu0 %v4240_v62  ;;  %v5995_v61 = vpack.c.bf16 %v343_v51, %v342_v45  ;;  %v5965_v56 = vpack.c.bf16 %v329_v44, %v328_v53  ;;  %v5999_v60 = vpack.c.bf16 %v345_v48, %v344_v49  ;;  %v314_v62 = vld [vmem:[%s7972_s13 + $0x450] sm:$0xff]  ;;  %v367_v45 = vld [vmem:[%s7972_s13 + $0x5f8] sm:$0xff]  ;;  %v385_v1 = vld [vmem:[%s7972_s13 + $0x688] sm:$0xff] }
0x18ec   :  { %4620 = vmatprep.mubr.f32.mxu1 %v4227_v37  ;;  %4695 = vmatprep.mubr.f32.mxu0 %v4229_v57  ;;  %v347_v37 = vld [vmem:[%s7972_s13 + $0x558] sm:$0xff]  ;;  %v332_v57 = vld [vmem:[%s7972_s13 + $0x4e0] sm:$0xff]  ;;  %v334_v22 = vld [vmem:[%s7972_s13 + $0x4f0] sm:$0xff]  ;;  %v5975_v51 = vpack.c.bf16 %v317_v17, %v316_v16 }
0x18ed   :  { %5956 = vmatpush3.bf16.msra.mxu1 %v5955_v41  ;;  %5988 = vmatpush3.bf16.msra.mxu0 %v5987_v27  ;;  %v315_v41 = vld [vmem:[%s7972_s13 + $0x458] sm:$0xff]  ;;  %v5969_v27 = vpack.c.bf16 %v331_v54, %v330_v32  ;;  %v6003_v12 = vpack.c.bf16 %v347_v37, %v346_v2  ;;  %v318_v44 = vld [vmem:[%s7972_s13 + $0x470] sm:$0xff]  ;;  %v417_v49 = vld [vmem:[%s7972_s13 + $0x788] sm:$0xff]  ;;  %v3977_v54 = vadd.f32 %v7357_v3, %v3551_v18  ;;  %v4228_v37 = vmax.f32 %v7365_v13, 0.0 }
0x18ee   :  { %5958 = vmatprep.subr.bf16.mxu1 %v5957_v58  ;;  %5990 = vmatprep.subr.bf16.mxu0 %v5989_v52  ;;  %v333_v58 = vld [vmem:[%s7972_s13 + $0x4e8] sm:$0xff]  ;;  %v364_v52 = vld [vmem:[%s7972_s13 + $0x5e0] sm:$0xff]  ;;  %v5971_v10 = vpack.c.bf16 %v315_v41, %v314_v62  ;;  %v319_v55 = vld [vmem:[%s7972_s13 + $0x478] sm:$0xff]  ;;  %v3985_v62 = vadd.f32 %v7406_v46, %v7529_v38  ;;  %v4062_v41 = vadd.f32 %v7408_v47, %v7534_v42 }
0x18ef   :  { %v5973_v19 = vpack.c.bf16 %v333_v58, %v332_v57  ;;  %v350_v30 = vld [vmem:[%s7972_s13 + $0x570] sm:$0xff]  ;;  %v351_v26 = vld [vmem:[%s7972_s13 + $0x578] sm:$0xff]  ;;  %v5979_v48 = vpack.c.bf16 %v319_v55, %v318_v44  ;;  %v400_v3 = vld [vmem:[%s7972_s13 + $0x700] sm:$0xff]  ;;  %v4226_v42 = vmax.f32 %v3977_v54, 0.0  ;;  %v3983_v57 = vadd.f32 %v7391_v36, %v3551_v18 }
0x18f0   :  { %v6011_v32 = vpack.c.bf16 %v351_v26, %v350_v30  ;;  %v387_v2 = vld [vmem:[%s7972_s13 + $0x698] sm:$0xff]  ;;  %v418_v46 = vld [vmem:[%s7972_s13 + $0x790] sm:$0xff]  ;;  %v4231_v44 = vmax.f32 %v7453_v21, 0.0  ;;  %v4233_v55 = vmax.f32 %v7455_v33, 0.0 }
0x18f1   :  { %5960 = vmatpush3.bf16.msra.mxu1 %v5959_v20  ;;  %5992 = vmatpush3.bf16.msra.mxu0 %v5991_v34  ;;  %v6005_v20 = vpack.c.bf16 %v365_v5, %v364_v52  ;;  %v348_v34 = vld [vmem:[%s7972_s13 + $0x560] sm:$0xff]  ;;  %v419_v47 = vld [vmem:[%s7972_s13 + $0x798] sm:$0xff]  ;;  %v370_v52 = vld [vmem:[%s7972_s13 + $0x610] sm:$0xff] }
0x18f2   :  { %5962 = vmatprep.subr.bf16.mxu1 %v5961_v23  ;;  %5994 = vmatprep.subr.bf16.mxu0 %v5993_v43  ;;  %v335_v23 = vld [vmem:[%s7972_s13 + $0x4f8] sm:$0xff]  ;;  %v366_v43 = vld [vmem:[%s7972_s13 + $0x5f0] sm:$0xff]  ;;  %v6007_v53 = vpack.c.bf16 %v349_v35, %v348_v34  ;;  %v6049_v17 = vpack.c.bf16 %v419_v47, %v418_v46  ;;  %v420_v34 = vld [vmem:[%s7972_s13 + $0x7a0] sm:$0xff] }
0x18f3   :  { %v371_v5 = vld [vmem:[%s7972_s13 + $0x618] sm:$0xff]  ;;  %v402_v13 = vld [vmem:[%s7972_s13 + $0x710] sm:$0xff]  ;;  %v421_v35 = vld [vmem:[%s7972_s13 + $0x7a8] sm:$0xff] }
0x18f4   :  { %v403_v36 = vld [vmem:[%s7972_s13 + $0x718] sm:$0xff]  ;;  %v390_v30 = vld [vmem:[%s7972_s13 + $0x6b0] sm:$0xff]  ;;  %v408_v47 = vld [vmem:[%s7972_s13 + $0x740] sm:$0xff] }
0x18f5   :  { %5964 = vmatpush3.bf16.msra.mxu1 %v5963_v14  ;;  %5996 = vmatpush3.bf16.msra.mxu0 %v5995_v61  ;;  %v5977_v14 = vpack.c.bf16 %v335_v23, %v334_v22  ;;  %v6009_v61 = vpack.c.bf16 %v367_v45, %v366_v43  ;;  %v4242_v22 = vmax.f32 %v3983_v57, 0.0  ;;  %v4244_v23 = vmax.f32 %v7404_v4, 0.0  ;;  %v391_v21 = vld [vmem:[%s7972_s13 + $0x6b8] sm:$0xff]  ;;  %v422_v33 = vld [vmem:[%s7972_s13 + $0x7b0] sm:$0xff] }
0x18f6   :  { %5966 = vmatprep.subr.bf16.mxu1 %v5965_v56  ;;  %5998 = vmatprep.subr.bf16.mxu0 %v5997_v39  ;;  %v384_v56 = vld [vmem:[%s7972_s13 + $0x680] sm:$0xff]  ;;  %v6019_v43 = vpack.c.bf16 %v371_v5, %v370_v52  ;;  %v6051_v45 = vpack.c.bf16 %v403_v36, %v402_v13  ;;  %v6053_v4 = vpack.c.bf16 %v421_v35, %v420_v34  ;;  %v423_v26 = vld [vmem:[%s7972_s13 + $0x7b8] sm:$0xff]  ;;  %v406_v54 = vld [vmem:[%s7972_s13 + $0x730] sm:$0xff] }
0x18f7   :  { %v416_v39 = vld [vmem:[%s7972_s13 + $0x780] sm:$0xff]  ;;  %v6013_v50 = vpack.c.bf16 %v385_v1, %v384_v56  ;;  %v426_v57 = vld [vmem:[%s7972_s13 + $0x7d0] sm:$0xff]  ;;  %v411_v36 = vld [vmem:[%s7972_s13 + $0x758] sm:$0xff] }
0x18f8   :  { %v6045_v15 = vpack.c.bf16 %v417_v49, %v416_v39  ;;  %v374_v39 = vld [vmem:[%s7972_s13 + $0x630] sm:$0xff]  ;;  %v375_v49 = vld [vmem:[%s7972_s13 + $0x638] sm:$0xff]  ;;  %v428_v34 = vld [vmem:[%s7972_s13 + $0x7e0] sm:$0xff] }
0x18f9   :  { %5968 = vmatpush3.bf16.msra.mxu1 %v5967_v59  ;;  %6000 = vmatpush3.bf16.msra.mxu0 %v5999_v60  ;;  %v368_v59 = vld [vmem:[%s7972_s13 + $0x600] sm:$0xff]  ;;  %v369_v60 = vld [vmem:[%s7972_s13 + $0x608] sm:$0xff]  ;;  %v410_v13 = vld [vmem:[%s7972_s13 + $0x750] sm:$0xff] }
0x18fa   :  { %5970 = vmatprep.subr.bf16.mxu1 %v5969_v27  ;;  %6002 = vmatprep.subr.bf16.mxu0 %v6001_v0  ;;  %v401_v27 = vld [vmem:[%s7972_s13 + $0x708] sm:$0xff]  ;;  %v386_v0 = vld [vmem:[%s7972_s13 + $0x690] sm:$0xff]  ;;  %v6015_v38 = vpack.c.bf16 %v369_v60, %v368_v59  ;;  %v424_v60 = vld [vmem:[%s7972_s13 + $0x7c0] sm:$0xff] }
0x18fb   :  { %v6047_v58 = vpack.c.bf16 %v401_v27, %v400_v3  ;;  %v6017_v16 = vpack.c.bf16 %v387_v2, %v386_v0  ;;  %v393_v59 = vld [vmem:[%s7972_s13 + $0x6c8] sm:$0xff]  ;;  %v376_v27 = vld [vmem:[%s7972_s13 + $0x640] sm:$0xff] }
0x18fc   :  { %v377_v0 = vld [vmem:[%s7972_s13 + $0x648] sm:$0xff] }
0x18fd   :  { %5972 = vmatpush3.bf16.msra.mxu1 %v5971_v10  ;;  %6004 = vmatpush3.bf16.msra.mxu0 %v6003_v12  ;;  %v4243_v10 = vmax.f32 %v3985_v62, 0.0  ;;  %v4245_v12 = vmax.f32 %v4062_v41, 0.0  ;;  %v425_v62 = vld [vmem:[%s7972_s13 + $0x7c8] sm:$0xff]  ;;  %v6027_v41 = vpack.c.bf16 %v375_v49, %v374_v39  ;;  %v6031_v52 = vpack.c.bf16 %v377_v0, %v376_v27  ;;  %v414_v39 = vld [vmem:[%s7972_s13 + $0x770] sm:$0xff]  ;;  %v415_v49 = vld [vmem:[%s7972_s13 + $0x778] sm:$0xff] }
0x18fe   :  { %5974 = vmatprep.subr.bf16.mxu1 %v5973_v19  ;;  %6006 = vmatprep.subr.bf16.mxu0 %v6005_v20  ;;  %v388_v19 = vld [vmem:[%s7972_s13 + $0x6a0] sm:$0xff]  ;;  %v389_v20 = vld [vmem:[%s7972_s13 + $0x6a8] sm:$0xff]  ;;  %v6061_v46 = vpack.c.bf16 %v425_v62, %v424_v60  ;;  %v4246_v60 = vmax.f32 %v7474_v28, 0.0  ;;  %v4248_v62 = vmax.f32 %v7476_v31, 0.0 }
0x18ff   :  { %v6021_v18 = vpack.c.bf16 %v389_v20, %v388_v19  ;;  %v396_v19 = vld [vmem:[%s7972_s13 + $0x6e0] sm:$0xff]  ;;  %v397_v20 = vld [vmem:[%s7972_s13 + $0x6e8] sm:$0xff] }
0x1900   :  { %v429_v35 = vld [vmem:[%s7972_s13 + $0x7e8] sm:$0xff] }
0x1901   :  { %5976 = vmatpush3.bf16.msra.mxu1 %v5975_v51  ;;  %6008 = vmatpush3.bf16.msra.mxu0 %v6007_v53  ;;  %v372_v51 = vld [vmem:[%s7972_s13 + $0x620] sm:$0xff]  ;;  %v373_v53 = vld [vmem:[%s7972_s13 + $0x628] sm:$0xff] }
0x1902   :  { %5978 = vmatprep.subr.bf16.mxu1 %v5977_v14  ;;  %6010 = vmatprep.subr.bf16.mxu0 %v6009_v61  ;;  %v404_v14 = vld [vmem:[%s7972_s13 + $0x720] sm:$0xff]  ;;  %v405_v61 = vld [vmem:[%s7972_s13 + $0x728] sm:$0xff]  ;;  %v6023_v56 = vpack.c.bf16 %v373_v53, %v372_v51  ;;  %v6037_v51 = vpack.c.bf16 %v397_v20, %v396_v19  ;;  %v6069_v53 = vpack.c.bf16 %v429_v35, %v428_v34 }
0x1903   :  { %v6055_v1 = vpack.c.bf16 %v405_v61, %v404_v14  ;;  %v430_v14 = vld [vmem:[%s7972_s13 + $0x7f0] sm:$0xff]  ;;  %v431_v61 = vld [vmem:[%s7972_s13 + $0x7f8] sm:$0xff] }
0x1905   :  { %5980 = vmatpush3.bf16.msra.mxu1 %v5979_v48  ;;  %6012 = vmatpush3.bf16.msra.mxu0 %v6011_v32  ;;  %v6025_v48 = vpack.c.bf16 %v391_v21, %v390_v30  ;;  %v6057_v32 = vpack.c.bf16 %v423_v26, %v422_v33  ;;  %v382_v33 = vld [vmem:[%s7972_s13 + $0x670] sm:$0xff] }
0x1906   :  { %6014 = vmatprep.subr.bf16.mxu1 %v6013_v50  ;;  %6046 = vmatprep.subr.bf16.mxu0 %v6045_v15  ;;  %v407_v50 = vld [vmem:[%s7972_s13 + $0x738] sm:$0xff]  ;;  %v392_v15 = vld [vmem:[%s7972_s13 + $0x6c0] sm:$0xff] }
0x1907   :  { %v6059_v3 = vpack.c.bf16 %v407_v50, %v406_v54  ;;  %v6029_v2 = vpack.c.bf16 %v393_v59, %v392_v15  ;;  %v4230_v54 = vmax.f32 %v7440_v7, 0.0  ;;  %v4232_v50 = vmax.f32 %v7442_v9, 0.0  ;;  %v5127_v7 = vld [vmem:[%s7973_s14] ss:$0 sm:$0xff] }
0x1908   :  { %4621 = vmatmul.mubr.f32.vlgmr.msra.gmra.mrb[62].mxu1 %v4226_v42  ;;  %4696 = vmatmul.mubr.f32.vlgmr.msra.gmra.mrb[56].mxu0 %v4228_v37  ;;  %v394_v42 = vld [vmem:[%s7972_s13 + $0x6d0] sm:$0xff]  ;;  %v395_v37 = vld [vmem:[%s7972_s13 + $0x6d8] sm:$0xff]  ;;  %v4247_v15 = vmax.f32 %v7487_v63, 0.0  ;;  %v4249_v59 = vmax.f32 %v7489_v8, 0.0 }
0x1909   :  { %4625 = vmatprep.mubr.f32.mxu1 %v4243_v10  ;;  %4700 = vmatprep.mubr.f32.mxu0 %v4245_v12  ;;  %v378_v10 = vld [vmem:[%s7972_s13 + $0x650] sm:$0xff]  ;;  %v379_v12 = vld [vmem:[%s7972_s13 + $0x658] sm:$0xff] }
0x190a   :  { %6016 = vmatpush3.bf16.msra.mxu1 %v6015_v38  ;;  %6048 = vmatpush3.bf16.msra.mxu0 %v6047_v58  ;;  %v409_v38 = vld [vmem:[%s7972_s13 + $0x748] sm:$0xff]  ;;  %v427_v58 = vld [vmem:[%s7972_s13 + $0x7d8] sm:$0xff] }
0x190b   :  { %6018 = vmatprep.subr.bf16.mxu1 %v6017_v16  ;;  %6050 = vmatprep.subr.bf16.mxu0 %v6049_v17  ;;  %v6063_v5 = vpack.c.bf16 %v409_v38, %v408_v47  ;;  %v6033_v16 = vpack.c.bf16 %v395_v37, %v394_v42  ;;  %v6065_v17 = vpack.c.bf16 %v427_v58, %v426_v57 }
0x190c   :  { %4626 = vmatmul.mubr.f32.gmra.mrb[64].mxu1 %v4242_v22  ;;  %4701 = vmatmul.mubr.f32.gmra.mrb[58].mxu0 %v4244_v23  ;;  %v6035_v22 = vpack.c.bf16 %v379_v12, %v378_v10  ;;  %v6067_v23 = vpack.c.bf16 %v411_v36, %v410_v13 }
0x190d   :  { %4770 = vmatprep.mubr.f32.mxu1 %v4231_v44  ;;  %4845 = vmatprep.mubr.f32.mxu0 %v4233_v55  ;;  %v412_v44 = vld [vmem:[%s7972_s13 + $0x760] sm:$0xff]  ;;  %v413_v55 = vld [vmem:[%s7972_s13 + $0x768] sm:$0xff] }
0x190e   :  { %6020 = vmatpush3.bf16.msra.mxu1 %v6019_v43  ;;  %6052 = vmatpush3.bf16.msra.mxu0 %v6051_v45  ;;  %v380_v43 = vld [vmem:[%s7972_s13 + $0x660] sm:$0xff]  ;;  %v381_v45 = vld [vmem:[%s7972_s13 + $0x668] sm:$0xff]  ;;  %v6071_v21 = vpack.c.bf16 %v413_v55, %v412_v44 }
0x190f   :  { %6022 = vmatprep.subr.bf16.mxu1 %v6021_v18  ;;  %6054 = vmatprep.subr.bf16.mxu0 %v6053_v4  ;;  %v398_v18 = vld [vmem:[%s7972_s13 + $0x6f0] sm:$0xff]  ;;  %v399_v4 = vld [vmem:[%s7972_s13 + $0x6f8] sm:$0xff]  ;;  %v6039_v30 = vpack.c.bf16 %v381_v45, %v380_v43 }
0x1910   :  { %v6041_v26 = vpack.c.bf16 %v399_v4, %v398_v18 }
0x1912   :  { %6024 = vmatpush3.bf16.msra.mxu1 %v6023_v56  ;;  %6056 = vmatpush3.bf16.msra.mxu0 %v6055_v1  ;;  %v6073_v56 = vpack.c.bf16 %v431_v61, %v430_v14  ;;  %v383_v1 = vld [vmem:[%s7972_s13 + $0x678] sm:$0xff] }
0x1913   :  { %6026 = vmatprep.subr.bf16.mxu1 %v6025_v48  ;;  %6058 = vmatprep.subr.bf16.mxu0 %v6057_v32  ;;  %v6043_v48 = vpack.c.bf16 %v383_v1, %v382_v33  ;;  %v6075_v32 = vpack.c.bf16 %v415_v49, %v414_v39 }
0x1916   :  { %6028 = vmatpush3.bf16.msra.mxu1 %v6027_v41  ;;  %6060 = vmatpush3.bf16.msra.mxu0 %v6059_v3 }
0x1917   :  { %6030 = vmatprep.subr.bf16.mxu1 %v6029_v2  ;;  %6062 = vmatprep.subr.bf16.mxu0 %v6061_v46 }
0x191a   :  { %6032 = vmatpush3.bf16.msra.mxu1 %v6031_v52  ;;  %6064 = vmatpush3.bf16.msra.mxu0 %v6063_v5 }
0x191b   :  { %6034 = vmatprep.subr.bf16.mxu1 %v6033_v16  ;;  %6066 = vmatprep.subr.bf16.mxu0 %v6065_v17 }
0x191e   :  { %6036 = vmatpush3.bf16.msra.mxu1 %v6035_v22  ;;  %6068 = vmatpush3.bf16.msra.mxu0 %v6067_v23 }
0x191f   :  { %6038 = vmatprep.subr.bf16.mxu1 %v6037_v51  ;;  %6070 = vmatprep.subr.bf16.mxu0 %v6069_v53 }
0x1922   :  { %6040 = vmatpush3.bf16.msra.mxu1 %v6039_v30  ;;  %6072 = vmatpush3.bf16.msra.mxu0 %v6071_v21 }
0x1923   :  { %6042 = vmatprep.subr.bf16.mxu1 %v6041_v26  ;;  %6074 = vmatprep.subr.bf16.mxu0 %v6073_v56 }
0x1926   :  { %6044 = vmatpush3.bf16.msra.mxu1 %v6043_v48  ;;  %6076 = vmatpush3.bf16.msra.mxu0 %v6075_v32 }
0x1929   :  { %4771 = vmatmul.mubr.f32.vlgmr.msra.gmra.mrb[66].mxu1 %v4230_v54  ;;  %4846 = vmatmul.mubr.f32.vlgmr.msra.gmra.mrb[60].mxu0 %v4232_v50 }
0x192a   :  { %4775 = vmatprep.mubr.f32.mxu1 %v4247_v15  ;;  %4850 = vmatprep.mubr.f32.mxu0 %v4249_v59 }
0x192d   :  { %4776 = vmatmul.mubr.f32.gmra.mrb[68].mxu1 %v4246_v60  ;;  %4851 = vmatmul.mubr.f32.gmra.mrb[62].mxu0 %v4248_v62 }
0x199a   :  { %v5252_v41 = vpop.f32.mrb[54].mxu1  ;;  %v5290_v3 = vpop.f32.mrb[48].mxu0 }
0x199b   :  { %v5253_v9 = vpop.f32.mrb[55].mxu1  ;;  %v5291_v63 = vpop.f32.mrb[49].mxu0 }
0x199c   :  { %v5254_v27 = vadd.f32 %v5253_v9, %v5252_v41  ;;  %v5292_v8 = vadd.f32 %v5291_v63, %v5290_v3 }
0x199e   :  { %v4323_v0 = vadd.f32 %v5254_v27, %v5127_v7  ;;  %v5255_v2 = vpop.f32.mrb[56].mxu1  ;;  %v5293_v46 = vpop.f32.mrb[50].mxu0 }
0x199f   :  { %v5256_v47 = vpop.f32.mrb[57].mxu1  ;;  %v5294_v38 = vpop.f32.mrb[51].mxu0 }
0x19a0   :  { %v4398_v28 = vadd.f32 %v5292_v8, %v4323_v0  ;;  %v5257_v42 = vadd.f32 %v5256_v47, %v5255_v2  ;;  %v5295_v31 = vadd.f32 %v5294_v38, %v5293_v46 }
0x19a2   :  { %v4328_v37 = vadd.f32 %v5257_v42, %v5127_v7 }
0x19a4   :  { %v4403_v57 = vadd.f32 %v5295_v31, %v4328_v37 }
0x19ba   :  { %v5328_v58 = vpop.f32.mrb[58].mxu1  ;;  %v5366_v52 = vpop.f32.mrb[52].mxu0 }
0x19bb   :  { %v5329_v5 = vpop.f32.mrb[59].mxu1  ;;  %v5367_v10 = vpop.f32.mrb[53].mxu0 }
0x19bc   :  { %v5330_v12 = vadd.f32 %v5329_v5, %v5328_v58  ;;  %v5368_v16 = vadd.f32 %v5367_v10, %v5366_v52 }
0x19be   :  { %v4473_v17 = vadd.f32 %v5330_v12, %v4398_v28  ;;  %v5331_v13 = vpop.f32.mrb[60].mxu1  ;;  %v5369_v36 = vpop.f32.mrb[54].mxu0 }
0x19bf   :  { %v5332_v19 = vpop.f32.mrb[61].mxu1  ;;  %v5370_v20 = vpop.f32.mrb[55].mxu0 }
0x19c0   :  { %v4548_v34 = vadd.f32 %v5368_v16, %v4473_v17  ;;  %v5333_v35 = vadd.f32 %v5332_v19, %v5331_v13  ;;  %v5371_v22 = vadd.f32 %v5370_v20, %v5369_v36  ;;  %v5128_v19 = vld [vmem:[%s7974_s15] ss:$0 sm:$0xff] }
0x19c2   :  { %v4478_v23 = vadd.f32 %v5333_v35, %v4403_v57 }
0x19c4   :  { %v4553_v43 = vadd.f32 %v5371_v22, %v4478_v23 }
0x19db   :  { %v5404_v45 = vpop.f32.mrb[62].mxu1  ;;  %v5442_v51 = vpop.f32.mrb[56].mxu0 }
0x19dc   :  { %v5405_v53 = vpop.f32.mrb[63].mxu1  ;;  %v5443_v44 = vpop.f32.mrb[57].mxu0 }
0x19dd   :  { %v5406_v55 = vadd.f32 %v5405_v53, %v5404_v45  ;;  %v5444_v18 = vadd.f32 %v5443_v44, %v5442_v51 }
0x19df   :  { %v4623_v4 = vadd.f32 %v5406_v55, %v4548_v34  ;;  %v5407_v14 = vpop.f32.mrb[64].mxu1  ;;  %v5445_v61 = vpop.f32.mrb[58].mxu0  ;;  %v5129_v34 = vld [vmem:[%s7975_s16] ss:$0 sm:$0xff] }
0x19e0   :  { %v5408_v30 = vpop.f32.mrb[65].mxu1  ;;  %v5446_v21 = vpop.f32.mrb[59].mxu0 }
0x19e1   :  { %v4698_v33 = vadd.f32 %v5444_v18, %v4623_v4  ;;  %v5409_v26 = vadd.f32 %v5408_v30, %v5407_v14  ;;  %v5447_v56 = vadd.f32 %v5446_v21, %v5445_v61  ;;  %v6263_v61 = vmov 0  }
0x19e2   :  { %6113 = vset.pattern.permute.xlu1 %v6263_v61  ;;  %6114 = vset.pattern.permute.xlu0 %v6263_v61 }
0x19e3   :  { %v4628_v1 = vadd.f32 %v5409_v26, %v4553_v43 }
0x19e5   :  { %v4703_v39 = vadd.f32 %v5447_v56, %v4628_v1 }
0x19fc   :  { %v5480_v49 = vpop.f32.mrb[66].mxu1  ;;  %v5518_v48 = vpop.f32.mrb[60].mxu0 }
0x19fd   :  { %v5481_v32 = vpop.f32.mrb[67].mxu1  ;;  %v5519_v54 = vpop.f32.mrb[61].mxu0 }
0x19fe   :  { %v5482_v50 = vadd.f32 %v5481_v32, %v5480_v49  ;;  %v5520_v15 = vadd.f32 %v5519_v54, %v5518_v48  ;;  %v88_v54 = vld [vmem:[%s7995_s1] sm:$0x3] }
0x1a00   :  { %v4773_v59 = vadd.f32 %v5482_v50, %v4698_v33  ;;  %v5483_v60 = vpop.f32.mrb[68].mxu1  ;;  %v5521_v62 = vpop.f32.mrb[62].mxu0  ;;  %v4973_v50 = vsub.f32 1.0, %v88_v54 }
0x1a01   :  { %v5484_v41 = vpop.f32.mrb[69].mxu1  ;;  %v5522_v3 = vpop.f32.mrb[63].mxu0 }
0x1a02   :  { %v4848_v7 = vadd.f32 %v5520_v15, %v4773_v59  ;;  %v5485_v9 = vadd.f32 %v5484_v41, %v5483_v60  ;;  %v5523_v63 = vadd.f32 %v5522_v3, %v5521_v62  ;;  %v5133_v15 = vld [vmem:[#allocation2] ss:$0 sm:$0xff]  ;;  %v4985_v59 = vrot.slane %v4973_v50, %v7214_v29 }
0x1a03   :  { %v4978_v60 = vrot.slane %v4973_v50, %v7205_v25 }
0x1a04   :  { %v4778_v27 = vadd.f32 %v5485_v9, %v4703_v39  ;;  %v4856_v8 = vadd.f32 %v4848_v7, %v6844_v24 }
0x1a06   :  { %v4853_v0 = vadd.f32 %v5523_v63, %v4778_v27  ;;  %v4858_v2 = vsel %vm446_vm0, %v4856_v8, 0.0 }
0x1a07   :  { %4859 = vadd.xlane.f32.xlu1 %v4858_v2  ;;  %v5131_v2 = vld [vmem:[%s7977_s18] ss:$0 sm:$0xff] }
0x1a08   :  { %v4857_v46 = vadd.f32 %v4853_v0, %v6875_v40 }
0x1a0a   :  { %v4861_v47 = vsel %vm446_vm0, %v4857_v46, 0.0 }
0x1a0b   :  { %4862 = vadd.xlane.f32.xlu0 %v4861_v47 }
0x1a94   :  { %v4860_v38 = vpop.xlane.xlu1 %4859 }
0x1a95   :  { %v4864_v28 = vmul.f32 0.03125, %v4860_v38  ;;  %v5132_v38 = vld [vmem:[%s7978_s19] ss:$0 sm:$0xff] }
0x1a97   :  { %v4866_v42 = vsub.f32 %v4856_v8, %v4864_v28  ;;  %v5130_v8 = vld [vmem:[%s7976_s17] ss:$0 sm:$0xff]  ;;  %s6264_s17 = smov [#allocation6]  }
0x1a98   :  { %v4863_v31 = vpop.xlane.xlu0 %4862  ;;  %s5042_s18 = sshll.u32 %s6264_s17, 4  ;;  %s5043_s18 = int_to_ptr.vmem [resolvable:$true] %s5042_s18 }
0x1a99   :  { %v4865_v37 = vmul.f32 0.03125, %v4863_v31  ;;  %v4868_v57 = vmul.f32 %v4866_v42, %v4866_v42  ;;  %s6203_s19 = scalar_lea.vmem %s5043_s18, 32  ;;  %p6208_p8 = scmp.lt.s32.totalorder %s5043_s18, %s5043_s18 }
0x1a9a   :  { %p6204_p7 = scmp.ne.s32.totalorder %s5043_s18, %s6203_s19  ;;  %p6209_p9 = scmp.lt.s32.totalorder %s6203_s19, %s6203_s19 }
0x1a9b   :  { %v4867_v58 = vsub.f32 %v4857_v46, %v4865_v37  ;;  %v4870_v52 = vsel %vm446_vm0, %v4868_v57, 0.0 }
0x1a9c   :  { %4871 = vadd.xlane.f32.xlu1 %v4870_v52  ;;  %p6210_p10 = por %p6209_p9, %p6208_p8 }
0x1a9d   :  { %v4869_v24 = vmul.f32 %v4867_v58, %v4867_v58 }
0x1a9e   :  { %p6211_p11 = pnand %p6210_p10, %p6204_p7 }
0x1a9f   :  { %v4873_v5 = vsel %vm446_vm0, %v4869_v24, 0.0 }
0x1aa0   :  { %4874 = vadd.xlane.f32.xlu0 %v4873_v5  ;;  %v4993_v5 = vmul.f32 1e+30, %v88_v54 }
0x1b29   :  { %v4872_v10 = vpop.xlane.xlu1 %4871 }
0x1b2a   :  { %v4876_v12 = vmul.f32 0.03125, %v4872_v10  ;;  %v4998_v10 = vrot.slane %v4993_v5, %v7205_v25  ;;  %v5022_v25 = vand.u32 127, %v441_v6 }
0x1b2c   :  { %v4878_v40 = vadd.f32 1e-05, %v4876_v12  ;;  %v5005_v12 = vrot.slane %v4993_v5, %v7214_v29  ;;  %v5025_v29 = vsub.s32 %v5022_v25, %v6400_v11 }
0x1b2d   :  { %v4875_v16 = vpop.xlane.xlu0 %4874 }
0x1b2e   :  { %6183 = vrsqrt.f32 %v4878_v40  ;;  %v4877_v17 = vmul.f32 0.03125, %v4875_v16 }
0x1b30   :  { %v4879_v13 = vadd.f32 1e-05, %v4877_v17 }
0x1b32   :  { %6185 = vrsqrt.f32 %v4879_v13 }
0x1b38   :  { %v6184_v36 = vpop.eup %6183 }
0x1b39   :  { %v4882_v20 = vmul.f32 %v6184_v36, %v4866_v42 }
0x1b3b   :  { %v4890_v35 = vmul.f32 %v5128_v19, %v4882_v20 }
0x1b3c   :  { %v6186_v22 = vpop.eup %6185 }
0x1b3d   :  { %v4898_v23 = vadd.f32 %v5129_v34, %v4890_v35  ;;  %v4883_v43 = vmul.f32 %v6186_v22, %v4867_v58 }
0x1b3f   :  { %vm4900_vm12 = vcmp.gt.f32.partialorder %v4898_v23, 0.0  ;;  %v4902_v45 = vmul.f32 0.01, %v4898_v23  ;;  %v4891_v51 = vmul.f32 %v5128_v19, %v4883_v43 }
0x1b41   :  { %v4904_v53 = vsel %vm4900_vm12, %v4898_v23, %v4902_v45  ;;  %v4899_v44 = vadd.f32 %v5129_v34, %v4891_v51 }
0x1b42   :  { %v4906_v55 = vsel %vm446_vm0, %v4904_v53, 0.0 }
0x1b43   :  { %4907 = vadd.xlane.f32.xlu1 %v4906_v55  ;;  %vm4901_vm13 = vcmp.gt.f32.partialorder %v4899_v44, 0.0  ;;  %v4903_v18 = vmul.f32 0.01, %v4899_v44 }
0x1b45   :  { %v4905_v4 = vsel %vm4901_vm13, %v4899_v44, %v4903_v18 }
0x1b46   :  { %v4909_v14 = vsel %vm446_vm0, %v4905_v4, 0.0 }
0x1b47   :  { %4910 = vadd.xlane.f32.xlu0 %v4909_v14 }
0x1bd0   :  { %v4908_v30 = vpop.xlane.xlu1 %4907 }
0x1bd1   :  { %v4912_v21 = vmul.f32 0.03125, %v4908_v30 }
0x1bd3   :  { %v4914_v33 = vsub.f32 %v4904_v53, %v4912_v21 }
0x1bd4   :  { %v4911_v26 = vpop.xlane.xlu0 %4910 }
0x1bd5   :  { %v4913_v56 = vmul.f32 0.03125, %v4911_v26  ;;  %v4916_v1 = vmul.f32 %v4914_v33, %v4914_v33 }
0x1bd7   :  { %v4915_v39 = vsub.f32 %v4905_v4, %v4913_v56  ;;  %v4918_v49 = vsel %vm446_vm0, %v4916_v1, 0.0 }
0x1bd8   :  { %4919 = vadd.xlane.f32.xlu1 %v4918_v49 }
0x1bd9   :  { %v4917_v48 = vmul.f32 %v4915_v39, %v4915_v39 }
0x1bdb   :  { %v4921_v32 = vsel %vm446_vm0, %v4917_v48, 0.0 }
0x1bdc   :  { %4922 = vadd.xlane.f32.xlu0 %v4921_v32 }
0x1be9   :  { %4968 = vperm.xlu1 %6113, %v5133_v15  }
0x1bed   :  { %4987 = vbcast.lane.b32.xlu1 %v4985_v59, 256 }
0x1bf2   :  { %4980 = vbcast.lane.b32.xlu0 %v4978_v60, 256 }
0x1c65   :  { %v4920_v62 = vpop.xlane.xlu1 %4919 }
0x1c66   :  { %v4924_v41 = vmul.f32 0.03125, %v4920_v62 }
0x1c68   :  { %v4926_v3 = vadd.f32 1e-12, %v4924_v41 }
0x1c69   :  { %v4923_v7 = vpop.xlane.xlu0 %4922  ;;  %v4969_v40 = vpop.permute.xlu1 %4968 }
0x1c6a   :  { %6187 = vrsqrt.f32 %v4926_v3  ;;  %v4925_v9 = vmul.f32 0.03125, %v4923_v7 }
0x1c6c   :  { %v4927_v63 = vadd.f32 1e-12, %v4925_v9 }
0x1c6d   :  { %v4988_v16 = vpop.permute.xlu1 %4987  ;;  %v4981_v17 = vpop.permute.xlu0 %4980 }
0x1c6e   :  { %6189 = vrsqrt.f32 %v4927_v63 }
0x1c74   :  { %v6188_v27 = vpop.eup %6187 }
0x1c75   :  { %v4930_v0 = vmul.f32 %v6188_v27, %v4914_v33 }
0x1c77   :  { %v4938_v46 = vmul.f32 %v5130_v8, %v4930_v0 }
0x1c78   :  { %v6190_v47 = vpop.eup %6189 }
0x1c79   :  { %v4946_v28 = vadd.f32 %v5131_v2, %v4938_v46  ;;  %v4931_v42 = vmul.f32 %v6190_v47, %v4915_v39 }
0x1c7b   :  { %v4954_v31 = vmul.f32 %v5132_v38, %v4946_v28  ;;  %v4939_v37 = vmul.f32 %v5130_v8, %v4931_v42 }
0x1c7d   :  { %v4956_v57 = vsel %vm446_vm0, %v4954_v31, 0.0  ;;  %v4947_v58 = vadd.f32 %v5131_v2, %v4939_v37 }
0x1c7e   :  { %4957 = vadd.xlane.f32.xlu1 %v4956_v57 }
0x1c7f   :  { %v4955_v52 = vmul.f32 %v5132_v38, %v4947_v58 }
0x1c81   :  { %v4959_v24 = vsel %vm446_vm0, %v4955_v52, 0.0 }
0x1c82   :  { %4960 = vadd.xlane.f32.xlu0 %v4959_v24 }
0x1c8f   :  { %5000 = vbcast.lane.b32.xlu1 %v4998_v10, 256 }
0x1c98   :  { %5007 = vbcast.lane.b32.xlu0 %v5005_v12, 256 }
0x1d0b   :  { %v4958_v13 = vpop.xlane.xlu1 %4957 }
0x1d0c   :  { %v4971_v36 = vadd.f32 %v4969_v40, %v4958_v13 }
0x1d0e   :  { %v4991_v19 = vmul.f32 %v4981_v17, %v4971_v36 }
0x1d0f   :  { %v4961_v20 = vpop.xlane.xlu0 %4960  ;;  %v5001_v34 = vpop.permute.xlu1 %5000 }
0x1d10   :  { %v4972_v35 = vadd.f32 %v4969_v40, %v4961_v20  ;;  %v5011_v22 = vsub.f32 %v4991_v19, %v5001_v34 }
0x1d12   :  { %5016 = vperm.xlu1 %6113, %v5011_v22   ;;  %v4992_v23 = vmul.f32 %v4988_v16, %v4972_v35 }
0x1d13   :  { %v5008_v43 = vpop.permute.xlu0 %5007 }
0x1d14   :  { %v5012_v45 = vsub.f32 %v4992_v23, %v5008_v43 }
0x1d16   :  { %5019 = vperm.xlu0 %6114, %v5012_v45  }
0x1d91   :  { %v5017_v51 = vpop.permute.xlu1 %5016 }
0x1d92   :  { %v5026_v44 = vrot.slane %v5017_v51, %v5025_v29 }
0x1d95   :  { %v5020_v53 = vpop.permute.xlu0 %5019 }
0x1d96   :  { %v5030_v55 = vrot.slane %v5020_v53, %v5025_v29 }
0x1d98   :  { %v5032_v18 = vsel %vm5031_vm14, %v5030_v55, %v5026_v44 }
0x1d99   :  { %5035 = vst.msk [vmem:[#allocation6] sm:$0x3] %vm5034_vm15, %v5032_v18 }
0x1d9a   :  { %6214 = shalt.err (!%p6211_p11)
}
0x1d9b   :  { %s6215_s4 = scalar_lea.hbm %s7980_s21, 32 }
0x1d9c   :  { %p6216_p12 = scmp.ne.s32.totalorder %s7980_s21, %s6215_s4  ;;  %p6219_p13 = scmp.lt.u32.totalorder %s6215_s4, %s7980_s21 }
0x1d9e   :  { %p6221_p0 = pnand %p6219_p13, %p6216_p12 }
0x1da0   :  { %6224 = shalt.err (!%p6221_p0)
}
0x1da1   :  { %5045 = dma.vmem_to_hbm [thread:$0]  %s5043_s18, 32, %s7980_s21, [#allocation4]  }
0x1da2   :  { %6227 = dma.done.wait [#allocation4], 32  }
0x1da3   :  { %6228 = vsyncadd [#allocation4], 4294967264 }
0x1da4   :  { %5049 = vsyncpa [#allocation4], 1 }
0x1da5   :  { %5050 = vsyncpa [#allocation5], 1 }

</bundles_post_ra>
